<compile_context>
chip_gen: v6e
topology: v6e:2x2x1
jax: 0.10.0
libtpu: 0.0.40
codegen_flags: <defaults>
</compile_context>

<pallas_src>
import functools

import jax
import jax.numpy as jnp
from jax.experimental import pallas as pl
from jax.experimental.pallas import tpu as pltpu


# ----------------------------- kernel helpers -------------------------------

def _layernorm(x, gamma, beta, eps=1e-5):
    mu = jnp.mean(x, axis=-1, keepdims=True)
    var = jnp.mean((x - mu) ** 2, axis=-1, keepdims=True)
    return (x - mu) * jax.lax.rsqrt(var + eps) * gamma + beta


def _gelu(x):
    c = 0.7978845608028654  # sqrt(2/pi)
    return 0.5 * x * (1.0 + jnp.tanh(c * (x + 0.044715 * x * x * x)))


# --------------------------------- kernel -----------------------------------

def vs_head_kernel(g_ref, mask_ref,
                   wfc_ref, bfc_ref, ln1g_ref, ln1b_ref,
                   wq_ref, bq_ref, wk_ref, bk_ref, wv_ref, bv_ref,
                   wo_ref, bo_ref, ln2g_ref, ln2b_ref,
                   wi_ref, bi_ref, wo2_ref, bo2_ref, ln3g_ref, ln3b_ref,
                   wp1_ref, bp1_ref, wp2_ref, bp2_ref,
                   out_ref, *, num_heads, tb, seq_len):
    H = wfc_ref.shape[1]
    dh = H // num_heads
    scale = 1.0 / (dh ** 0.5)
    rows = tb * seq_len                      # TB batch rows flattened with T

    def mm(a, w_ref, b_ref):
        # bf16 MXU operands, f32 accumulation, f32 bias add.
        a_bf = a if a.dtype == jnp.bfloat16 else a.astype(jnp.bfloat16)
        out = jnp.dot(a_bf, w_ref[...], preferred_element_type=jnp.float32)
        return out + b_ref[...]

    g = g_ref[...].reshape(rows, g_ref.shape[-1])      # (TB*T, Din)  bf16
    mask = mask_ref[...]                               # (TB, 1, T)   f32

    # ---- FCPlusTransformer: FC encoder (Linear -> ReLU -> LayerNorm) ----
    x = jnp.maximum(mm(g, wfc_ref, bfc_ref), 0.0)
    x = _layernorm(x, ln1g_ref[...], ln1b_ref[...])    # (TB*T, H) f32
    x_bf = x.astype(jnp.bfloat16)                      # hoisted; reused 3x below

    # ---- multi-head self-attention with key-padding mask ----
    q = mm(x_bf, wq_ref, bq_ref)
    k = mm(x_bf, wk_ref, bk_ref)
    v = mm(x_bf, wv_ref, bv_ref)

    def split_heads(t2):
        # (TB*T, H) -> (nh*TB, T, dh), group index g = h*TB + b.
        # Pure relayout (static lane slices + leading-dim concat); the actual
        # contractions below are single batched einsums over the group dim.
        t3 = t2.astype(jnp.bfloat16).reshape(tb, seq_len, H)
        return jnp.concatenate(
            [t3[:, :, h * dh:(h + 1) * dh] for h in range(num_heads)], axis=0)

    qg = split_heads(q)                                # (G, T, dh) bf16
    kg = split_heads(k)
    vg = split_heads(v)

    # key-padding bias, f32; applied per head via a free leading-dim reshape
    # + broadcast add (no per-head mask copies materialized).
    neg = (1.0 - mask) * (-1e9)                        # (TB, 1, T)

    s = jnp.einsum("gqd,gkd->gqk", qg, kg,
                   preferred_element_type=jnp.float32) * scale     # (G, T, T)
    s = s.reshape(num_heads, tb, seq_len, seq_len) + neg[None]     # broadcast
    s = s.reshape(num_heads * tb, seq_len, seq_len)
    s = s - jnp.max(s, axis=-1, keepdims=True)         # f32 softmax
    p = jnp.exp(s)
    p = p * pl.reciprocal(jnp.sum(p, axis=-1, keepdims=True), approx=True)

    ctx_g = jnp.einsum("gqk,gkd->gqd", p.astype(jnp.bfloat16), vg,
                       preferred_element_type=jnp.float32)      # (G, T, dh)
    ctx = jnp.concatenate(
        [ctx_g[h * tb:(h + 1) * tb] for h in range(num_heads)], axis=-1
    ).reshape(rows, H)                                          # (TB*T, H)

    attn_out = mm(ctx, wo_ref, bo_ref)
    x = _layernorm(x + attn_out, ln2g_ref[...], ln2b_ref[...])
    x_bf = x.astype(jnp.bfloat16)

    # ---- feed-forward block ----
    mid = _gelu(mm(x_bf, wi_ref, bi_ref))
    ffn = mm(mid, wo2_ref, bo2_ref)
    x = _layernorm(x + ffn, ln3g_ref[...], ln3b_ref[...])       # (TB*T, H)

    # ---- holistic_video_feature = max over sequence (torch.max(R, dim=1)) ----
    feat = jnp.max(x.reshape(tb, seq_len, H), axis=1)           # (TB, H)

    # ---- video_score_predictor: Linear -> ReLU -> Linear ----
    h1 = jnp.maximum(mm(feat, wp1_ref, bp1_ref), 0.0)
    out_ref[...] = mm(h1, wp2_ref, bp2_ref)                     # (TB, 1)


# -------------------------------- wrapper ------------------------------------

_WEIGHT_ORDER = ["wfc", "bfc", "ln1_g", "ln1_b",
                 "wq", "bq", "wk", "bk", "wv", "bv",
                 "wo", "bo", "ln2_g", "ln2_b",
                 "wi", "bi", "wo2", "bo2", "ln3_g", "ln3_b",
                 "wp1", "bp1", "wp2", "bp2"]
_MXU_WEIGHTS = {"wfc", "wq", "wk", "wv", "wo", "wi", "wo2", "wp1", "wp2"}


def _pick_block_batch(B, T, target_rows=512):
    """Largest valid divisor of B with tb*T <= target_rows.

    Valid tb: multiple of 8 (sublane-aligned (tb, 1) output block) or tb == B.
    Prefer tb <= B // 2 so the grid has >= 2 steps (lets the 'parallel' axis
    shard across v7x's two TensorCores); fall back to tb == B otherwise.
    """
    want = max(1, target_rows // max(T, 1))

    def best(max_d):
        cands = [d for d in range(1, B + 1)
                 if B % d == 0 and d <= max_d and (d % 8 == 0 or d == B)]
        return max(cands) if cands else None

    tb = best(min(want, max(B // 2, 1)))
    if tb is None:
        tb = best(want) or B
    return tb


def video_scoring_head(G, video_mask, params, *, num_heads=4, block_batch=None,
                       target_rows=512):
    B, T, Din = G.shape
    tb = block_batch if block_batch is not None else _pick_block_batch(B, T, target_rows)
    assert B % tb == 0, (B, tb)

    # bf16 for MXU weight operands; biases / LayerNorm params stay f32.
    weights = [params[n].astype(jnp.bfloat16 if n in _MXU_WEIGHTS
                                else jnp.float32) for n in _WEIGHT_ORDER]

    mask3 = video_mask.astype(jnp.float32).reshape(B, 1, T)
    g_bf = G.astype(jnp.bfloat16)

    # Explicit scoped-VMEM budget: single-buffered weight slab + double-buffered
    # IO blocks + f32 activation estimate, 2x headroom, clamped to sane bounds.
    H = params["wfc"].shape[1]
    inter = params["wi"].shape[1]
    rows = tb * T
    w_bytes = sum(int(p.size) * p.dtype.itemsize for p in weights)
    io_bytes = 2 * (rows * Din * 2 + tb * T * 4 + tb * 4)
    act_bytes = 4 * rows * (8 * H + 3 * inter) + 12 * num_heads * tb * T * T
    vmem_limit = int(min(max(2 * (w_bytes + io_bytes + act_bytes), 32 << 20),
                         100 << 20))

    kernel = functools.partial(vs_head_kernel, num_heads=num_heads,
                               tb=tb, seq_len=T)

    def build(single_buffer_weights):
        def weight_spec(p):
            kw = {}
            if single_buffer_weights:
                # Grid-invariant block (0,...,0): one resident copy is enough;
                # the default second pipeline buffer is pure VMEM waste.
                kw["pipeline_mode"] = pl.Buffered(1)
            return pl.BlockSpec(p.shape, lambda i, nd=p.ndim: (0,) * nd, **kw)

        in_specs = ([pl.BlockSpec((tb, T, Din), lambda i: (i, 0, 0)),
                     pl.BlockSpec((tb, 1, T), lambda i: (i, 0, 0))]
                    + [weight_spec(p) for p in weights])
        # Per-step disjoint output block (enables "parallel" batch semantics).
        out_spec = pl.BlockSpec((tb, 1), lambda i: (i, 0))

        return pl.pallas_call(
            kernel,
            out_shape=jax.ShapeDtypeStruct((B, 1), jnp.float32),
            grid_spec=pltpu.PrefetchScalarGridSpec(
                num_scalar_prefetch=0,
                grid=(B // tb,),
                in_specs=in_specs,
                out_specs=out_spec),
            compiler_params=pltpu.CompilerParams(
                dimension_semantics=("parallel",),
                vmem_limit_bytes=vmem_limit),
        )

    try:
        return build(True)(g_bf, mask3, *weights)
    except Exception:
        # TODO(synk): some JAX versions reject per-spec pipeline_mode on the
        # main pallas_call pipeline; fall back to default double-buffering.
        return build(False)(g_bf, mask3, *weights)


# ---------------------------- parameter setup --------------------------------

def init_params(key, din, hidden, inter):
    ks = jax.random.split(key, 12)

    def nrm(k, shape, s=0.05):
        return (s * jax.random.normal(k, shape)).astype(jnp.float32)

    return {
        "wfc": nrm(ks[0], (din, hidden)), "bfc": jnp.zeros((1, hidden), jnp.float32),
        "ln1_g": jnp.ones((1, hidden), jnp.float32), "ln1_b": jnp.zeros((1, hidden), jnp.float32),
        "wq": nrm(ks[1], (hidden, hidden)), "bq": jnp.zeros((1, hidden), jnp.float32),
        "wk": nrm(ks[2], (hidden, hidden)), "bk": jnp.zeros((1, hidden), jnp.float32),
        "wv": nrm(ks[3], (hidden, hidden)), "bv": jnp.zeros((1, hidden), jnp.float32),
        "wo": nrm(ks[4], (hidden, hidden)), "bo": jnp.zeros((1, hidden), jnp.float32),
        "ln2_g": jnp.ones((1, hidden), jnp.float32), "ln2_b": jnp.zeros((1, hidden), jnp.float32),
        "wi": nrm(ks[5], (hidden, inter)), "bi": jnp.zeros((1, inter), jnp.float32),
        "wo2": nrm(ks[6], (inter, hidden)), "bo2": jnp.zeros((1, hidden), jnp.float32),
        "ln3_g": jnp.ones((1, hidden), jnp.float32), "ln3_b": jnp.zeros((1, hidden), jnp.float32),
        "wp1": nrm(ks[7], (hidden, hidden)), "bp1": jnp.zeros((1, hidden), jnp.float32),
        "wp2": nrm(ks[8], (hidden, 1)), "bp2": jnp.zeros((1, 1), jnp.float32),
    }


# ------------------------- pure-JAX reference --------------------------------

def reference_forward(G, video_mask, params, num_heads=4):
    def ln(x, g, b, eps=1e-5):
        mu = jnp.mean(x, -1, keepdims=True)
        var = jnp.mean((x - mu) ** 2, -1, keepdims=True)
        return (x - mu) * jax.lax.rsqrt(var + eps) * g + b

    B, T, _ = G.shape
    p = params
    x = jnp.maximum(G @ p["wfc"] + p["bfc"], 0.0)
    x = ln(x, p["ln1_g"], p["ln1_b"])
    H = x.shape[-1]
    dh = H // num_heads
    q = (x @ p["wq"] + p["bq"]).reshape(B, T, num_heads, dh)
    k = (x @ p["wk"] + p["bk"]).reshape(B, T, num_heads, dh)
    v = (x @ p["wv"] + p["bv"]).reshape(B, T, num_heads, dh)
    s = jnp.einsum("bqhd,bkhd->bhqk", q, k) / (dh ** 0.5)
    s = s + ((1.0 - video_mask.astype(jnp.float32)) * -1e9)[:, None, None, :]
    pr = jax.nn.softmax(s, axis=-1)
    ctx = jnp.einsum("bhqk,bkhd->bqhd", pr, v).reshape(B, T, H)
    x = ln(x + ctx @ p["wo"] + p["bo"], p["ln2_g"], p["ln2_b"])
    c = 0.7978845608028654
    mid = x @ p["wi"] + p["bi"]
    mid = 0.5 * mid * (1.0 + jnp.tanh(c * (mid + 0.044715 * mid ** 3)))
    x = ln(x + mid @ p["wo2"] + p["bo2"], p["ln3_g"], p["ln3_b"])
    feat = jnp.max(x, axis=1)
    h1 = jnp.maximum(feat @ p["wp1"] + p["bp1"], 0.0)
    return h1 @ p["wp2"] + p["bp2"]


# ----------------------------------- main -------------------------------------

if __name__ == "__main__":
    B, T = 2, 8
    hidden_dim = 32          # transformer hidden size
    Din = hidden_dim * 5     # input feature dim to FCPlusTransformer (hidden_dim * 5)
    inter = 64               # transformer FFN intermediate size
    num_heads = 4

    key = jax.random.PRNGKey(0)
    k_g, k_p = jax.random.split(key)
    G = jax.random.normal(k_g, (B, T, Din), dtype=jnp.float32)
    video_mask = jnp.array([[1, 1, 1, 1, 1, 1, 0, 0],
                            [1, 1, 1, 1, 0, 0, 0, 0]], dtype=jnp.float32)

    params = init_params(k_p, Din, hidden_dim, inter)

    out = video_scoring_head(G, video_mask, params, num_heads=num_heads)
    out = jax.block_until_ready(out)

    ref = reference_forward(G, video_mask, params, num_heads=num_heads)
    assert out.shape == (B, 1)
    # bf16 MXU operands vs f32 reference -> loose but safe tolerance.
    assert jnp.allclose(out, ref, rtol=5e-2, atol=5e-2), (out, ref)

    print("KERNEL_OK")
</pallas_src>

<mosaic_0001>
module attributes {stable_mosaic.version = 11 : i64} {
  func.func @vs_head_kernel(%arg0: i32, %arg1: memref<2x8x160xbf16, #tpu.memory_space<vmem>>, %arg2: memref<2x1x8xf32, #tpu.memory_space<vmem>>, %arg3: memref<160x32xbf16, #tpu.memory_space<vmem>>, %arg4: memref<1x32xf32, #tpu.memory_space<vmem>>, %arg5: memref<1x32xf32, #tpu.memory_space<vmem>>, %arg6: memref<1x32xf32, #tpu.memory_space<vmem>>, %arg7: memref<32x32xbf16, #tpu.memory_space<vmem>>, %arg8: memref<1x32xf32, #tpu.memory_space<vmem>>, %arg9: memref<32x32xbf16, #tpu.memory_space<vmem>>, %arg10: memref<1x32xf32, #tpu.memory_space<vmem>>, %arg11: memref<32x32xbf16, #tpu.memory_space<vmem>>, %arg12: memref<1x32xf32, #tpu.memory_space<vmem>>, %arg13: memref<32x32xbf16, #tpu.memory_space<vmem>>, %arg14: memref<1x32xf32, #tpu.memory_space<vmem>>, %arg15: memref<1x32xf32, #tpu.memory_space<vmem>>, %arg16: memref<1x32xf32, #tpu.memory_space<vmem>>, %arg17: memref<32x64xbf16, #tpu.memory_space<vmem>>, %arg18: memref<1x64xf32, #tpu.memory_space<vmem>>, %arg19: memref<64x32xbf16, #tpu.memory_space<vmem>>, %arg20: memref<1x32xf32, #tpu.memory_space<vmem>>, %arg21: memref<1x32xf32, #tpu.memory_space<vmem>>, %arg22: memref<1x32xf32, #tpu.memory_space<vmem>>, %arg23: memref<32x32xbf16, #tpu.memory_space<vmem>>, %arg24: memref<1x32xf32, #tpu.memory_space<vmem>>, %arg25: memref<32x1xbf16, #tpu.memory_space<vmem>>, %arg26: memref<1x1xf32, #tpu.memory_space<vmem>>, %arg27: memref<2x1xf32, #tpu.memory_space<vmem>>) attributes {dimension_semantics = [#tpu.dimension_semantics<parallel>], iteration_bounds = array<i64: 1>, scalar_prefetch = 0 : i64, scratch_operands = 0 : i64, tpu.core_type = #tpu.core_type<tc>, window_params = [{transform_indices = @transform_0, window_bounds = array<i64: 2, 8, 160>}, {transform_indices = @transform_1, window_bounds = array<i64: 2, 1, 8>}, {pipeline_mode = #tpu.pipeline_mode<synchronous>, transform_indices = @transform_2, window_bounds = array<i64: 160, 32>}, {pipeline_mode = #tpu.pipeline_mode<synchronous>, transform_indices = @transform_3, window_bounds = array<i64: 1, 32>}, {pipeline_mode = #tpu.pipeline_mode<synchronous>, transform_indices = @transform_4, window_bounds = array<i64: 1, 32>}, {pipeline_mode = #tpu.pipeline_mode<synchronous>, transform_indices = @transform_5, window_bounds = array<i64: 1, 32>}, {pipeline_mode = #tpu.pipeline_mode<synchronous>, transform_indices = @transform_6, window_bounds = array<i64: 32, 32>}, {pipeline_mode = #tpu.pipeline_mode<synchronous>, transform_indices = @transform_7, window_bounds = array<i64: 1, 32>}, {pipeline_mode = #tpu.pipeline_mode<synchronous>, transform_indices = @transform_8, window_bounds = array<i64: 32, 32>}, {pipeline_mode = #tpu.pipeline_mode<synchronous>, transform_indices = @transform_9, window_bounds = array<i64: 1, 32>}, {pipeline_mode = #tpu.pipeline_mode<synchronous>, transform_indices = @transform_10, window_bounds = array<i64: 32, 32>}, {pipeline_mode = #tpu.pipeline_mode<synchronous>, transform_indices = @transform_11, window_bounds = array<i64: 1, 32>}, {pipeline_mode = #tpu.pipeline_mode<synchronous>, transform_indices = @transform_12, window_bounds = array<i64: 32, 32>}, {pipeline_mode = #tpu.pipeline_mode<synchronous>, transform_indices = @transform_13, window_bounds = array<i64: 1, 32>}, {pipeline_mode = #tpu.pipeline_mode<synchronous>, transform_indices = @transform_14, window_bounds = array<i64: 1, 32>}, {pipeline_mode = #tpu.pipeline_mode<synchronous>, transform_indices = @transform_15, window_bounds = array<i64: 1, 32>}, {pipeline_mode = #tpu.pipeline_mode<synchronous>, transform_indices = @transform_16, window_bounds = array<i64: 32, 64>}, {pipeline_mode = #tpu.pipeline_mode<synchronous>, transform_indices = @transform_17, window_bounds = array<i64: 1, 64>}, {pipeline_mode = #tpu.pipeline_mode<synchronous>, transform_indices = @transform_18, window_bounds = array<i64: 64, 32>}, {pipeline_mode = #tpu.pipeline_mode<synchronous>, transform_indices = @transform_19, window_bounds = array<i64: 1, 32>}, {pipeline_mode = #tpu.pipeline_mode<synchronous>, transform_indices = @transform_20, window_bounds = array<i64: 1, 32>}, {pipeline_mode = #tpu.pipeline_mode<synchronous>, transform_indices = @transform_21, window_bounds = array<i64: 1, 32>}, {pipeline_mode = #tpu.pipeline_mode<synchronous>, transform_indices = @transform_22, window_bounds = array<i64: 32, 32>}, {pipeline_mode = #tpu.pipeline_mode<synchronous>, transform_indices = @transform_23, window_bounds = array<i64: 1, 32>}, {pipeline_mode = #tpu.pipeline_mode<synchronous>, transform_indices = @transform_24, window_bounds = array<i64: 32, 1>}, {pipeline_mode = #tpu.pipeline_mode<synchronous>, transform_indices = @transform_25, window_bounds = array<i64: 1, 1>}, {transform_indices = @transform_26, window_bounds = array<i64: 2, 1>}]} {
    %c0 = arith.constant 0 : index
    %c0_0 = arith.constant 0 : index
    %c0_1 = arith.constant 0 : index
    %0 = vector.load %arg1[%c0, %c0_0, %c0_1] : memref<2x8x160xbf16, #tpu.memory_space<vmem>>, vector<2x8x160xbf16>
    %1 = vector.shape_cast %0 : vector<2x8x160xbf16> to vector<16x160xbf16>
    %c0_2 = arith.constant 0 : index
    %c0_3 = arith.constant 0 : index
    %c0_4 = arith.constant 0 : index
    %2 = vector.load %arg2[%c0_2, %c0_3, %c0_4] : memref<2x1x8xf32, #tpu.memory_space<vmem>>, vector<2x1x8xf32>
    %c0_5 = arith.constant 0 : index
    %c0_6 = arith.constant 0 : index
    %3 = vector.load %arg3[%c0_5, %c0_6] : memref<160x32xbf16, #tpu.memory_space<vmem>>, vector<160x32xbf16>
    %cst = arith.constant dense<0.000000e+00> : vector<16x32xf32>
    %4 = tpu.matmul %1, %3, %cst {dimension_numbers = #tpu.dot_dimension_numbers<[1], [0], [0], [1], [0, 0, 1, 1], [], []>} : vector<16x160xbf16>, vector<160x32xbf16>, vector<16x32xf32> -> vector<16x32xf32>
    %c0_7 = arith.constant 0 : index
    %c0_8 = arith.constant 0 : index
    %5 = vector.load %arg4[%c0_7, %c0_8] : memref<1x32xf32, #tpu.memory_space<vmem>>, vector<1x32xf32>
    %6 = vector.broadcast %5 : vector<1x32xf32> to vector<16x32xf32>
    %7 = arith.addf %4, %6 : vector<16x32xf32>
    %cst_9 = arith.constant 0.000000e+00 : f32
    %8 = vector.broadcast %cst_9 : f32 to vector<16x32xf32>
    %9 = arith.maximumf %7, %8 : vector<16x32xf32>
    %c0_10 = arith.constant 0 : index
    %c0_11 = arith.constant 0 : index
    %10 = vector.load %arg5[%c0_10, %c0_11] : memref<1x32xf32, #tpu.memory_space<vmem>>, vector<1x32xf32>
    %c0_12 = arith.constant 0 : index
    %c0_13 = arith.constant 0 : index
    %11 = vector.load %arg6[%c0_12, %c0_13] : memref<1x32xf32, #tpu.memory_space<vmem>>, vector<1x32xf32>
    %cst_14 = arith.constant dense<0.000000e+00> : vector<16xf32>
    %12 = vector.multi_reduction <add>, %9, %cst_14 [1] : vector<16x32xf32> to vector<16xf32>
    %13 = vector.shape_cast %12 : vector<16xf32> to vector<16x1xf32>
    %cst_15 = arith.constant 3.200000e+01 : f32
    %14 = vector.broadcast %cst_15 : f32 to vector<16x1xf32>
    %15 = arith.divf %13, %14 : vector<16x1xf32>
    %16 = vector.broadcast %15 : vector<16x1xf32> to vector<16x32xf32>
    %17 = arith.subf %9, %16 : vector<16x32xf32>
    %18 = arith.mulf %17, %17 : vector<16x32xf32>
    %cst_16 = arith.constant dense<0.000000e+00> : vector<16xf32>
    %19 = vector.multi_reduction <add>, %18, %cst_16 [1] : vector<16x32xf32> to vector<16xf32>
    %20 = vector.shape_cast %19 : vector<16xf32> to vector<16x1xf32>
    %cst_17 = arith.constant 3.200000e+01 : f32
    %21 = vector.broadcast %cst_17 : f32 to vector<16x1xf32>
    %22 = arith.divf %20, %21 : vector<16x1xf32>
    %23 = vector.broadcast %15 : vector<16x1xf32> to vector<16x32xf32>
    %24 = arith.subf %9, %23 : vector<16x32xf32>
    %cst_18 = arith.constant 9.99999974E-6 : f32
    %25 = vector.broadcast %cst_18 : f32 to vector<16x1xf32>
    %26 = arith.addf %22, %25 : vector<16x1xf32>
    %27 = math.rsqrt %26 : vector<16x1xf32>
    %28 = vector.broadcast %27 : vector<16x1xf32> to vector<16x32xf32>
    %29 = arith.mulf %24, %28 : vector<16x32xf32>
    %30 = vector.broadcast %10 : vector<1x32xf32> to vector<16x32xf32>
    %31 = arith.mulf %29, %30 : vector<16x32xf32>
    %32 = vector.broadcast %11 : vector<1x32xf32> to vector<16x32xf32>
    %33 = arith.addf %31, %32 : vector<16x32xf32>
    %34 = arith.truncf %33 : vector<16x32xf32> to vector<16x32xbf16>
    %c0_19 = arith.constant 0 : index
    %c0_20 = arith.constant 0 : index
    %35 = vector.load %arg7[%c0_19, %c0_20] : memref<32x32xbf16, #tpu.memory_space<vmem>>, vector<32x32xbf16>
    %cst_21 = arith.constant dense<0.000000e+00> : vector<16x32xf32>
    %36 = tpu.matmul %34, %35, %cst_21 {dimension_numbers = #tpu.dot_dimension_numbers<[1], [0], [0], [1], [0, 0, 1, 1], [], []>} : vector<16x32xbf16>, vector<32x32xbf16>, vector<16x32xf32> -> vector<16x32xf32>
    %c0_22 = arith.constant 0 : index
    %c0_23 = arith.constant 0 : index
    %37 = vector.load %arg8[%c0_22, %c0_23] : memref<1x32xf32, #tpu.memory_space<vmem>>, vector<1x32xf32>
    %38 = vector.broadcast %37 : vector<1x32xf32> to vector<16x32xf32>
    %39 = arith.addf %36, %38 : vector<16x32xf32>
    %c0_24 = arith.constant 0 : index
    %c0_25 = arith.constant 0 : index
    %40 = vector.load %arg9[%c0_24, %c0_25] : memref<32x32xbf16, #tpu.memory_space<vmem>>, vector<32x32xbf16>
    %cst_26 = arith.constant dense<0.000000e+00> : vector<16x32xf32>
    %41 = tpu.matmul %34, %40, %cst_26 {dimension_numbers = #tpu.dot_dimension_numbers<[1], [0], [0], [1], [0, 0, 1, 1], [], []>} : vector<16x32xbf16>, vector<32x32xbf16>, vector<16x32xf32> -> vector<16x32xf32>
    %c0_27 = arith.constant 0 : index
    %c0_28 = arith.constant 0 : index
    %42 = vector.load %arg10[%c0_27, %c0_28] : memref<1x32xf32, #tpu.memory_space<vmem>>, vector<1x32xf32>
    %43 = vector.broadcast %42 : vector<1x32xf32> to vector<16x32xf32>
    %44 = arith.addf %41, %43 : vector<16x32xf32>
    %c0_29 = arith.constant 0 : index
    %c0_30 = arith.constant 0 : index
    %45 = vector.load %arg11[%c0_29, %c0_30] : memref<32x32xbf16, #tpu.memory_space<vmem>>, vector<32x32xbf16>
    %cst_31 = arith.constant dense<0.000000e+00> : vector<16x32xf32>
    %46 = tpu.matmul %34, %45, %cst_31 {dimension_numbers = #tpu.dot_dimension_numbers<[1], [0], [0], [1], [0, 0, 1, 1], [], []>} : vector<16x32xbf16>, vector<32x32xbf16>, vector<16x32xf32> -> vector<16x32xf32>
    %c0_32 = arith.constant 0 : index
    %c0_33 = arith.constant 0 : index
    %47 = vector.load %arg12[%c0_32, %c0_33] : memref<1x32xf32, #tpu.memory_space<vmem>>, vector<1x32xf32>
    %48 = vector.broadcast %47 : vector<1x32xf32> to vector<16x32xf32>
    %49 = arith.addf %46, %48 : vector<16x32xf32>
    %50 = arith.truncf %39 : vector<16x32xf32> to vector<16x32xbf16>
    %51 = vector.shape_cast %50 : vector<16x32xbf16> to vector<2x8x32xbf16>
    %52 = vector.extract_strided_slice %51 {offsets = [0, 0, 0], sizes = [2, 8, 8], strides = [1, 1, 1]} : vector<2x8x32xbf16> to vector<2x8x8xbf16>
    %53 = vector.extract_strided_slice %51 {offsets = [0, 0, 8], sizes = [2, 8, 8], strides = [1, 1, 1]} : vector<2x8x32xbf16> to vector<2x8x8xbf16>
    %54 = vector.extract_strided_slice %51 {offsets = [0, 0, 16], sizes = [2, 8, 8], strides = [1, 1, 1]} : vector<2x8x32xbf16> to vector<2x8x8xbf16>
    %55 = vector.extract_strided_slice %51 {offsets = [0, 0, 24], sizes = [2, 8, 8], strides = [1, 1, 1]} : vector<2x8x32xbf16> to vector<2x8x8xbf16>
    %56 = tpu.concatenate %52, %53, %54, %55 in 0 : vector<2x8x8xbf16>, vector<2x8x8xbf16>, vector<2x8x8xbf16>, vector<2x8x8xbf16> -> vector<8x8x8xbf16>
    %57 = arith.truncf %44 : vector<16x32xf32> to vector<16x32xbf16>
    %58 = vector.shape_cast %57 : vector<16x32xbf16> to vector<2x8x32xbf16>
    %59 = vector.extract_strided_slice %58 {offsets = [0, 0, 0], sizes = [2, 8, 8], strides = [1, 1, 1]} : vector<2x8x32xbf16> to vector<2x8x8xbf16>
    %60 = vector.extract_strided_slice %58 {offsets = [0, 0, 8], sizes = [2, 8, 8], strides = [1, 1, 1]} : vector<2x8x32xbf16> to vector<2x8x8xbf16>
    %61 = vector.extract_strided_slice %58 {offsets = [0, 0, 16], sizes = [2, 8, 8], strides = [1, 1, 1]} : vector<2x8x32xbf16> to vector<2x8x8xbf16>
    %62 = vector.extract_strided_slice %58 {offsets = [0, 0, 24], sizes = [2, 8, 8], strides = [1, 1, 1]} : vector<2x8x32xbf16> to vector<2x8x8xbf16>
    %63 = tpu.concatenate %59, %60, %61, %62 in 0 : vector<2x8x8xbf16>, vector<2x8x8xbf16>, vector<2x8x8xbf16>, vector<2x8x8xbf16> -> vector<8x8x8xbf16>
    %64 = arith.truncf %49 : vector<16x32xf32> to vector<16x32xbf16>
    %65 = vector.shape_cast %64 : vector<16x32xbf16> to vector<2x8x32xbf16>
    %66 = vector.extract_strided_slice %65 {offsets = [0, 0, 0], sizes = [2, 8, 8], strides = [1, 1, 1]} : vector<2x8x32xbf16> to vector<2x8x8xbf16>
    %67 = vector.extract_strided_slice %65 {offsets = [0, 0, 8], sizes = [2, 8, 8], strides = [1, 1, 1]} : vector<2x8x32xbf16> to vector<2x8x8xbf16>
    %68 = vector.extract_strided_slice %65 {offsets = [0, 0, 16], sizes = [2, 8, 8], strides = [1, 1, 1]} : vector<2x8x32xbf16> to vector<2x8x8xbf16>
    %69 = vector.extract_strided_slice %65 {offsets = [0, 0, 24], sizes = [2, 8, 8], strides = [1, 1, 1]} : vector<2x8x32xbf16> to vector<2x8x8xbf16>
    %70 = tpu.concatenate %66, %67, %68, %69 in 0 : vector<2x8x8xbf16>, vector<2x8x8xbf16>, vector<2x8x8xbf16>, vector<2x8x8xbf16> -> vector<8x8x8xbf16>
    %cst_34 = arith.constant 1.000000e+00 : f32
    %71 = vector.broadcast %cst_34 : f32 to vector<2x1x8xf32>
    %72 = arith.subf %71, %2 : vector<2x1x8xf32>
    %cst_35 = arith.constant -1.000000e+09 : f32
    %73 = vector.broadcast %cst_35 : f32 to vector<2x1x8xf32>
    %74 = arith.mulf %72, %73 : vector<2x1x8xf32>
    "tpu.trace_start"() <{level = 10 : i32, message = "gqd,gkd->gqk"}> : () -> ()
    %cst_36 = arith.constant dense<0.000000e+00> : vector<8x8x8xf32>
    %75 = tpu.matmul %56, %63, %cst_36 {dimension_numbers = #tpu.dot_dimension_numbers<[2], [2], [1], [1], [0, 0, 0, 1, 1, 1], [0], [0]>} : vector<8x8x8xbf16>, vector<8x8x8xbf16>, vector<8x8x8xf32> -> vector<8x8x8xf32>
    "tpu.trace_stop"() : () -> ()
    %cst_37 = arith.constant 0.353553385 : f32
    %76 = vector.broadcast %cst_37 : f32 to vector<8x8x8xf32>
    %77 = arith.mulf %75, %76 : vector<8x8x8xf32>
    %78 = vector.shape_cast %77 : vector<8x8x8xf32> to vector<4x2x8x8xf32>
    %79 = vector.shape_cast %74 : vector<2x1x8xf32> to vector<1x2x1x8xf32>
    %80 = vector.broadcast %79 : vector<1x2x1x8xf32> to vector<4x2x8x8xf32>
    %81 = arith.addf %78, %80 : vector<4x2x8x8xf32>
    %82 = vector.shape_cast %81 : vector<4x2x8x8xf32> to vector<8x8x8xf32>
    %cst_38 = arith.constant dense<0xFF800000> : vector<8x8xf32>
    %83 = vector.multi_reduction <maximumf>, %82, %cst_38 [2] : vector<8x8x8xf32> to vector<8x8xf32>
    %84 = vector.shape_cast %83 : vector<8x8xf32> to vector<8x8x1xf32>
    %85 = vector.broadcast %84 : vector<8x8x1xf32> to vector<8x8x8xf32>
    %86 = arith.subf %82, %85 : vector<8x8x8xf32>
    %87 = math.exp %86 : vector<8x8x8xf32>
    %cst_39 = arith.constant dense<0.000000e+00> : vector<8x8xf32>
    %88 = vector.multi_reduction <add>, %87, %cst_39 [2] : vector<8x8x8xf32> to vector<8x8xf32>
    %89 = vector.shape_cast %88 : vector<8x8xf32> to vector<8x8x1xf32>
    %90 = tpu.reciprocal %89 {approx = true} : vector<8x8x1xf32> -> vector<8x8x1xf32>
    %91 = vector.broadcast %90 : vector<8x8x1xf32> to vector<8x8x8xf32>
    %92 = arith.mulf %87, %91 : vector<8x8x8xf32>
    %93 = arith.truncf %92 : vector<8x8x8xf32> to vector<8x8x8xbf16>
    "tpu.trace_start"() <{level = 10 : i32, message = "gqk,gkd->gqd"}> : () -> ()
    %cst_40 = arith.constant dense<0.000000e+00> : vector<8x8x8xf32>
    %94 = tpu.matmul %93, %70, %cst_40 {dimension_numbers = #tpu.dot_dimension_numbers<[2], [1], [1], [2], [0, 0, 0, 1, 1, 2], [0], [0]>} : vector<8x8x8xbf16>, vector<8x8x8xbf16>, vector<8x8x8xf32> -> vector<8x8x8xf32>
    "tpu.trace_stop"() : () -> ()
    %95 = vector.extract_strided_slice %94 {offsets = [0, 0, 0], sizes = [2, 8, 8], strides = [1, 1, 1]} : vector<8x8x8xf32> to vector<2x8x8xf32>
    %96 = vector.extract_strided_slice %94 {offsets = [2, 0, 0], sizes = [2, 8, 8], strides = [1, 1, 1]} : vector<8x8x8xf32> to vector<2x8x8xf32>
    %97 = vector.extract_strided_slice %94 {offsets = [4, 0, 0], sizes = [2, 8, 8], strides = [1, 1, 1]} : vector<8x8x8xf32> to vector<2x8x8xf32>
    %98 = vector.extract_strided_slice %94 {offsets = [6, 0, 0], sizes = [2, 8, 8], strides = [1, 1, 1]} : vector<8x8x8xf32> to vector<2x8x8xf32>
    %99 = tpu.concatenate %95, %96, %97, %98 in 2 : vector<2x8x8xf32>, vector<2x8x8xf32>, vector<2x8x8xf32>, vector<2x8x8xf32> -> vector<2x8x32xf32>
    %100 = vector.shape_cast %99 : vector<2x8x32xf32> to vector<16x32xf32>
    %101 = arith.truncf %100 : vector<16x32xf32> to vector<16x32xbf16>
    %c0_41 = arith.constant 0 : index
    %c0_42 = arith.constant 0 : index
    %102 = vector.load %arg13[%c0_41, %c0_42] : memref<32x32xbf16, #tpu.memory_space<vmem>>, vector<32x32xbf16>
    %cst_43 = arith.constant dense<0.000000e+00> : vector<16x32xf32>
    %103 = tpu.matmul %101, %102, %cst_43 {dimension_numbers = #tpu.dot_dimension_numbers<[1], [0], [0], [1], [0, 0, 1, 1], [], []>} : vector<16x32xbf16>, vector<32x32xbf16>, vector<16x32xf32> -> vector<16x32xf32>
    %c0_44 = arith.constant 0 : index
    %c0_45 = arith.constant 0 : index
    %104 = vector.load %arg14[%c0_44, %c0_45] : memref<1x32xf32, #tpu.memory_space<vmem>>, vector<1x32xf32>
    %105 = vector.broadcast %104 : vector<1x32xf32> to vector<16x32xf32>
    %106 = arith.addf %103, %105 : vector<16x32xf32>
    %107 = arith.addf %33, %106 : vector<16x32xf32>
    %c0_46 = arith.constant 0 : index
    %c0_47 = arith.constant 0 : index
    %108 = vector.load %arg15[%c0_46, %c0_47] : memref<1x32xf32, #tpu.memory_space<vmem>>, vector<1x32xf32>
    %c0_48 = arith.constant 0 : index
    %c0_49 = arith.constant 0 : index
    %109 = vector.load %arg16[%c0_48, %c0_49] : memref<1x32xf32, #tpu.memory_space<vmem>>, vector<1x32xf32>
    %cst_50 = arith.constant dense<0.000000e+00> : vector<16xf32>
    %110 = vector.multi_reduction <add>, %107, %cst_50 [1] : vector<16x32xf32> to vector<16xf32>
    %111 = vector.shape_cast %110 : vector<16xf32> to vector<16x1xf32>
    %cst_51 = arith.constant 3.200000e+01 : f32
    %112 = vector.broadcast %cst_51 : f32 to vector<16x1xf32>
    %113 = arith.divf %111, %112 : vector<16x1xf32>
    %114 = vector.broadcast %113 : vector<16x1xf32> to vector<16x32xf32>
    %115 = arith.subf %107, %114 : vector<16x32xf32>
    %116 = arith.mulf %115, %115 : vector<16x32xf32>
    %cst_52 = arith.constant dense<0.000000e+00> : vector<16xf32>
    %117 = vector.multi_reduction <add>, %116, %cst_52 [1] : vector<16x32xf32> to vector<16xf32>
    %118 = vector.shape_cast %117 : vector<16xf32> to vector<16x1xf32>
    %cst_53 = arith.constant 3.200000e+01 : f32
    %119 = vector.broadcast %cst_53 : f32 to vector<16x1xf32>
    %120 = arith.divf %118, %119 : vector<16x1xf32>
    %121 = vector.broadcast %113 : vector<16x1xf32> to vector<16x32xf32>
    %122 = arith.subf %107, %121 : vector<16x32xf32>
    %cst_54 = arith.constant 9.99999974E-6 : f32
    %123 = vector.broadcast %cst_54 : f32 to vector<16x1xf32>
    %124 = arith.addf %120, %123 : vector<16x1xf32>
    %125 = math.rsqrt %124 : vector<16x1xf32>
    %126 = vector.broadcast %125 : vector<16x1xf32> to vector<16x32xf32>
    %127 = arith.mulf %122, %126 : vector<16x32xf32>
    %128 = vector.broadcast %108 : vector<1x32xf32> to vector<16x32xf32>
    %129 = arith.mulf %127, %128 : vector<16x32xf32>
    %130 = vector.broadcast %109 : vector<1x32xf32> to vector<16x32xf32>
    %131 = arith.addf %129, %130 : vector<16x32xf32>
    %132 = arith.truncf %131 : vector<16x32xf32> to vector<16x32xbf16>
    %c0_55 = arith.constant 0 : index
    %c0_56 = arith.constant 0 : index
    %133 = vector.load %arg17[%c0_55, %c0_56] : memref<32x64xbf16, #tpu.memory_space<vmem>>, vector<32x64xbf16>
    %cst_57 = arith.constant dense<0.000000e+00> : vector<16x64xf32>
    %134 = tpu.matmul %132, %133, %cst_57 {dimension_numbers = #tpu.dot_dimension_numbers<[1], [0], [0], [1], [0, 0, 1, 1], [], []>} : vector<16x32xbf16>, vector<32x64xbf16>, vector<16x64xf32> -> vector<16x64xf32>
    %c0_58 = arith.constant 0 : index
    %c0_59 = arith.constant 0 : index
    %135 = vector.load %arg18[%c0_58, %c0_59] : memref<1x64xf32, #tpu.memory_space<vmem>>, vector<1x64xf32>
    %136 = vector.broadcast %135 : vector<1x64xf32> to vector<16x64xf32>
    %137 = arith.addf %134, %136 : vector<16x64xf32>
    %cst_60 = arith.constant 5.000000e-01 : f32
    %138 = vector.broadcast %cst_60 : f32 to vector<16x64xf32>
    %139 = arith.mulf %138, %137 : vector<16x64xf32>
    %cst_61 = arith.constant 4.471500e-02 : f32
    %140 = vector.broadcast %cst_61 : f32 to vector<16x64xf32>
    %141 = arith.mulf %140, %137 : vector<16x64xf32>
    %142 = arith.mulf %141, %137 : vector<16x64xf32>
    %143 = arith.mulf %142, %137 : vector<16x64xf32>
    %144 = arith.addf %137, %143 : vector<16x64xf32>
    %cst_62 = arith.constant 0.797884583 : f32
    %145 = vector.broadcast %cst_62 : f32 to vector<16x64xf32>
    %146 = arith.mulf %145, %144 : vector<16x64xf32>
    %147 = math.tanh %146 : vector<16x64xf32>
    %cst_63 = arith.constant 1.000000e+00 : f32
    %148 = vector.broadcast %cst_63 : f32 to vector<16x64xf32>
    %149 = arith.addf %148, %147 : vector<16x64xf32>
    %150 = arith.mulf %139, %149 : vector<16x64xf32>
    %151 = arith.truncf %150 : vector<16x64xf32> to vector<16x64xbf16>
    %c0_64 = arith.constant 0 : index
    %c0_65 = arith.constant 0 : index
    %152 = vector.load %arg19[%c0_64, %c0_65] : memref<64x32xbf16, #tpu.memory_space<vmem>>, vector<64x32xbf16>
    %cst_66 = arith.constant dense<0.000000e+00> : vector<16x32xf32>
    %153 = tpu.matmul %151, %152, %cst_66 {dimension_numbers = #tpu.dot_dimension_numbers<[1], [0], [0], [1], [0, 0, 1, 1], [], []>} : vector<16x64xbf16>, vector<64x32xbf16>, vector<16x32xf32> -> vector<16x32xf32>
    %c0_67 = arith.constant 0 : index
    %c0_68 = arith.constant 0 : index
    %154 = vector.load %arg20[%c0_67, %c0_68] : memref<1x32xf32, #tpu.memory_space<vmem>>, vector<1x32xf32>
    %155 = vector.broadcast %154 : vector<1x32xf32> to vector<16x32xf32>
    %156 = arith.addf %153, %155 : vector<16x32xf32>
    %157 = arith.addf %131, %156 : vector<16x32xf32>
    %c0_69 = arith.constant 0 : index
    %c0_70 = arith.constant 0 : index
    %158 = vector.load %arg21[%c0_69, %c0_70] : memref<1x32xf32, #tpu.memory_space<vmem>>, vector<1x32xf32>
    %c0_71 = arith.constant 0 : index
    %c0_72 = arith.constant 0 : index
    %159 = vector.load %arg22[%c0_71, %c0_72] : memref<1x32xf32, #tpu.memory_space<vmem>>, vector<1x32xf32>
    %cst_73 = arith.constant dense<0.000000e+00> : vector<16xf32>
    %160 = vector.multi_reduction <add>, %157, %cst_73 [1] : vector<16x32xf32> to vector<16xf32>
    %161 = vector.shape_cast %160 : vector<16xf32> to vector<16x1xf32>
    %cst_74 = arith.constant 3.200000e+01 : f32
    %162 = vector.broadcast %cst_74 : f32 to vector<16x1xf32>
    %163 = arith.divf %161, %162 : vector<16x1xf32>
    %164 = vector.broadcast %163 : vector<16x1xf32> to vector<16x32xf32>
    %165 = arith.subf %157, %164 : vector<16x32xf32>
    %166 = arith.mulf %165, %165 : vector<16x32xf32>
    %cst_75 = arith.constant dense<0.000000e+00> : vector<16xf32>
    %167 = vector.multi_reduction <add>, %166, %cst_75 [1] : vector<16x32xf32> to vector<16xf32>
    %168 = vector.shape_cast %167 : vector<16xf32> to vector<16x1xf32>
    %cst_76 = arith.constant 3.200000e+01 : f32
    %169 = vector.broadcast %cst_76 : f32 to vector<16x1xf32>
    %170 = arith.divf %168, %169 : vector<16x1xf32>
    %171 = vector.broadcast %163 : vector<16x1xf32> to vector<16x32xf32>
    %172 = arith.subf %157, %171 : vector<16x32xf32>
    %cst_77 = arith.constant 9.99999974E-6 : f32
    %173 = vector.broadcast %cst_77 : f32 to vector<16x1xf32>
    %174 = arith.addf %170, %173 : vector<16x1xf32>
    %175 = math.rsqrt %174 : vector<16x1xf32>
    %176 = vector.broadcast %175 : vector<16x1xf32> to vector<16x32xf32>
    %177 = arith.mulf %172, %176 : vector<16x32xf32>
    %178 = vector.broadcast %158 : vector<1x32xf32> to vector<16x32xf32>
    %179 = arith.mulf %177, %178 : vector<16x32xf32>
    %180 = vector.broadcast %159 : vector<1x32xf32> to vector<16x32xf32>
    %181 = arith.addf %179, %180 : vector<16x32xf32>
    %182 = vector.shape_cast %181 : vector<16x32xf32> to vector<2x8x32xf32>
    %cst_78 = arith.constant dense<0xFF800000> : vector<2x32xf32>
    %183 = vector.multi_reduction <maximumf>, %182, %cst_78 [1] : vector<2x8x32xf32> to vector<2x32xf32>
    %184 = arith.truncf %183 : vector<2x32xf32> to vector<2x32xbf16>
    %c0_79 = arith.constant 0 : index
    %c0_80 = arith.constant 0 : index
    %185 = vector.load %arg23[%c0_79, %c0_80] : memref<32x32xbf16, #tpu.memory_space<vmem>>, vector<32x32xbf16>
    %cst_81 = arith.constant dense<0.000000e+00> : vector<2x32xf32>
    %186 = tpu.matmul %184, %185, %cst_81 {dimension_numbers = #tpu.dot_dimension_numbers<[1], [0], [0], [1], [0, 0, 1, 1], [], []>} : vector<2x32xbf16>, vector<32x32xbf16>, vector<2x32xf32> -> vector<2x32xf32>
    %c0_82 = arith.constant 0 : index
    %c0_83 = arith.constant 0 : index
    %187 = vector.load %arg24[%c0_82, %c0_83] : memref<1x32xf32, #tpu.memory_space<vmem>>, vector<1x32xf32>
    %188 = vector.broadcast %187 : vector<1x32xf32> to vector<2x32xf32>
    %189 = arith.addf %186, %188 : vector<2x32xf32>
    %cst_84 = arith.constant 0.000000e+00 : f32
    %190 = vector.broadcast %cst_84 : f32 to vector<2x32xf32>
    %191 = arith.maximumf %189, %190 : vector<2x32xf32>
    %192 = arith.truncf %191 : vector<2x32xf32> to vector<2x32xbf16>
    %c0_85 = arith.constant 0 : index
    %c0_86 = arith.constant 0 : index
    %193 = vector.load %arg25[%c0_85, %c0_86] : memref<32x1xbf16, #tpu.memory_space<vmem>>, vector<32x1xbf16>
    %cst_87 = arith.constant dense<0.000000e+00> : vector<2x1xf32>
    %194 = tpu.matmul %192, %193, %cst_87 {dimension_numbers = #tpu.dot_dimension_numbers<[1], [0], [0], [1], [0, 0, 1, 1], [], []>} : vector<2x32xbf16>, vector<32x1xbf16>, vector<2x1xf32> -> vector<2x1xf32>
    %c0_88 = arith.constant 0 : index
    %c0_89 = arith.constant 0 : index
    %195 = vector.load %arg26[%c0_88, %c0_89] : memref<1x1xf32, #tpu.memory_space<vmem>>, vector<1x1xf32>
    %196 = vector.broadcast %195 : vector<1x1xf32> to vector<2x1xf32>
    %197 = arith.addf %194, %196 : vector<2x1xf32>
    %c0_90 = arith.constant 0 : index
    %c0_91 = arith.constant 0 : index
    %198 = vector.load %arg27[%c0_90, %c0_91] : memref<2x1xf32, #tpu.memory_space<vmem>>, vector<2x1xf32>
    tpu.vector_store %arg27[%c0_90, %c0_91], %197 {strides = array<i32>} : memref<2x1xf32, #tpu.memory_space<vmem>>, vector<2x1xf32>,
    return
  }
  func.func @transform_0(%arg0: i32) -> (i32, i32, i32) {
    %c0_i32 = arith.constant 0 : i32
    %c0_i32_0 = arith.constant 0 : i32
    %c0_i32_1 = arith.constant 0 : i32
    return %arg0, %c0_i32, %c0_i32_0 : i32, i32, i32
  }
  func.func @transform_1(%arg0: i32) -> (i32, i32, i32) {
    %c0_i32 = arith.constant 0 : i32
    %c0_i32_0 = arith.constant 0 : i32
    %c0_i32_1 = arith.constant 0 : i32
    return %arg0, %c0_i32, %c0_i32_0 : i32, i32, i32
  }
  func.func @transform_2(%arg0: i32) -> (i32, i32) {
    %c0_i32 = arith.constant 0 : i32
    %c0_i32_0 = arith.constant 0 : i32
    %c0_i32_1 = arith.constant 0 : i32
    return %c0_i32, %c0_i32_0 : i32, i32
  }
  func.func @transform_3(%arg0: i32) -> (i32, i32) {
    %c0_i32 = arith.constant 0 : i32
    %c0_i32_0 = arith.constant 0 : i32
    %c0_i32_1 = arith.constant 0 : i32
    return %c0_i32, %c0_i32_0 : i32, i32
  }
  func.func @transform_4(%arg0: i32) -> (i32, i32) {
    %c0_i32 = arith.constant 0 : i32
    %c0_i32_0 = arith.constant 0 : i32
    %c0_i32_1 = arith.constant 0 : i32
    return %c0_i32, %c0_i32_0 : i32, i32
  }
  func.func @transform_5(%arg0: i32) -> (i32, i32) {
    %c0_i32 = arith.constant 0 : i32
    %c0_i32_0 = arith.constant 0 : i32
    %c0_i32_1 = arith.constant 0 : i32
    return %c0_i32, %c0_i32_0 : i32, i32
  }
  func.func @transform_6(%arg0: i32) -> (i32, i32) {
    %c0_i32 = arith.constant 0 : i32
    %c0_i32_0 = arith.constant 0 : i32
    %c0_i32_1 = arith.constant 0 : i32
    return %c0_i32, %c0_i32_0 : i32, i32
  }
  func.func @transform_7(%arg0: i32) -> (i32, i32) {
    %c0_i32 = arith.constant 0 : i32
    %c0_i32_0 = arith.constant 0 : i32
    %c0_i32_1 = arith.constant 0 : i32
    return %c0_i32, %c0_i32_0 : i32, i32
  }
  func.func @transform_8(%arg0: i32) -> (i32, i32) {
    %c0_i32 = arith.constant 0 : i32
    %c0_i32_0 = arith.constant 0 : i32
    %c0_i32_1 = arith.constant 0 : i32
    return %c0_i32, %c0_i32_0 : i32, i32
  }
  func.func @transform_9(%arg0: i32) -> (i32, i32) {
    %c0_i32 = arith.constant 0 : i32
    %c0_i32_0 = arith.constant 0 : i32
    %c0_i32_1 = arith.constant 0 : i32
    return %c0_i32, %c0_i32_0 : i32, i32
  }
  func.func @transform_10(%arg0: i32) -> (i32, i32) {
    %c0_i32 = arith.constant 0 : i32
    %c0_i32_0 = arith.constant 0 : i32
    %c0_i32_1 = arith.constant 0 : i32
    return %c0_i32, %c0_i32_0 : i32, i32
  }
  func.func @transform_11(%arg0: i32) -> (i32, i32) {
    %c0_i32 = arith.constant 0 : i32
    %c0_i32_0 = arith.constant 0 : i32
    %c0_i32_1 = arith.constant 0 : i32
    return %c0_i32, %c0_i32_0 : i32, i32
  }
  func.func @transform_12(%arg0: i32) -> (i32, i32) {
    %c0_i32 = arith.constant 0 : i32
    %c0_i32_0 = arith.constant 0 : i32
    %c0_i32_1 = arith.constant 0 : i32
    return %c0_i32, %c0_i32_0 : i32, i32
  }
  func.func @transform_13(%arg0: i32) -> (i32, i32) {
    %c0_i32 = arith.constant 0 : i32
    %c0_i32_0 = arith.constant 0 : i32
    %c0_i32_1 = arith.constant 0 : i32
    return %c0_i32, %c0_i32_0 : i32, i32
  }
  func.func @transform_14(%arg0: i32) -> (i32, i32) {
    %c0_i32 = arith.constant 0 : i32
    %c0_i32_0 = arith.constant 0 : i32
    %c0_i32_1 = arith.constant 0 : i32
    return %c0_i32, %c0_i32_0 : i32, i32
  }
  func.func @transform_15(%arg0: i32) -> (i32, i32) {
    %c0_i32 = arith.constant 0 : i32
    %c0_i32_0 = arith.constant 0 : i32
    %c0_i32_1 = arith.constant 0 : i32
    return %c0_i32, %c0_i32_0 : i32, i32
  }
  func.func @transform_16(%arg0: i32) -> (i32, i32) {
    %c0_i32 = arith.constant 0 : i32
    %c0_i32_0 = arith.constant 0 : i32
    %c0_i32_1 = arith.constant 0 : i32
    return %c0_i32, %c0_i32_0 : i32, i32
  }
  func.func @transform_17(%arg0: i32) -> (i32, i32) {
    %c0_i32 = arith.constant 0 : i32
    %c0_i32_0 = arith.constant 0 : i32
    %c0_i32_1 = arith.constant 0 : i32
    return %c0_i32, %c0_i32_0 : i32, i32
  }
  func.func @transform_18(%arg0: i32) -> (i32, i32) {
    %c0_i32 = arith.constant 0 : i32
    %c0_i32_0 = arith.constant 0 : i32
    %c0_i32_1 = arith.constant 0 : i32
    return %c0_i32, %c0_i32_0 : i32, i32
  }
  func.func @transform_19(%arg0: i32) -> (i32, i32) {
    %c0_i32 = arith.constant 0 : i32
    %c0_i32_0 = arith.constant 0 : i32
    %c0_i32_1 = arith.constant 0 : i32
    return %c0_i32, %c0_i32_0 : i32, i32
  }
  func.func @transform_20(%arg0: i32) -> (i32, i32) {
    %c0_i32 = arith.constant 0 : i32
    %c0_i32_0 = arith.constant 0 : i32
    %c0_i32_1 = arith.constant 0 : i32
    return %c0_i32, %c0_i32_0 : i32, i32
  }
  func.func @transform_21(%arg0: i32) -> (i32, i32) {
    %c0_i32 = arith.constant 0 : i32
    %c0_i32_0 = arith.constant 0 : i32
    %c0_i32_1 = arith.constant 0 : i32
    return %c0_i32, %c0_i32_0 : i32, i32
  }
  func.func @transform_22(%arg0: i32) -> (i32, i32) {
    %c0_i32 = arith.constant 0 : i32
    %c0_i32_0 = arith.constant 0 : i32
    %c0_i32_1 = arith.constant 0 : i32
    return %c0_i32, %c0_i32_0 : i32, i32
  }
  func.func @transform_23(%arg0: i32) -> (i32, i32) {
    %c0_i32 = arith.constant 0 : i32
    %c0_i32_0 = arith.constant 0 : i32
    %c0_i32_1 = arith.constant 0 : i32
    return %c0_i32, %c0_i32_0 : i32, i32
  }
  func.func @transform_24(%arg0: i32) -> (i32, i32) {
    %c0_i32 = arith.constant 0 : i32
    %c0_i32_0 = arith.constant 0 : i32
    %c0_i32_1 = arith.constant 0 : i32
    return %c0_i32, %c0_i32_0 : i32, i32
  }
  func.func @transform_25(%arg0: i32) -> (i32, i32) {
    %c0_i32 = arith.constant 0 : i32
    %c0_i32_0 = arith.constant 0 : i32
    %c0_i32_1 = arith.constant 0 : i32
    return %c0_i32, %c0_i32_0 : i32, i32
  }
  func.func @transform_26(%arg0: i32) -> (i32, i32) {
    %c0_i32 = arith.constant 0 : i32
    %c0_i32_0 = arith.constant 0 : i32
    return %arg0, %c0_i32 : i32, i32
  }
}

module attributes {stable_mosaic.version = 11 : i64} {
  func.func @vs_head_kernel(%arg0: i32, %arg1: memref<2x8x160xbf16, #tpu.memory_space<vmem>>, %arg2: memref<2x1x8xf32, #tpu.memory_space<vmem>>, %arg3: memref<160x32xbf16, #tpu.memory_space<vmem>>, %arg4: memref<1x32xf32, #tpu.memory_space<vmem>>, %arg5: memref<1x32xf32, #tpu.memory_space<vmem>>, %arg6: memref<1x32xf32, #tpu.memory_space<vmem>>, %arg7: memref<32x32xbf16, #tpu.memory_space<vmem>>, %arg8: memref<1x32xf32, #tpu.memory_space<vmem>>, %arg9: memref<32x32xbf16, #tpu.memory_space<vmem>>, %arg10: memref<1x32xf32, #tpu.memory_space<vmem>>, %arg11: memref<32x32xbf16, #tpu.memory_space<vmem>>, %arg12: memref<1x32xf32, #tpu.memory_space<vmem>>, %arg13: memref<32x32xbf16, #tpu.memory_space<vmem>>, %arg14: memref<1x32xf32, #tpu.memory_space<vmem>>, %arg15: memref<1x32xf32, #tpu.memory_space<vmem>>, %arg16: memref<1x32xf32, #tpu.memory_space<vmem>>, %arg17: memref<32x64xbf16, #tpu.memory_space<vmem>>, %arg18: memref<1x64xf32, #tpu.memory_space<vmem>>, %arg19: memref<64x32xbf16, #tpu.memory_space<vmem>>, %arg20: memref<1x32xf32, #tpu.memory_space<vmem>>, %arg21: memref<1x32xf32, #tpu.memory_space<vmem>>, %arg22: memref<1x32xf32, #tpu.memory_space<vmem>>, %arg23: memref<32x32xbf16, #tpu.memory_space<vmem>>, %arg24: memref<1x32xf32, #tpu.memory_space<vmem>>, %arg25: memref<32x1xbf16, #tpu.memory_space<vmem>>, %arg26: memref<1x1xf32, #tpu.memory_space<vmem>>, %arg27: memref<2x1xf32, #tpu.memory_space<vmem>>) attributes {dimension_semantics = [#tpu.dimension_semantics<parallel>], iteration_bounds = array<i64: 1>, scalar_prefetch = 0 : i64, scratch_operands = 0 : i64, tpu.core_type = #tpu.core_type<tc>, window_params = [{transform_indices = @transform_0, window_bounds = array<i64: 2, 8, 160>}, {transform_indices = @transform_1, window_bounds = array<i64: 2, 1, 8>}, {pipeline_mode = #tpu.pipeline_mode<synchronous>, transform_indices = @transform_2, window_bounds = array<i64: 160, 32>}, {pipeline_mode = #tpu.pipeline_mode<synchronous>, transform_indices = @transform_3, window_bounds = array<i64: 1, 32>}, {pipeline_mode = #tpu.pipeline_mode<synchronous>, transform_indices = @transform_4, window_bounds = array<i64: 1, 32>}, {pipeline_mode = #tpu.pipeline_mode<synchronous>, transform_indices = @transform_5, window_bounds = array<i64: 1, 32>}, {pipeline_mode = #tpu.pipeline_mode<synchronous>, transform_indices = @transform_6, window_bounds = array<i64: 32, 32>}, {pipeline_mode = #tpu.pipeline_mode<synchronous>, transform_indices = @transform_7, window_bounds = array<i64: 1, 32>}, {pipeline_mode = #tpu.pipeline_mode<synchronous>, transform_indices = @transform_8, window_bounds = array<i64: 32, 32>}, {pipeline_mode = #tpu.pipeline_mode<synchronous>, transform_indices = @transform_9, window_bounds = array<i64: 1, 32>}, {pipeline_mode = #tpu.pipeline_mode<synchronous>, transform_indices = @transform_10, window_bounds = array<i64: 32, 32>}, {pipeline_mode = #tpu.pipeline_mode<synchronous>, transform_indices = @transform_11, window_bounds = array<i64: 1, 32>}, {pipeline_mode = #tpu.pipeline_mode<synchronous>, transform_indices = @transform_12, window_bounds = array<i64: 32, 32>}, {pipeline_mode = #tpu.pipeline_mode<synchronous>, transform_indices = @transform_13, window_bounds = array<i64: 1, 32>}, {pipeline_mode = #tpu.pipeline_mode<synchronous>, transform_indices = @transform_14, window_bounds = array<i64: 1, 32>}, {pipeline_mode = #tpu.pipeline_mode<synchronous>, transform_indices = @transform_15, window_bounds = array<i64: 1, 32>}, {pipeline_mode = #tpu.pipeline_mode<synchronous>, transform_indices = @transform_16, window_bounds = array<i64: 32, 64>}, {pipeline_mode = #tpu.pipeline_mode<synchronous>, transform_indices = @transform_17, window_bounds = array<i64: 1, 64>}, {pipeline_mode = #tpu.pipeline_mode<synchronous>, transform_indices = @transform_18, window_bounds = array<i64: 64, 32>}, {pipeline_mode = #tpu.pipeline_mode<synchronous>, transform_indices = @transform_19, window_bounds = array<i64: 1, 32>}, {pipeline_mode = #tpu.pipeline_mode<synchronous>, transform_indices = @transform_20, window_bounds = array<i64: 1, 32>}, {pipeline_mode = #tpu.pipeline_mode<synchronous>, transform_indices = @transform_21, window_bounds = array<i64: 1, 32>}, {pipeline_mode = #tpu.pipeline_mode<synchronous>, transform_indices = @transform_22, window_bounds = array<i64: 32, 32>}, {pipeline_mode = #tpu.pipeline_mode<synchronous>, transform_indices = @transform_23, window_bounds = array<i64: 1, 32>}, {pipeline_mode = #tpu.pipeline_mode<synchronous>, transform_indices = @transform_24, window_bounds = array<i64: 32, 1>}, {pipeline_mode = #tpu.pipeline_mode<synchronous>, transform_indices = @transform_25, window_bounds = array<i64: 1, 1>}, {transform_indices = @transform_26, window_bounds = array<i64: 2, 1>}]} {
    %c0 = arith.constant 0 : index
    %c0_0 = arith.constant 0 : index
    %c0_1 = arith.constant 0 : index
    %0 = vector.load %arg1[%c0, %c0_0, %c0_1] : memref<2x8x160xbf16, #tpu.memory_space<vmem>>, vector<2x8x160xbf16>
    %1 = vector.shape_cast %0 : vector<2x8x160xbf16> to vector<16x160xbf16>
    %c0_2 = arith.constant 0 : index
    %c0_3 = arith.constant 0 : index
    %c0_4 = arith.constant 0 : index
    %2 = vector.load %arg2[%c0_2, %c0_3, %c0_4] : memref<2x1x8xf32, #tpu.memory_space<vmem>>, vector<2x1x8xf32>
    %c0_5 = arith.constant 0 : index
    %c0_6 = arith.constant 0 : index
    %3 = vector.load %arg3[%c0_5, %c0_6] : memref<160x32xbf16, #tpu.memory_space<vmem>>, vector<160x32xbf16>
    %cst = arith.constant dense<0.000000e+00> : vector<16x32xf32>
    %4 = tpu.matmul %1, %3, %cst {dimension_numbers = #tpu.dot_dimension_numbers<[1], [0], [0], [1], [0, 0, 1, 1], [], []>} : vector<16x160xbf16>, vector<160x32xbf16>, vector<16x32xf32> -> vector<16x32xf32>
    %c0_7 = arith.constant 0 : index
    %c0_8 = arith.constant 0 : index
    %5 = vector.load %arg4[%c0_7, %c0_8] : memref<1x32xf32, #tpu.memory_space<vmem>>, vector<1x32xf32>
    %6 = vector.broadcast %5 : vector<1x32xf32> to vector<16x32xf32>
    %7 = arith.addf %4, %6 : vector<16x32xf32>
    %cst_9 = arith.constant 0.000000e+00 : f32
    %8 = vector.broadcast %cst_9 : f32 to vector<16x32xf32>
    %9 = arith.maximumf %7, %8 : vector<16x32xf32>
    %c0_10 = arith.constant 0 : index
    %c0_11 = arith.constant 0 : index
    %10 = vector.load %arg5[%c0_10, %c0_11] : memref<1x32xf32, #tpu.memory_space<vmem>>, vector<1x32xf32>
    %c0_12 = arith.constant 0 : index
    %c0_13 = arith.constant 0 : index
    %11 = vector.load %arg6[%c0_12, %c0_13] : memref<1x32xf32, #tpu.memory_space<vmem>>, vector<1x32xf32>
    %cst_14 = arith.constant dense<0.000000e+00> : vector<16xf32>
    %12 = vector.multi_reduction <add>, %9, %cst_14 [1] : vector<16x32xf32> to vector<16xf32>
    %13 = vector.shape_cast %12 : vector<16xf32> to vector<16x1xf32>
    %cst_15 = arith.constant 3.200000e+01 : f32
    %14 = vector.broadcast %cst_15 : f32 to vector<16x1xf32>
    %15 = arith.divf %13, %14 : vector<16x1xf32>
    %16 = vector.broadcast %15 : vector<16x1xf32> to vector<16x32xf32>
    %17 = arith.subf %9, %16 : vector<16x32xf32>
    %18 = arith.mulf %17, %17 : vector<16x32xf32>
    %cst_16 = arith.constant dense<0.000000e+00> : vector<16xf32>
    %19 = vector.multi_reduction <add>, %18, %cst_16 [1] : vector<16x32xf32> to vector<16xf32>
    %20 = vector.shape_cast %19 : vector<16xf32> to vector<16x1xf32>
    %cst_17 = arith.constant 3.200000e+01 : f32
    %21 = vector.broadcast %cst_17 : f32 to vector<16x1xf32>
    %22 = arith.divf %20, %21 : vector<16x1xf32>
    %23 = vector.broadcast %15 : vector<16x1xf32> to vector<16x32xf32>
    %24 = arith.subf %9, %23 : vector<16x32xf32>
    %cst_18 = arith.constant 9.99999974E-6 : f32
    %25 = vector.broadcast %cst_18 : f32 to vector<16x1xf32>
    %26 = arith.addf %22, %25 : vector<16x1xf32>
    %27 = math.rsqrt %26 : vector<16x1xf32>
    %28 = vector.broadcast %27 : vector<16x1xf32> to vector<16x32xf32>
    %29 = arith.mulf %24, %28 : vector<16x32xf32>
    %30 = vector.broadcast %10 : vector<1x32xf32> to vector<16x32xf32>
    %31 = arith.mulf %29, %30 : vector<16x32xf32>
    %32 = vector.broadcast %11 : vector<1x32xf32> to vector<16x32xf32>
    %33 = arith.addf %31, %32 : vector<16x32xf32>
    %34 = arith.truncf %33 : vector<16x32xf32> to vector<16x32xbf16>
    %c0_19 = arith.constant 0 : index
    %c0_20 = arith.constant 0 : index
    %35 = vector.load %arg7[%c0_19, %c0_20] : memref<32x32xbf16, #tpu.memory_space<vmem>>, vector<32x32xbf16>
    %cst_21 = arith.constant dense<0.000000e+00> : vector<16x32xf32>
    %36 = tpu.matmul %34, %35, %cst_21 {dimension_numbers = #tpu.dot_dimension_numbers<[1], [0], [0], [1], [0, 0, 1, 1], [], []>} : vector<16x32xbf16>, vector<32x32xbf16>, vector<16x32xf32> -> vector<16x32xf32>
    %c0_22 = arith.constant 0 : index
    %c0_23 = arith.constant 0 : index
    %37 = vector.load %arg8[%c0_22, %c0_23] : memref<1x32xf32, #tpu.memory_space<vmem>>, vector<1x32xf32>
    %38 = vector.broadcast %37 : vector<1x32xf32> to vector<16x32xf32>
    %39 = arith.addf %36, %38 : vector<16x32xf32>
    %c0_24 = arith.constant 0 : index
    %c0_25 = arith.constant 0 : index
    %40 = vector.load %arg9[%c0_24, %c0_25] : memref<32x32xbf16, #tpu.memory_space<vmem>>, vector<32x32xbf16>
    %cst_26 = arith.constant dense<0.000000e+00> : vector<16x32xf32>
    %41 = tpu.matmul %34, %40, %cst_26 {dimension_numbers = #tpu.dot_dimension_numbers<[1], [0], [0], [1], [0, 0, 1, 1], [], []>} : vector<16x32xbf16>, vector<32x32xbf16>, vector<16x32xf32> -> vector<16x32xf32>
    %c0_27 = arith.constant 0 : index
    %c0_28 = arith.constant 0 : index
    %42 = vector.load %arg10[%c0_27, %c0_28] : memref<1x32xf32, #tpu.memory_space<vmem>>, vector<1x32xf32>
    %43 = vector.broadcast %42 : vector<1x32xf32> to vector<16x32xf32>
    %44 = arith.addf %41, %43 : vector<16x32xf32>
    %c0_29 = arith.constant 0 : index
    %c0_30 = arith.constant 0 : index
    %45 = vector.load %arg11[%c0_29, %c0_30] : memref<32x32xbf16, #tpu.memory_space<vmem>>, vector<32x32xbf16>
    %cst_31 = arith.constant dense<0.000000e+00> : vector<16x32xf32>
    %46 = tpu.matmul %34, %45, %cst_31 {dimension_numbers = #tpu.dot_dimension_numbers<[1], [0], [0], [1], [0, 0, 1, 1], [], []>} : vector<16x32xbf16>, vector<32x32xbf16>, vector<16x32xf32> -> vector<16x32xf32>
    %c0_32 = arith.constant 0 : index
    %c0_33 = arith.constant 0 : index
    %47 = vector.load %arg12[%c0_32, %c0_33] : memref<1x32xf32, #tpu.memory_space<vmem>>, vector<1x32xf32>
    %48 = vector.broadcast %47 : vector<1x32xf32> to vector<16x32xf32>
    %49 = arith.addf %46, %48 : vector<16x32xf32>
    %50 = arith.truncf %39 : vector<16x32xf32> to vector<16x32xbf16>
    %51 = vector.shape_cast %50 : vector<16x32xbf16> to vector<2x8x32xbf16>
    %52 = vector.extract_strided_slice %51 {offsets = [0, 0, 0], sizes = [2, 8, 8], strides = [1, 1, 1]} : vector<2x8x32xbf16> to vector<2x8x8xbf16>
    %53 = vector.extract_strided_slice %51 {offsets = [0, 0, 8], sizes = [2, 8, 8], strides = [1, 1, 1]} : vector<2x8x32xbf16> to vector<2x8x8xbf16>
    %54 = vector.extract_strided_slice %51 {offsets = [0, 0, 16], sizes = [2, 8, 8], strides = [1, 1, 1]} : vector<2x8x32xbf16> to vector<2x8x8xbf16>
    %55 = vector.extract_strided_slice %51 {offsets = [0, 0, 24], sizes = [2, 8, 8], strides = [1, 1, 1]} : vector<2x8x32xbf16> to vector<2x8x8xbf16>
    %56 = tpu.concatenate %52, %53, %54, %55 in 0 : vector<2x8x8xbf16>, vector<2x8x8xbf16>, vector<2x8x8xbf16>, vector<2x8x8xbf16> -> vector<8x8x8xbf16>
    %57 = arith.truncf %44 : vector<16x32xf32> to vector<16x32xbf16>
    %58 = vector.shape_cast %57 : vector<16x32xbf16> to vector<2x8x32xbf16>
    %59 = vector.extract_strided_slice %58 {offsets = [0, 0, 0], sizes = [2, 8, 8], strides = [1, 1, 1]} : vector<2x8x32xbf16> to vector<2x8x8xbf16>
    %60 = vector.extract_strided_slice %58 {offsets = [0, 0, 8], sizes = [2, 8, 8], strides = [1, 1, 1]} : vector<2x8x32xbf16> to vector<2x8x8xbf16>
    %61 = vector.extract_strided_slice %58 {offsets = [0, 0, 16], sizes = [2, 8, 8], strides = [1, 1, 1]} : vector<2x8x32xbf16> to vector<2x8x8xbf16>
    %62 = vector.extract_strided_slice %58 {offsets = [0, 0, 24], sizes = [2, 8, 8], strides = [1, 1, 1]} : vector<2x8x32xbf16> to vector<2x8x8xbf16>
    %63 = tpu.concatenate %59, %60, %61, %62 in 0 : vector<2x8x8xbf16>, vector<2x8x8xbf16>, vector<2x8x8xbf16>, vector<2x8x8xbf16> -> vector<8x8x8xbf16>
    %64 = arith.truncf %49 : vector<16x32xf32> to vector<16x32xbf16>
    %65 = vector.shape_cast %64 : vector<16x32xbf16> to vector<2x8x32xbf16>
    %66 = vector.extract_strided_slice %65 {offsets = [0, 0, 0], sizes = [2, 8, 8], strides = [1, 1, 1]} : vector<2x8x32xbf16> to vector<2x8x8xbf16>
    %67 = vector.extract_strided_slice %65 {offsets = [0, 0, 8], sizes = [2, 8, 8], strides = [1, 1, 1]} : vector<2x8x32xbf16> to vector<2x8x8xbf16>
    %68 = vector.extract_strided_slice %65 {offsets = [0, 0, 16], sizes = [2, 8, 8], strides = [1, 1, 1]} : vector<2x8x32xbf16> to vector<2x8x8xbf16>
    %69 = vector.extract_strided_slice %65 {offsets = [0, 0, 24], sizes = [2, 8, 8], strides = [1, 1, 1]} : vector<2x8x32xbf16> to vector<2x8x8xbf16>
    %70 = tpu.concatenate %66, %67, %68, %69 in 0 : vector<2x8x8xbf16>, vector<2x8x8xbf16>, vector<2x8x8xbf16>, vector<2x8x8xbf16> -> vector<8x8x8xbf16>
    %cst_34 = arith.constant 1.000000e+00 : f32
    %71 = vector.broadcast %cst_34 : f32 to vector<2x1x8xf32>
    %72 = arith.subf %71, %2 : vector<2x1x8xf32>
    %cst_35 = arith.constant -1.000000e+09 : f32
    %73 = vector.broadcast %cst_35 : f32 to vector<2x1x8xf32>
    %74 = arith.mulf %72, %73 : vector<2x1x8xf32>
    "tpu.trace_start"() <{level = 10 : i32, message = "gqd,gkd->gqk"}> : () -> ()
    %cst_36 = arith.constant dense<0.000000e+00> : vector<8x8x8xf32>
    %75 = tpu.matmul %56, %63, %cst_36 {dimension_numbers = #tpu.dot_dimension_numbers<[2], [2], [1], [1], [0, 0, 0, 1, 1, 1], [0], [0]>} : vector<8x8x8xbf16>, vector<8x8x8xbf16>, vector<8x8x8xf32> -> vector<8x8x8xf32>
    "tpu.trace_stop"() : () -> ()
    %cst_37 = arith.constant 0.353553385 : f32
    %76 = vector.broadcast %cst_37 : f32 to vector<8x8x8xf32>
    %77 = arith.mulf %75, %76 : vector<8x8x8xf32>
    %78 = vector.shape_cast %77 : vector<8x8x8xf32> to vector<4x2x8x8xf32>
    %79 = vector.shape_cast %74 : vector<2x1x8xf32> to vector<1x2x1x8xf32>
    %80 = vector.broadcast %79 : vector<1x2x1x8xf32> to vector<4x2x8x8xf32>
    %81 = arith.addf %78, %80 : vector<4x2x8x8xf32>
    %82 = vector.shape_cast %81 : vector<4x2x8x8xf32> to vector<8x8x8xf32>
    %cst_38 = arith.constant dense<0xFF800000> : vector<8x8xf32>
    %83 = vector.multi_reduction <maximumf>, %82, %cst_38 [2] : vector<8x8x8xf32> to vector<8x8xf32>
    %84 = vector.shape_cast %83 : vector<8x8xf32> to vector<8x8x1xf32>
    %85 = vector.broadcast %84 : vector<8x8x1xf32> to vector<8x8x8xf32>
    %86 = arith.subf %82, %85 : vector<8x8x8xf32>
    %87 = math.exp %86 : vector<8x8x8xf32>
    %cst_39 = arith.constant dense<0.000000e+00> : vector<8x8xf32>
    %88 = vector.multi_reduction <add>, %87, %cst_39 [2] : vector<8x8x8xf32> to vector<8x8xf32>
    %89 = vector.shape_cast %88 : vector<8x8xf32> to vector<8x8x1xf32>
    %90 = tpu.reciprocal %89 {approx = true} : vector<8x8x1xf32> -> vector<8x8x1xf32>
    %91 = vector.broadcast %90 : vector<8x8x1xf32> to vector<8x8x8xf32>
    %92 = arith.mulf %87, %91 : vector<8x8x8xf32>
    %93 = arith.truncf %92 : vector<8x8x8xf32> to vector<8x8x8xbf16>
    "tpu.trace_start"() <{level = 10 : i32, message = "gqk,gkd->gqd"}> : () -> ()
    %cst_40 = arith.constant dense<0.000000e+00> : vector<8x8x8xf32>
    %94 = tpu.matmul %93, %70, %cst_40 {dimension_numbers = #tpu.dot_dimension_numbers<[2], [1], [1], [2], [0, 0, 0, 1, 1, 2], [0], [0]>} : vector<8x8x8xbf16>, vector<8x8x8xbf16>, vector<8x8x8xf32> -> vector<8x8x8xf32>
    "tpu.trace_stop"() : () -> ()
    %95 = vector.extract_strided_slice %94 {offsets = [0, 0, 0], sizes = [2, 8, 8], strides = [1, 1, 1]} : vector<8x8x8xf32> to vector<2x8x8xf32>
    %96 = vector.extract_strided_slice %94 {offsets = [2, 0, 0], sizes = [2, 8, 8], strides = [1, 1, 1]} : vector<8x8x8xf32> to vector<2x8x8xf32>
    %97 = vector.extract_strided_slice %94 {offsets = [4, 0, 0], sizes = [2, 8, 8], strides = [1, 1, 1]} : vector<8x8x8xf32> to vector<2x8x8xf32>
    %98 = vector.extract_strided_slice %94 {offsets = [6, 0, 0], sizes = [2, 8, 8], strides = [1, 1, 1]} : vector<8x8x8xf32> to vector<2x8x8xf32>
    %99 = tpu.concatenate %95, %96, %97, %98 in 2 : vector<2x8x8xf32>, vector<2x8x8xf32>, vector<2x8x8xf32>, vector<2x8x8xf32> -> vector<2x8x32xf32>
    %100 = vector.shape_cast %99 : vector<2x8x32xf32> to vector<16x32xf32>
    %101 = arith.truncf %100 : vector<16x32xf32> to vector<16x32xbf16>
    %c0_41 = arith.constant 0 : index
    %c0_42 = arith.constant 0 : index
    %102 = vector.load %arg13[%c0_41, %c0_42] : memref<32x32xbf16, #tpu.memory_space<vmem>>, vector<32x32xbf16>
    %cst_43 = arith.constant dense<0.000000e+00> : vector<16x32xf32>
    %103 = tpu.matmul %101, %102, %cst_43 {dimension_numbers = #tpu.dot_dimension_numbers<[1], [0], [0], [1], [0, 0, 1, 1], [], []>} : vector<16x32xbf16>, vector<32x32xbf16>, vector<16x32xf32> -> vector<16x32xf32>
    %c0_44 = arith.constant 0 : index
    %c0_45 = arith.constant 0 : index
    %104 = vector.load %arg14[%c0_44, %c0_45] : memref<1x32xf32, #tpu.memory_space<vmem>>, vector<1x32xf32>
    %105 = vector.broadcast %104 : vector<1x32xf32> to vector<16x32xf32>
    %106 = arith.addf %103, %105 : vector<16x32xf32>
    %107 = arith.addf %33, %106 : vector<16x32xf32>
    %c0_46 = arith.constant 0 : index
    %c0_47 = arith.constant 0 : index
    %108 = vector.load %arg15[%c0_46, %c0_47] : memref<1x32xf32, #tpu.memory_space<vmem>>, vector<1x32xf32>
    %c0_48 = arith.constant 0 : index
    %c0_49 = arith.constant 0 : index
    %109 = vector.load %arg16[%c0_48, %c0_49] : memref<1x32xf32, #tpu.memory_space<vmem>>, vector<1x32xf32>
    %cst_50 = arith.constant dense<0.000000e+00> : vector<16xf32>
    %110 = vector.multi_reduction <add>, %107, %cst_50 [1] : vector<16x32xf32> to vector<16xf32>
    %111 = vector.shape_cast %110 : vector<16xf32> to vector<16x1xf32>
    %cst_51 = arith.constant 3.200000e+01 : f32
    %112 = vector.broadcast %cst_51 : f32 to vector<16x1xf32>
    %113 = arith.divf %111, %112 : vector<16x1xf32>
    %114 = vector.broadcast %113 : vector<16x1xf32> to vector<16x32xf32>
    %115 = arith.subf %107, %114 : vector<16x32xf32>
    %116 = arith.mulf %115, %115 : vector<16x32xf32>
    %cst_52 = arith.constant dense<0.000000e+00> : vector<16xf32>
    %117 = vector.multi_reduction <add>, %116, %cst_52 [1] : vector<16x32xf32> to vector<16xf32>
    %118 = vector.shape_cast %117 : vector<16xf32> to vector<16x1xf32>
    %cst_53 = arith.constant 3.200000e+01 : f32
    %119 = vector.broadcast %cst_53 : f32 to vector<16x1xf32>
    %120 = arith.divf %118, %119 : vector<16x1xf32>
    %121 = vector.broadcast %113 : vector<16x1xf32> to vector<16x32xf32>
    %122 = arith.subf %107, %121 : vector<16x32xf32>
    %cst_54 = arith.constant 9.99999974E-6 : f32
    %123 = vector.broadcast %cst_54 : f32 to vector<16x1xf32>
    %124 = arith.addf %120, %123 : vector<16x1xf32>
    %125 = math.rsqrt %124 : vector<16x1xf32>
    %126 = vector.broadcast %125 : vector<16x1xf32> to vector<16x32xf32>
    %127 = arith.mulf %122, %126 : vector<16x32xf32>
    %128 = vector.broadcast %108 : vector<1x32xf32> to vector<16x32xf32>
    %129 = arith.mulf %127, %128 : vector<16x32xf32>
    %130 = vector.broadcast %109 : vector<1x32xf32> to vector<16x32xf32>
    %131 = arith.addf %129, %130 : vector<16x32xf32>
    %132 = arith.truncf %131 : vector<16x32xf32> to vector<16x32xbf16>
    %c0_55 = arith.constant 0 : index
    %c0_56 = arith.constant 0 : index
    %133 = vector.load %arg17[%c0_55, %c0_56] : memref<32x64xbf16, #tpu.memory_space<vmem>>, vector<32x64xbf16>
    %cst_57 = arith.constant dense<0.000000e+00> : vector<16x64xf32>
    %134 = tpu.matmul %132, %133, %cst_57 {dimension_numbers = #tpu.dot_dimension_numbers<[1], [0], [0], [1], [0, 0, 1, 1], [], []>} : vector<16x32xbf16>, vector<32x64xbf16>, vector<16x64xf32> -> vector<16x64xf32>
    %c0_58 = arith.constant 0 : index
    %c0_59 = arith.constant 0 : index
    %135 = vector.load %arg18[%c0_58, %c0_59] : memref<1x64xf32, #tpu.memory_space<vmem>>, vector<1x64xf32>
    %136 = vector.broadcast %135 : vector<1x64xf32> to vector<16x64xf32>
    %137 = arith.addf %134, %136 : vector<16x64xf32>
    %cst_60 = arith.constant 5.000000e-01 : f32
    %138 = vector.broadcast %cst_60 : f32 to vector<16x64xf32>
    %139 = arith.mulf %138, %137 : vector<16x64xf32>
    %cst_61 = arith.constant 4.471500e-02 : f32
    %140 = vector.broadcast %cst_61 : f32 to vector<16x64xf32>
    %141 = arith.mulf %140, %137 : vector<16x64xf32>
    %142 = arith.mulf %141, %137 : vector<16x64xf32>
    %143 = arith.mulf %142, %137 : vector<16x64xf32>
    %144 = arith.addf %137, %143 : vector<16x64xf32>
    %cst_62 = arith.constant 0.797884583 : f32
    %145 = vector.broadcast %cst_62 : f32 to vector<16x64xf32>
    %146 = arith.mulf %145, %144 : vector<16x64xf32>
    %147 = math.tanh %146 : vector<16x64xf32>
    %cst_63 = arith.constant 1.000000e+00 : f32
    %148 = vector.broadcast %cst_63 : f32 to vector<16x64xf32>
    %149 = arith.addf %148, %147 : vector<16x64xf32>
    %150 = arith.mulf %139, %149 : vector<16x64xf32>
    %151 = arith.truncf %150 : vector<16x64xf32> to vector<16x64xbf16>
    %c0_64 = arith.constant 0 : index
    %c0_65 = arith.constant 0 : index
    %152 = vector.load %arg19[%c0_64, %c0_65] : memref<64x32xbf16, #tpu.memory_space<vmem>>, vector<64x32xbf16>
    %cst_66 = arith.constant dense<0.000000e+00> : vector<16x32xf32>
    %153 = tpu.matmul %151, %152, %cst_66 {dimension_numbers = #tpu.dot_dimension_numbers<[1], [0], [0], [1], [0, 0, 1, 1], [], []>} : vector<16x64xbf16>, vector<64x32xbf16>, vector<16x32xf32> -> vector<16x32xf32>
    %c0_67 = arith.constant 0 : index
    %c0_68 = arith.constant 0 : index
    %154 = vector.load %arg20[%c0_67, %c0_68] : memref<1x32xf32, #tpu.memory_space<vmem>>, vector<1x32xf32>
    %155 = vector.broadcast %154 : vector<1x32xf32> to vector<16x32xf32>
    %156 = arith.addf %153, %155 : vector<16x32xf32>
    %157 = arith.addf %131, %156 : vector<16x32xf32>
    %c0_69 = arith.constant 0 : index
    %c0_70 = arith.constant 0 : index
    %158 = vector.load %arg21[%c0_69, %c0_70] : memref<1x32xf32, #tpu.memory_space<vmem>>, vector<1x32xf32>
    %c0_71 = arith.constant 0 : index
    %c0_72 = arith.constant 0 : index
    %159 = vector.load %arg22[%c0_71, %c0_72] : memref<1x32xf32, #tpu.memory_space<vmem>>, vector<1x32xf32>
    %cst_73 = arith.constant dense<0.000000e+00> : vector<16xf32>
    %160 = vector.multi_reduction <add>, %157, %cst_73 [1] : vector<16x32xf32> to vector<16xf32>
    %161 = vector.shape_cast %160 : vector<16xf32> to vector<16x1xf32>
    %cst_74 = arith.constant 3.200000e+01 : f32
    %162 = vector.broadcast %cst_74 : f32 to vector<16x1xf32>
    %163 = arith.divf %161, %162 : vector<16x1xf32>
    %164 = vector.broadcast %163 : vector<16x1xf32> to vector<16x32xf32>
    %165 = arith.subf %157, %164 : vector<16x32xf32>
    %166 = arith.mulf %165, %165 : vector<16x32xf32>
    %cst_75 = arith.constant dense<0.000000e+00> : vector<16xf32>
    %167 = vector.multi_reduction <add>, %166, %cst_75 [1] : vector<16x32xf32> to vector<16xf32>
    %168 = vector.shape_cast %167 : vector<16xf32> to vector<16x1xf32>
    %cst_76 = arith.constant 3.200000e+01 : f32
    %169 = vector.broadcast %cst_76 : f32 to vector<16x1xf32>
    %170 = arith.divf %168, %169 : vector<16x1xf32>
    %171 = vector.broadcast %163 : vector<16x1xf32> to vector<16x32xf32>
    %172 = arith.subf %157, %171 : vector<16x32xf32>
    %cst_77 = arith.constant 9.99999974E-6 : f32
    %173 = vector.broadcast %cst_77 : f32 to vector<16x1xf32>
    %174 = arith.addf %170, %173 : vector<16x1xf32>
    %175 = math.rsqrt %174 : vector<16x1xf32>
    %176 = vector.broadcast %175 : vector<16x1xf32> to vector<16x32xf32>
    %177 = arith.mulf %172, %176 : vector<16x32xf32>
    %178 = vector.broadcast %158 : vector<1x32xf32> to vector<16x32xf32>
    %179 = arith.mulf %177, %178 : vector<16x32xf32>
    %180 = vector.broadcast %159 : vector<1x32xf32> to vector<16x32xf32>
    %181 = arith.addf %179, %180 : vector<16x32xf32>
    %182 = vector.shape_cast %181 : vector<16x32xf32> to vector<2x8x32xf32>
    %cst_78 = arith.constant dense<0xFF800000> : vector<2x32xf32>
    %183 = vector.multi_reduction <maximumf>, %182, %cst_78 [1] : vector<2x8x32xf32> to vector<2x32xf32>
    %184 = arith.truncf %183 : vector<2x32xf32> to vector<2x32xbf16>
    %c0_79 = arith.constant 0 : index
    %c0_80 = arith.constant 0 : index
    %185 = vector.load %arg23[%c0_79, %c0_80] : memref<32x32xbf16, #tpu.memory_space<vmem>>, vector<32x32xbf16>
    %cst_81 = arith.constant dense<0.000000e+00> : vector<2x32xf32>
    %186 = tpu.matmul %184, %185, %cst_81 {dimension_numbers = #tpu.dot_dimension_numbers<[1], [0], [0], [1], [0, 0, 1, 1], [], []>} : vector<2x32xbf16>, vector<32x32xbf16>, vector<2x32xf32> -> vector<2x32xf32>
    %c0_82 = arith.constant 0 : index
    %c0_83 = arith.constant 0 : index
    %187 = vector.load %arg24[%c0_82, %c0_83] : memref<1x32xf32, #tpu.memory_space<vmem>>, vector<1x32xf32>
    %188 = vector.broadcast %187 : vector<1x32xf32> to vector<2x32xf32>
    %189 = arith.addf %186, %188 : vector<2x32xf32>
    %cst_84 = arith.constant 0.000000e+00 : f32
    %190 = vector.broadcast %cst_84 : f32 to vector<2x32xf32>
    %191 = arith.maximumf %189, %190 : vector<2x32xf32>
    %192 = arith.truncf %191 : vector<2x32xf32> to vector<2x32xbf16>
    %c0_85 = arith.constant 0 : index
    %c0_86 = arith.constant 0 : index
    %193 = vector.load %arg25[%c0_85, %c0_86] : memref<32x1xbf16, #tpu.memory_space<vmem>>, vector<32x1xbf16>
    %cst_87 = arith.constant dense<0.000000e+00> : vector<2x1xf32>
    %194 = tpu.matmul %192, %193, %cst_87 {dimension_numbers = #tpu.dot_dimension_numbers<[1], [0], [0], [1], [0, 0, 1, 1], [], []>} : vector<2x32xbf16>, vector<32x1xbf16>, vector<2x1xf32> -> vector<2x1xf32>
    %c0_88 = arith.constant 0 : index
    %c0_89 = arith.constant 0 : index
    %195 = vector.load %arg26[%c0_88, %c0_89] : memref<1x1xf32, #tpu.memory_space<vmem>>, vector<1x1xf32>
    %196 = vector.broadcast %195 : vector<1x1xf32> to vector<2x1xf32>
    %197 = arith.addf %194, %196 : vector<2x1xf32>
    %c0_90 = arith.constant 0 : index
    %c0_91 = arith.constant 0 : index
    %198 = vector.load %arg27[%c0_90, %c0_91] : memref<2x1xf32, #tpu.memory_space<vmem>>, vector<2x1xf32>
    tpu.vector_store %arg27[%c0_90, %c0_91], %197 {strides = array<i32>} : memref<2x1xf32, #tpu.memory_space<vmem>>, vector<2x1xf32>,
    return
  }
  func.func @transform_0(%arg0: i32) -> (i32, i32, i32) {
    %c0_i32 = arith.constant 0 : i32
    %c0_i32_0 = arith.constant 0 : i32
    %c0_i32_1 = arith.constant 0 : i32
    return %arg0, %c0_i32, %c0_i32_0 : i32, i32, i32
  }
  func.func @transform_1(%arg0: i32) -> (i32, i32, i32) {
    %c0_i32 = arith.constant 0 : i32
    %c0_i32_0 = arith.constant 0 : i32
    %c0_i32_1 = arith.constant 0 : i32
    return %arg0, %c0_i32, %c0_i32_0 : i32, i32, i32
  }
  func.func @transform_2(%arg0: i32) -> (i32, i32) {
    %c0_i32 = arith.constant 0 : i32
    %c0_i32_0 = arith.constant 0 : i32
    %c0_i32_1 = arith.constant 0 : i32
    return %c0_i32, %c0_i32_0 : i32, i32
  }
  func.func @transform_3(%arg0: i32) -> (i32, i32) {
    %c0_i32 = arith.constant 0 : i32
    %c0_i32_0 = arith.constant 0 : i32
    %c0_i32_1 = arith.constant 0 : i32
    return %c0_i32, %c0_i32_0 : i32, i32
  }
  func.func @transform_4(%arg0: i32) -> (i32, i32) {
    %c0_i32 = arith.constant 0 : i32
    %c0_i32_0 = arith.constant 0 : i32
    %c0_i32_1 = arith.constant 0 : i32
    return %c0_i32, %c0_i32_0 : i32, i32
  }
  func.func @transform_5(%arg0: i32) -> (i32, i32) {
    %c0_i32 = arith.constant 0 : i32
    %c0_i32_0 = arith.constant 0 : i32
    %c0_i32_1 = arith.constant 0 : i32
    return %c0_i32, %c0_i32_0 : i32, i32
  }
  func.func @transform_6(%arg0: i32) -> (i32, i32) {
    %c0_i32 = arith.constant 0 : i32
    %c0_i32_0 = arith.constant 0 : i32
    %c0_i32_1 = arith.constant 0 : i32
    return %c0_i32, %c0_i32_0 : i32, i32
  }
  func.func @transform_7(%arg0: i32) -> (i32, i32) {
    %c0_i32 = arith.constant 0 : i32
    %c0_i32_0 = arith.constant 0 : i32
    %c0_i32_1 = arith.constant 0 : i32
    return %c0_i32, %c0_i32_0 : i32, i32
  }
  func.func @transform_8(%arg0: i32) -> (i32, i32) {
    %c0_i32 = arith.constant 0 : i32
    %c0_i32_0 = arith.constant 0 : i32
    %c0_i32_1 = arith.constant 0 : i32
    return %c0_i32, %c0_i32_0 : i32, i32
  }
  func.func @transform_9(%arg0: i32) -> (i32, i32) {
    %c0_i32 = arith.constant 0 : i32
    %c0_i32_0 = arith.constant 0 : i32
    %c0_i32_1 = arith.constant 0 : i32
    return %c0_i32, %c0_i32_0 : i32, i32
  }
  func.func @transform_10(%arg0: i32) -> (i32, i32) {
    %c0_i32 = arith.constant 0 : i32
    %c0_i32_0 = arith.constant 0 : i32
    %c0_i32_1 = arith.constant 0 : i32
    return %c0_i32, %c0_i32_0 : i32, i32
  }
  func.func @transform_11(%arg0: i32) -> (i32, i32) {
    %c0_i32 = arith.constant 0 : i32
    %c0_i32_0 = arith.constant 0 : i32
    %c0_i32_1 = arith.constant 0 : i32
    return %c0_i32, %c0_i32_0 : i32, i32
  }
  func.func @transform_12(%arg0: i32) -> (i32, i32) {
    %c0_i32 = arith.constant 0 : i32
    %c0_i32_0 = arith.constant 0 : i32
    %c0_i32_1 = arith.constant 0 : i32
    return %c0_i32, %c0_i32_0 : i32, i32
  }
  func.func @transform_13(%arg0: i32) -> (i32, i32) {
    %c0_i32 = arith.constant 0 : i32
    %c0_i32_0 = arith.constant 0 : i32
    %c0_i32_1 = arith.constant 0 : i32
    return %c0_i32, %c0_i32_0 : i32, i32
  }
  func.func @transform_14(%arg0: i32) -> (i32, i32) {
    %c0_i32 = arith.constant 0 : i32
    %c0_i32_0 = arith.constant 0 : i32
    %c0_i32_1 = arith.constant 0 : i32
    return %c0_i32, %c0_i32_0 : i32, i32
  }
  func.func @transform_15(%arg0: i32) -> (i32, i32) {
    %c0_i32 = arith.constant 0 : i32
    %c0_i32_0 = arith.constant 0 : i32
    %c0_i32_1 = arith.constant 0 : i32
    return %c0_i32, %c0_i32_0 : i32, i32
  }
  func.func @transform_16(%arg0: i32) -> (i32, i32) {
    %c0_i32 = arith.constant 0 : i32
    %c0_i32_0 = arith.constant 0 : i32
    %c0_i32_1 = arith.constant 0 : i32
    return %c0_i32, %c0_i32_0 : i32, i32
  }
  func.func @transform_17(%arg0: i32) -> (i32, i32) {
    %c0_i32 = arith.constant 0 : i32
    %c0_i32_0 = arith.constant 0 : i32
    %c0_i32_1 = arith.constant 0 : i32
    return %c0_i32, %c0_i32_0 : i32, i32
  }
  func.func @transform_18(%arg0: i32) -> (i32, i32) {
    %c0_i32 = arith.constant 0 : i32
    %c0_i32_0 = arith.constant 0 : i32
    %c0_i32_1 = arith.constant 0 : i32
    return %c0_i32, %c0_i32_0 : i32, i32
  }
  func.func @transform_19(%arg0: i32) -> (i32, i32) {
    %c0_i32 = arith.constant 0 : i32
    %c0_i32_0 = arith.constant 0 : i32
    %c0_i32_1 = arith.constant 0 : i32
    return %c0_i32, %c0_i32_0 : i32, i32
  }
  func.func @transform_20(%arg0: i32) -> (i32, i32) {
    %c0_i32 = arith.constant 0 : i32
    %c0_i32_0 = arith.constant 0 : i32
    %c0_i32_1 = arith.constant 0 : i32
    return %c0_i32, %c0_i32_0 : i32, i32
  }
  func.func @transform_21(%arg0: i32) -> (i32, i32) {
    %c0_i32 = arith.constant 0 : i32
    %c0_i32_0 = arith.constant 0 : i32
    %c0_i32_1 = arith.constant 0 : i32
    return %c0_i32, %c0_i32_0 : i32, i32
  }
  func.func @transform_22(%arg0: i32) -> (i32, i32) {
    %c0_i32 = arith.constant 0 : i32
    %c0_i32_0 = arith.constant 0 : i32
    %c0_i32_1 = arith.constant 0 : i32
    return %c0_i32, %c0_i32_0 : i32, i32
  }
  func.func @transform_23(%arg0: i32) -> (i32, i32) {
    %c0_i32 = arith.constant 0 : i32
    %c0_i32_0 = arith.constant 0 : i32
    %c0_i32_1 = arith.constant 0 : i32
    return %c0_i32, %c0_i32_0 : i32, i32
  }
  func.func @transform_24(%arg0: i32) -> (i32, i32) {
    %c0_i32 = arith.constant 0 : i32
    %c0_i32_0 = arith.constant 0 : i32
    %c0_i32_1 = arith.constant 0 : i32
    return %c0_i32, %c0_i32_0 : i32, i32
  }
  func.func @transform_25(%arg0: i32) -> (i32, i32) {
    %c0_i32 = arith.constant 0 : i32
    %c0_i32_0 = arith.constant 0 : i32
    %c0_i32_1 = arith.constant 0 : i32
    return %c0_i32, %c0_i32_0 : i32, i32
  }
  func.func @transform_26(%arg0: i32) -> (i32, i32) {
    %c0_i32 = arith.constant 0 : i32
    %c0_i32_0 = arith.constant 0 : i32
    return %arg0, %c0_i32 : i32, i32
  }
}

</mosaic_0001>

<bundles_post_ra>
// kernel: tpu_custom_call.1
= control target key start
LH: loop header
LB: loop body
LE: loop exit
PB: predicated region body
PF: predicated region fallthrough
CT: control target
= control target key end

     0   :  { %v2327_v0 = vmov 0   ;;  %vm186_vm0 = vcmask 261120   ;;  %v2328_v34 = vmov 0.0   ;;  %vm2329_vm1 = vmmov 0   ;;  %s2330_s30 = smov 120   ;;  %s2839_s2 = inlined_call_operand.vmem [shape: bf16[160,32], index: 2, kind: input, shape index: {}]   ;;  %s2840_s0 = inlined_call_operand.vmem [shape: bf16[2,8,160], index: 0, kind: input, shape index: {}]   ;;  %s2841_s3 = inlined_call_operand.vmem [shape: f32[1,32], index: 3, kind: input, shape index: {}]   ;;  %s2842_s6 = inlined_call_operand.vmem [shape: bf16[32,32], index: 6, kind: input, shape index: {}]   ;;  %s2843_s8 = inlined_call_operand.vmem [shape: bf16[32,32], index: 8, kind: input, shape index: {}]   ;;  %s2844_s10 = inlined_call_operand.vmem [shape: bf16[32,32], index: 10, kind: input, shape index: {}]   ;;  %s2845_s4 = inlined_call_operand.vmem [shape: f32[1,32], index: 4, kind: input, shape index: {}]   ;;  %s2846_s5 = inlined_call_operand.vmem [shape: f32[1,32], index: 5, kind: input, shape index: {}]   ;;  %s2847_s7 = inlined_call_operand.vmem [shape: f32[1,32], index: 7, kind: input, shape index: {}]   ;;  %s2848_s9 = inlined_call_operand.vmem [shape: f32[1,32], index: 9, kind: input, shape index: {}]   ;;  %s2849_s11 = inlined_call_operand.vmem [shape: f32[1,32], index: 11, kind: input, shape index: {}]   ;;  %s2850_s1 = inlined_call_operand.vmem [shape: f32[2,1,8], index: 1, kind: input, shape index: {}]   ;;  %s2851_s12 = inlined_call_operand.vmem [shape: bf16[32,32], index: 12, kind: input, shape index: {}]   ;;  %s2852_s13 = inlined_call_operand.vmem [shape: f32[1,32], index: 13, kind: input, shape index: {}]   ;;  %s2853_s16 = inlined_call_operand.vmem [shape: bf16[32,64], index: 16, kind: input, shape index: {}]   ;;  %s2854_s14 = inlined_call_operand.vmem [shape: f32[1,32], index: 14, kind: input, shape index: {}]   ;;  %s2855_s15 = inlined_call_operand.vmem [shape: f32[1,32], index: 15, kind: input, shape index: {}]   ;;  %s2856_s18 = inlined_call_operand.vmem [shape: bf16[64,32], index: 18, kind: input, shape index: {}]   ;;  %s2857_s17 = inlined_call_operand.vmem [shape: f32[1,64], index: 17, kind: input, shape index: {}]   ;;  %s2858_s19 = inlined_call_operand.vmem [shape: f32[1,32], index: 19, kind: input, shape index: {}]   ;;  %s2859_s22 = inlined_call_operand.vmem [shape: bf16[32,32], index: 22, kind: input, shape index: {}]   ;;  %s2860_s20 = inlined_call_operand.vmem [shape: f32[1,32], index: 20, kind: input, shape index: {}]   ;;  %s2861_s21 = inlined_call_operand.vmem [shape: f32[1,32], index: 21, kind: input, shape index: {}]   ;;  %s2862_s24 = inlined_call_operand.vmem [shape: bf16[32,1], index: 24, kind: input, shape index: {}]   ;;  %s2863_s25 = inlined_call_operand.<no memory space> [shape: f32[1,1], index: 25, kind: input, shape index: {}]   ;;  %s2864_s23 = inlined_call_operand.vmem [shape: f32[1,32], index: 23, kind: input, shape index: {}]   ;;  %s2865_s26 = inlined_call_operand.vmem [shape: f32[2,1], index: 26, kind: output, shape index: {}]  }
   0x1   :  { %2871 = sst [smem:[#allocation3_spill]] %s2839_s2  ;;  %190 = vmatprep.subr.bf16.mxu0 %v2327_v0  ;;  %2060 = vmatprep.subr.bf16.mxu1 %v2328_v34  ;;  %vm532_vm2 = vcmask 64512   ;;  %vm1028_vm3 = vcmask 1043456   ;;  %vm1420_vm4 = vcmask 130048   ;;  %vm1423_vm5 = vcmask 195584  }
   0x2   :  { %2872 = sst [smem:[#allocation4_spill]] %s2840_s0  ;;  %2064 = vmatprep.mubr.msk.bf16.mxu1 %vm2329_vm1, %v2328_v34  ;;  %vm1666_vm6 = vcmask 523264   ;;  %vm1788_vm7 = vcmask 1041409   ;;  %vm1914_vm8 = vcmask 1024  }
   0x3   :  { %2873 = sst [smem:[#allocation5_spill]] %s2841_s3 }
   0x4   :  { %2874 = sst [smem:[#allocation6_spill]] %s2842_s6 }
   0x5   :  { %2875 = sst [smem:[#allocation7_spill]] %s2843_s8 }
   0x6   :  { %2876 = sst [smem:[#allocation8_spill]] %s2844_s10 }
   0x7   :  { %2877 = sst [smem:[#allocation9_spill]] %s2845_s4 }
   0x8   :  { %2878 = sst [smem:[#allocation10_spill]] %s2846_s5 }
   0x9   :  { %2879 = sst [smem:[#allocation11_spill]] %s2847_s7 }
   0xa   :  { %2880 = sst [smem:[#allocation12_spill]] %s2848_s9 }
   0xb   :  { %2881 = sst [smem:[#allocation13_spill]] %s2849_s11  ;;  %s2334_s11 = smov 16  }
   0xc   :  { %s2882_s6 = sld [smem:[#allocation3_spill]] }
   0xd   :  { %s2883_s10 = sld [smem:[#allocation4_spill]] }
   0xe   :  { %s2884_s5 = sld [smem:[#allocation5_spill]] }
   0xf   :  { %s2885_s27 = sld [smem:[#allocation6_spill]] }
  0x10   :  { %s2886_s2 = sld [smem:[#allocation9_spill]] }
  0x11   :  { %s2887_s3 = sld [smem:[#allocation10_spill]] }
  0x12   :  { %v2248_v1 = vld [vmem:[%s2882_s6 + $0x38] sm:$0xff]   ;;  %v2249_v2 = vld [vmem:[%s2882_s6 + $0x30] sm:$0xff]   ;;  %v2250_v3 = vld [vmem:[%s2882_s6 + $0x28] sm:$0xff]   ;;  %s2888_s0 = sld [smem:[#allocation7_spill]] }
  0x13   :  { %191 = vmatpush1.bf16.msra.mxu0 %v2248_v1  ;;  %v2251_v4 = vld [vmem:[%s2882_s6 + $0x20] sm:$0xff]   ;;  %v2252_v6 = vld [vmem:[%s2882_s6 + $0x18] sm:$0xff]   ;;  %v2253_v7 = vld [vmem:[%s2882_s6 + $0x10] sm:$0xff]   ;;  %s2889_s28 = sld [smem:[#allocation8_spill]] }
  0x14   :  { %192 = vmatprep.subr.bf16.mxu0 %v2327_v0  ;;  %v2260_v5 = vld [vmem:[%s2883_s10 + $0x4] ss:$8 sps:$4 sm:$0xff]   ;;  %v2258_v12 = vld [vmem:[%s2883_s10] ss:$8 sps:$4 sm:$0xff]   ;;  %s2890_s9 = sld [smem:[#allocation11_spill]] }
  0x15   :  { %1933 = vmatprep.mubr.msk.bf16.mxu0 %vm186_vm0, %v2260_v5  ;;  %v2254_v8 = vld [vmem:[%s2882_s6 + $0x8] sm:$0xff]   ;;  %v2255_v9 = vld [vmem:[%s2882_s6] sm:$0xff]   ;;  %s2891_s4 = sld [smem:[#allocation12_spill]] }
  0x16   :  { %v2256_v10 = vld [vmem:[%s2882_s6 + $0x48] sm:$0xff]   ;;  %v2257_v11 = vld [vmem:[%s2882_s6 + $0x40] sm:$0xff]  }
  0x17   :  { %193 = vmatpush1.bf16.msra.mxu0 %v2249_v2  ;;  %v1920_v13 = vld [vmem:[%s2884_s5] ss:$0 sm:$0xff]  ;;  %v2261_v35 = vld [vmem:[%s2885_s27 + $0x8] sm:$0xff]   ;;  %s2332_s5 = smov 104  }
  0x18   :  { %194 = vmatprep.subr.bf16.mxu0 %v2327_v0  ;;  %2061 = vmatpush3.bf16.msra.mxu1 %v2261_v35  ;;  %v2262_v36 = vld [vmem:[%s2885_s27] sm:$0xff]   ;;  %v2263_v53 = vld [vmem:[%s2888_s0 + $0x8] sm:$0xff]   ;;  %s2892_s27 = sld [smem:[#allocation13_spill]] }
  0x19   :  { %2062 = vmatprep.subr.bf16.mxu1 %v2328_v34  ;;  %v1934_v45 = vld [vmem:[%s2886_s2] ss:$0 sm:$0xff]  ;;  %v2265_v56 = vld [vmem:[%s2889_s28 + $0x8] sm:$0xff]  }
  0x1a   :  { %v1935_v49 = vld [vmem:[%s2887_s3] ss:$0 sm:$0xff] }
  0x1b   :  { %195 = vmatpush1.bf16.msra.mxu0 %v2250_v3  ;;  %v2264_v55 = vld [vmem:[%s2888_s0] sm:$0xff]   ;;  %s2331_s0 = smov 112  }
  0x1c   :  { %196 = vmatprep.subr.bf16.mxu0 %v2327_v0  ;;  %2063 = vmatpush3.bf16.msra.mxu1 %v2262_v36  ;;  %v2266_v57 = vld [vmem:[%s2889_s28] sm:$0xff]  }
  0x1d   :  { %2068 = vmatprep.subr.bf16.mxu1 %v2328_v34  ;;  %v1936_v58 = vld [vmem:[%s2890_s9] ss:$0 sm:$0xff] }
  0x1e   :  { %v1940_v1 = vld [vmem:[%s2891_s4] ss:$0 sm:$0xff]  ;;  %s2335_s4 = smov 24  }
  0x1f   :  { %197 = vmatpush1.bf16.msra.mxu0 %v2251_v4 }
  0x20   :  { %198 = vmatprep.subr.bf16.mxu0 %v2327_v0 }
  0x23   :  { %199 = vmatpush1.bf16.msra.mxu0 %v2252_v6 }
  0x24   :  { %200 = vmatprep.subr.bf16.mxu0 %v2327_v0 }
  0x27   :  { %201 = vmatpush1.bf16.msra.mxu0 %v2253_v7 }
  0x28   :  { %202 = vmatprep.subr.bf16.mxu0 %v2327_v0 }
  0x2b   :  { %203 = vmatpush1.bf16.msra.mxu0 %v2254_v8 }
  0x2c   :  { %204 = vmatprep.subr.bf16.mxu0 %v2327_v0 }
  0x2f   :  { %205 = vmatpush1.bf16.msra.mxu0 %v2255_v9 }
  0x30   :  { %218 = vmatprep.subr.bf16.mxu0 %v2327_v0 }
  0x33   :  { %219 = vmatpush2.bf16.msra.mxu0 %v2256_v10 }
  0x34   :  { %220 = vmatprep.subr.bf16.mxu0 %v2327_v0 }
  0x37   :  { %221 = vmatpush2.bf16.msra.mxu0 %v2257_v11 }
  0x38   :  { %2096 = vmatprep.subr.bf16.mxu0 %v2328_v34 }
  0x3a   :  { %223 = vmatmul.mubr.bf16.vlgmr.msra.gmra.mxu0 %v2258_v12 }
  0x3b   :  { %2098 = vmatprep.mubr.msk.bf16.mxu0 %vm2329_vm1, %v2328_v34 }
  0xfa   :  { %v224_v14 = vpop.f32.mrf.mxu0 }
  0xfb   :  { %v225_v15 = vadd.f32 %v1920_v13, %v224_v14 }
  0xfc   :  { %v226_v16 = vpop.f32.mrf.mxu0 }
  0xfd   :  { %v231_v17 = vmax.f32 %v225_v15, 0.0 }
  0xfe   :  { %v227_v18 = vpop.f32.mrf.mxu0 }
  0xff   :  { %v228_v19 = vadd.f32 %v1920_v13, %v227_v18  ;;  %v235_v20 = vsel %vm186_vm0, %v231_v17, 0.0 }
 0x100   :  { %v229_v21 = vpop.f32.mrf.mxu0  ;;  %236 = vadd.xlane.f32.xlu0 %v235_v20 }
 0x101   :  { %v232_v22 = vmax.f32 %v228_v19, 0.0 }
 0x103   :  { %v238_v23 = vsel %vm186_vm0, %v232_v22, 0.0 }
 0x104   :  { %239 = vadd.xlane.f32.xlu0 %v238_v23 }
 0x189   :  { %v237_v24 = vpop.xlane.xlu0 %236 }
 0x18a   :  { %v242_v25 = vmul.f32 0.03125, %v237_v24 }
 0x18c   :  { %v244_v26 = vsub.f32 %v231_v17, %v242_v25 }
 0x18d   :  { %v240_v27 = vpop.xlane.xlu0 %239 }
 0x18e   :  { %v243_v28 = vmul.f32 0.03125, %v240_v27  ;;  %v246_v29 = vmul.f32 %v244_v26, %v244_v26 }
 0x190   :  { %v245_v30 = vsub.f32 %v232_v22, %v243_v28  ;;  %v248_v31 = vsel %vm186_vm0, %v246_v29, 0.0  ;;  %v1944_v28 = vld [vmem:[%s2892_s27] ss:$0 sm:$0xff] }
 0x191   :  { %249 = vadd.xlane.f32.xlu1 %v248_v31 }
 0x192   :  { %v247_v32 = vmul.f32 %v245_v30, %v245_v30 }
 0x194   :  { %v251_v33 = vsel %vm186_vm0, %v247_v32, 0.0 }
 0x195   :  { %252 = vadd.xlane.f32.xlu1 %v251_v33 }
 0x21a   :  { %v250_v37 = vpop.xlane.xlu1 %249 }
 0x21b   :  { %v254_v38 = vmul.f32 0.03125, %v250_v37 }
 0x21d   :  { %v256_v39 = vadd.f32 1e-05, %v254_v38 }
 0x21e   :  { %v253_v40 = vpop.xlane.xlu1 %252 }
 0x21f   :  { %2279 = vrsqrt.f32 %v256_v39  ;;  %v255_v41 = vmul.f32 0.03125, %v253_v40 }
 0x221   :  { %v257_v42 = vadd.f32 1e-05, %v255_v41 }
 0x223   :  { %2281 = vrsqrt.f32 %v257_v42 }
 0x22c   :  { %v2280_v43 = vpop.eup %2279 }
 0x22d   :  { %v260_v44 = vmul.f32 %v2280_v43, %v244_v26 }
 0x22f   :  { %v268_v48 = vmul.f32 %v1934_v45, %v260_v44  ;;  %v911_v44 = vlaneseq }
 0x230   :  { %v2282_v46 = vpop.eup %2281 }
 0x231   :  { %v261_v47 = vmul.f32 %v2282_v46, %v245_v30  ;;  %v2535_v51 = vadd.f32 %v1935_v49, %v268_v48 }
 0x233   :  { %v269_v50 = vmul.f32 %v1934_v45, %v261_v47  ;;  %v88_v45 = vld [vmem:[%s2850_s1] sm:$0x1]  ;;  %v912_v47 = vshrl.u32 %v911_v44, 7 }
 0x234   :  { %v528_v46 = vsub.f32 1.0, %v88_v45 }
 0x235   :  { %v2537_v52 = vadd.f32 %v1935_v49, %v269_v50  ;;  %v913_v49 = vsub.s32 0, %v912_v47  ;;  %v89_v50 = vld [vmem:[%s2850_s1 + $0x1] sm:$0x1]  ;;  %s2333_s1 = smov 8  }
 0x236   :  { %v530_v48 = vmul.f32 -1e+09, %v528_v46 }
 0x237   :  { %v278_v54 = vpack.c.bf16 %v2537_v52, %v2535_v51 }
 0x239   :  { %2065 = vmatmul.mubr.msk.bf16.vlgmr.msra.gmra.mxu1 %vm186_vm0, %v278_v54 }
 0x23a   :  { %2069 = vmatpush3.bf16.msra.mxu1 %v2263_v53  ;;  %2072 = vmatprep.mubr.msk.bf16.mxu1 %vm2329_vm1, %v2328_v34  ;;  %v914_v53 = vrot.slane %v530_v48, %v913_v49 }
 0x23b   :  { %2070 = vmatprep.subr.bf16.mxu1 %v2328_v34 }
 0x23e   :  { %2071 = vmatpush3.bf16.msra.mxu1 %v2264_v55 }
 0x23f   :  { %2076 = vmatprep.subr.bf16.mxu1 %v2328_v34 }
 0x241   :  { %2073 = vmatmul.mubr.msk.bf16.vlgmr.msra.gmra.mxu1 %vm186_vm0, %v278_v54 }
 0x242   :  { %2077 = vmatpush3.bf16.msra.mxu1 %v2265_v56  ;;  %2080 = vmatprep.mubr.msk.bf16.mxu1 %vm2329_vm1, %v2328_v34 }
 0x243   :  { %2078 = vmatprep.subr.bf16.mxu1 %v2328_v34 }
 0x246   :  { %2079 = vmatpush3.bf16.msra.mxu1 %v2266_v57 }
 0x247   :  { %2084 = vmatprep.subr.bf16.mxu1 %v2328_v34 }
 0x249   :  { %2081 = vmatmul.mubr.msk.bf16.vlgmr.msra.gmra.mxu1 %vm186_vm0, %v278_v54  ;;  %v529_v54 = vsub.f32 1.0, %v89_v50 }
 0x24a   :  { %2086 = vmatprep.mubr.msk.bf16.mxu1 %vm2329_vm1, %v2328_v34 }
 0x2f9   :  { %v339_v59 = vpop.f32.mrf.mxu1 }
 0x2fa   :  { %v340_v60 = vadd.f32 %v1936_v58, %v339_v59  ;;  %v531_v59 = vmul.f32 -1e+09, %v529_v54 }
 0x2fb   :  { %v2066_v61 = vpop.f32.mrf.mxu1 }
 0x2fc   :  { %v1996_v62 = vpack.c.bf16 %v340_v60, %v340_v60 }
 0x2fd   :  { %v342_v63 = vpop.f32.mrf.mxu1 }
 0x2fe   :  { %480 = vrot.lane.b32.xlu1 %v1996_v62, %s2330_s30  ;;  %v343_v11 = vadd.f32 %v1936_v58, %v342_v63  ;;  %v918_v63 = vrot.slane %v531_v59, %v913_v49 }
 0x2ff   :  { %v2067_v0 = vpop.f32.mrf.mxu1 }
 0x300   :  { %v1997_v14 = vpack.c.bf16 %v343_v11, %v343_v11 }
 0x301   :  { %v403_v2 = vpop.f32.mrf.mxu1 }
 0x302   :  { %v404_v3 = vadd.f32 %v1940_v1, %v403_v2 }
 0x303   :  { %v2074_v4 = vpop.f32.mrf.mxu1 }
 0x304   :  { %v1998_v5 = vpack.c.bf16 %v404_v3, %v404_v3 }
 0x305   :  { %v406_v6 = vpop.f32.mrf.mxu1 }
 0x306   :  { %v407_v7 = vadd.f32 %v1940_v1, %v406_v6  ;;  %498 = vrot.lane.b32.xlu0 %v1998_v5, %s2330_s30  ;;  %v537_v8 = vsel %vm532_vm2, %v1998_v5, 0 }
 0x307   :  { %v2075_v9 = vpop.f32.mrf.mxu1  ;;  %2085 = vmatpush3.bf16.xpose.msra.mxu1 %v537_v8 }
 0x308   :  { %v1999_v10 = vpack.c.bf16 %v407_v7, %v407_v7  ;;  %2090 = vmatprep.subr.bf16.mxu1 %v2328_v34 }
 0x309   :  { %v467_v12 = vpop.f32.mrf.mxu1 }
 0x30a   :  { %502 = vrot.lane.b32.xlu0 %v1998_v5, %s2331_s0  ;;  %500 = vrot.lane.b32.xlu1 %v1999_v10, %s2330_s30  ;;  %v583_v16 = vsel %vm532_vm2, %v1999_v10, 0  ;;  %v468_v31 = vadd.f32 %v1944_v28, %v467_v12 }
 0x30b   :  { %v2082_v13 = vpop.f32.mrf.mxu1 }
 0x30c   :  { %v2616_v35 = vpack.c.bf16 %v468_v31, %v468_v31 }
 0x30d   :  { %v470_v15 = vpop.f32.mrf.mxu1 }
 0x30e   :  { %484 = vrot.lane.b32.xlu0 %v1996_v62, %s2331_s0  ;;  %2087 = vmatmul.mubr.msk.bf16.vlgmr.msra.gmra.mxu1 %vm532_vm2, %v1996_v62  ;;  %v471_v37 = vadd.f32 %v1944_v28, %v470_v15  ;;  %v1030_v40 = vsel %vm1028_vm3, %v2616_v35, 0 }
 0x30f   :  { %482 = vrot.lane.b32.xlu1 %v1997_v14, %s2330_s30  ;;  %v2083_v17 = vpop.f32.mrf.mxu1  ;;  %2091 = vmatpush3.bf16.xpose.msra.mxu1 %v583_v16 }
 0x310   :  { %2092 = vmatprep.mubr.msk.bf16.mxu1 %vm2329_vm1, %v2328_v34  ;;  %2102 = vmatprep.subr.bf16.mxu1 %v2328_v34  ;;  %v2626_v41 = vpack.c.bf16 %v471_v37, %v471_v37 }
 0x312   :  { %506 = vrot.lane.b32.xlu0 %v1998_v5, %s2332_s5  ;;  %v1076_v43 = vsel %vm1028_vm3, %v2626_v41, 0 }
 0x313   :  { %504 = vrot.lane.b32.xlu1 %v1999_v10, %s2331_s0 }
 0x316   :  { %488 = vrot.lane.b32.xlu0 %v1996_v62, %s2332_s5  ;;  %2093 = vmatmul.mubr.msk.bf16.vlgmr.msra.gmra.mxu1 %vm532_vm2, %v1997_v14 }
 0x317   :  { %486 = vrot.lane.b32.xlu1 %v1997_v14, %s2331_s0  ;;  %2104 = vmatprep.mubr.msk.bf16.mxu1 %vm2329_vm1, %v2328_v34 }
 0x31b   :  { %508 = vrot.lane.b32.xlu1 %v1999_v10, %s2332_s5 }
 0x31f   :  { %490 = vrot.lane.b32.xlu1 %v1997_v14, %s2332_s5 }
 0x370   :  { %v481_v18 = vpop.permute.xlu1 %480 }
 0x378   :  { %v499_v19 = vpop.permute.xlu0 %498 }
 0x379   :  { %v629_v20 = vsel %vm532_vm2, %v499_v19, 0 }
 0x37a   :  { %2097 = vmatpush3.bf16.xpose.msra.mxu0 %v629_v20 }
 0x37b   :  { %2108 = vmatprep.subr.bf16.mxu0 %v2328_v34 }
 0x37c   :  { %v503_v21 = vpop.permute.xlu0 %502  ;;  %v501_v22 = vpop.permute.xlu1 %500 }
 0x37d   :  { %v675_v23 = vsel %vm532_vm2, %v501_v22, 0  ;;  %v721_v25 = vsel %vm532_vm2, %v503_v21, 0 }
 0x37e   :  { %2103 = vmatpush3.bf16.xpose.msra.mxu1 %v675_v23 }
 0x37f   :  { %2114 = vmatprep.subr.bf16.mxu1 %v2328_v34 }
 0x380   :  { %v485_v24 = vpop.permute.xlu0 %484 }
 0x381   :  { %v483_v26 = vpop.permute.xlu1 %482  ;;  %2099 = vmatmul.mubr.msk.bf16.vlgmr.msra.gmra.mxu0 %vm532_vm2, %v481_v18 }
 0x382   :  { %2109 = vmatpush3.bf16.xpose.msra.mxu0 %v721_v25  ;;  %2110 = vmatprep.mubr.msk.bf16.mxu0 %vm2329_vm1, %v2328_v34 }
 0x383   :  { %2120 = vmatprep.subr.bf16.mxu0 %v2328_v34 }
 0x384   :  { %v507_v29 = vpop.permute.xlu0 %506 }
 0x385   :  { %v505_v27 = vpop.permute.xlu1 %504  ;;  %2105 = vmatmul.mubr.msk.bf16.vlgmr.msra.gmra.mxu1 %vm532_vm2, %v483_v26  ;;  %v813_v32 = vsel %vm532_vm2, %v507_v29, 0 }
 0x386   :  { %v767_v30 = vsel %vm532_vm2, %v505_v27, 0  ;;  %2116 = vmatprep.mubr.msk.bf16.mxu1 %vm2329_vm1, %v2328_v34 }
 0x387   :  { %2115 = vmatpush3.bf16.xpose.msra.mxu1 %v767_v30 }
 0x388   :  { %2126 = vmatprep.subr.bf16.mxu1 %v2328_v34  ;;  %v489_v39 = vpop.permute.xlu0 %488 }
 0x389   :  { %v487_v33 = vpop.permute.xlu1 %486  ;;  %2111 = vmatmul.mubr.msk.bf16.vlgmr.msra.gmra.mxu0 %vm532_vm2, %v485_v24 }
 0x38a   :  { %2121 = vmatpush3.bf16.xpose.msra.mxu0 %v813_v32  ;;  %2122 = vmatprep.mubr.msk.bf16.mxu0 %vm2329_vm1, %v2328_v34 }
 0x38b   :  { %2132 = vmatprep.subr.bf16.mxu0 %v2328_v34 }
 0x38d   :  { %v509_v36 = vpop.permute.xlu1 %508 }
 0x38e   :  { %v859_v38 = vsel %vm532_vm2, %v509_v36, 0  ;;  %2117 = vmatmul.mubr.msk.bf16.vlgmr.msra.gmra.mxu1 %vm532_vm2, %v487_v33 }
 0x38f   :  { %2127 = vmatpush3.bf16.xpose.msra.mxu1 %v859_v38  ;;  %2128 = vmatprep.mubr.msk.bf16.mxu1 %vm2329_vm1, %v2328_v34 }
 0x390   :  { %2138 = vmatprep.subr.bf16.mxu1 %v2328_v34 }
 0x391   :  { %2123 = vmatmul.mubr.msk.bf16.vlgmr.msra.gmra.mxu0 %vm532_vm2, %v489_v39  ;;  %v491_v42 = vpop.permute.xlu1 %490 }
 0x392   :  { %2133 = vmatpush3.bf16.msra.mxu0 %v1030_v40  ;;  %2134 = vmatprep.mubr.msk.bf16.mxu0 %vm2329_vm1, %v2328_v34 }
 0x393   :  { %2144 = vmatprep.subr.bf16.mxu0 %v2328_v34 }
 0x396   :  { %2129 = vmatmul.mubr.msk.bf16.vlgmr.msra.gmra.mxu1 %vm532_vm2, %v491_v42 }
 0x397   :  { %2139 = vmatpush3.bf16.msra.mxu1 %v1076_v43  ;;  %2140 = vmatprep.mubr.msk.bf16.mxu1 %vm2329_vm1, %v2328_v34 }
 0x398   :  { %2150 = vmatprep.subr.bf16.mxu1 %v2328_v34 }
 0x3ce   :  { %v573_v55 = vpop.f32.mrf.mxu1 }
 0x3cf   :  { %v901_v56 = vmul.f32 0.35355338, %v573_v55 }
 0x3d0   :  { %v2088_v57 = vpop.f32.mrf.mxu1 }
 0x3d1   :  { %v2643_v58 = vadd.f32 %v914_v53, %v901_v56 }
 0x3d2   :  { %v576_v60 = vpop.f32.mrf.mxu1 }
 0x3d3   :  { %v929_v61 = vsel %vm532_vm2, %v2643_v58, -inf }
 0x3d4   :  { %930 = vmax.xlane.f32.xlu0 %v929_v61  ;;  %v2089_v62 = vpop.f32.mrf.mxu1 }
 0x3d6   :  { %v619_v0 = vpop.f32.mrf.mxu1 }
 0x3d7   :  { %v902_v1 = vmul.f32 0.35355338, %v619_v0 }
 0x3d8   :  { %v2094_v2 = vpop.f32.mrf.mxu1 }
 0x3d9   :  { %v922_v3 = vadd.f32 %v918_v63, %v902_v1 }
 0x3da   :  { %v622_v4 = vpop.f32.mrf.mxu1 }
 0x3db   :  { %v932_v5 = vsel %vm532_vm2, %v922_v3, -inf }
 0x3dc   :  { %933 = vmax.xlane.f32.xlu1 %v932_v5  ;;  %v2095_v6 = vpop.f32.mrf.mxu1 }
 0x441   :  { %v665_v7 = vpop.f32.mrf.mxu0 }
 0x442   :  { %v903_v8 = vmul.f32 0.35355338, %v665_v7 }
 0x443   :  { %v2100_v9 = vpop.f32.mrf.mxu0 }
 0x444   :  { %v2648_v10 = vadd.f32 %v914_v53, %v903_v8 }
 0x445   :  { %v668_v11 = vpop.f32.mrf.mxu0  ;;  %v711_v12 = vpop.f32.mrf.mxu1 }
 0x446   :  { %v904_v13 = vmul.f32 0.35355338, %v711_v12  ;;  %v935_v14 = vsel %vm532_vm2, %v2648_v10, -inf }
 0x447   :  { %v2101_v15 = vpop.f32.mrf.mxu0  ;;  %936 = vmax.xlane.f32.xlu0 %v935_v14  ;;  %v2106_v16 = vpop.f32.mrf.mxu1 }
 0x448   :  { %v924_v17 = vadd.f32 %v918_v63, %v904_v13 }
 0x449   :  { %v714_v18 = vpop.f32.mrf.mxu1  ;;  %v757_v19 = vpop.f32.mrf.mxu0 }
 0x44a   :  { %v905_v20 = vmul.f32 0.35355338, %v757_v19  ;;  %v938_v21 = vsel %vm532_vm2, %v924_v17, -inf }
 0x44b   :  { %v2112_v22 = vpop.f32.mrf.mxu0  ;;  %939 = vmax.xlane.f32.xlu0 %v938_v21  ;;  %v2107_v23 = vpop.f32.mrf.mxu1 }
 0x44c   :  { %v2653_v24 = vadd.f32 %v914_v53, %v905_v20 }
 0x44d   :  { %v760_v25 = vpop.f32.mrf.mxu0 }
 0x44e   :  { %v803_v26 = vpop.f32.mrf.mxu1  ;;  %v941_v27 = vsel %vm532_vm2, %v2653_v24, -inf }
 0x44f   :  { %v906_v28 = vmul.f32 0.35355338, %v803_v26  ;;  %v2113_v29 = vpop.f32.mrf.mxu0  ;;  %942 = vmax.xlane.f32.xlu0 %v941_v27 }
 0x450   :  { %v2118_v30 = vpop.f32.mrf.mxu1 }
 0x451   :  { %v849_v31 = vpop.f32.mrf.mxu0  ;;  %v926_v32 = vadd.f32 %v918_v63, %v906_v28 }
 0x452   :  { %v806_v33 = vpop.f32.mrf.mxu1  ;;  %v907_v36 = vmul.f32 0.35355338, %v849_v31 }
 0x453   :  { %v2124_v37 = vpop.f32.mrf.mxu0  ;;  %v944_v38 = vsel %vm532_vm2, %v926_v32, -inf }
 0x454   :  { %945 = vmax.xlane.f32.xlu1 %v944_v38  ;;  %v2119_v39 = vpop.f32.mrf.mxu1  ;;  %v2658_v40 = vadd.f32 %v914_v53, %v907_v36 }
 0x455   :  { %v852_v42 = vpop.f32.mrf.mxu0 }
 0x456   :  { %v895_v43 = vpop.f32.mrf.mxu1  ;;  %v947_v44 = vsel %vm532_vm2, %v2658_v40, -inf }
 0x457   :  { %v908_v45 = vmul.f32 0.35355338, %v895_v43  ;;  %v2125_v46 = vpop.f32.mrf.mxu0  ;;  %948 = vmax.xlane.f32.xlu0 %v947_v44 }
 0x458   :  { %v2130_v47 = vpop.f32.mrf.mxu1 }
 0x459   :  { %v928_v48 = vadd.f32 %v918_v63, %v908_v45 }
 0x45a   :  { %v898_v49 = vpop.f32.mrf.mxu1 }
 0x45b   :  { %v950_v50 = vsel %vm532_vm2, %v928_v48, -inf }
 0x45c   :  { %951 = vmax.xlane.f32.xlu1 %v950_v50  ;;  %v2131_v54 = vpop.f32.mrf.mxu1 }
 0x45d   :  { %v931_v55 = vpop.xlane.xlu0 %930 }
 0x45e   :  { %v953_v56 = vsub.f32 %v2643_v58, %v931_v55 }
 0x460   :  { %v961_v53 = vmul.f32 1.442695, %v953_v56 }
 0x462   :  { %2283 = vpow2.f32 %v961_v53 }
 0x465   :  { %v934_v57 = vpop.xlane.xlu1 %933 }
 0x466   :  { %v954_v59 = vsub.f32 %v922_v3, %v934_v57 }
 0x468   :  { %v963_v60 = vmul.f32 1.442695, %v954_v59 }
 0x46a   :  { %2285 = vpow2.f32 %v963_v60 }
 0x46f   :  { %v2284_v61 = vpop.eup %2283 }
 0x470   :  { %v977_v62 = vsel %vm532_vm2, %v2284_v61, 0.0 }
 0x471   :  { %978 = vadd.xlane.f32.xlu0 %v977_v62 }
 0x477   :  { %v2286_v0 = vpop.eup %2285 }
 0x478   :  { %v980_v63 = vsel %vm532_vm2, %v2286_v0, 0.0 }
 0x479   :  { %981 = vadd.xlane.f32.xlu1 %v980_v63 }
 0x48a   :  { %518 = vrot.lane.b32.xlu1 %v2626_v41, %s2330_s30 }
 0x48e   :  { %520 = vrot.lane.b32.xlu1 %v2616_v35, %s2331_s0 }
 0x492   :  { %522 = vrot.lane.b32.xlu1 %v2626_v41, %s2331_s0 }
 0x4d0   :  { %v937_v58 = vpop.xlane.xlu0 %936 }
 0x4d1   :  { %v955_v1 = vsub.f32 %v2648_v10, %v937_v58 }
 0x4d3   :  { %v965_v2 = vmul.f32 1.442695, %v955_v1 }
 0x4d4   :  { %v940_v3 = vpop.xlane.xlu0 %939 }
 0x4d5   :  { %2287 = vpow2.f32 %v965_v2  ;;  %v956_v4 = vsub.f32 %v924_v17, %v940_v3 }
 0x4d7   :  { %v967_v5 = vmul.f32 1.442695, %v956_v4 }
 0x4d8   :  { %v943_v18 = vpop.xlane.xlu0 %942 }
 0x4d9   :  { %2289 = vpow2.f32 %v967_v5  ;;  %v957_v23 = vsub.f32 %v2653_v24, %v943_v18 }
 0x4db   :  { %v969_v26 = vmul.f32 1.442695, %v957_v23 }
 0x4dd   :  { %v946_v6 = vpop.xlane.xlu1 %945 }
 0x4de   :  { %v958_v7 = vsub.f32 %v926_v32, %v946_v6 }
 0x4e0   :  { %v971_v8 = vmul.f32 1.442695, %v958_v7  ;;  %v949_v19 = vpop.xlane.xlu0 %948 }
 0x4e1   :  { %v959_v27 = vsub.f32 %v2658_v40, %v949_v19 }
 0x4e2   :  { %v2673_v9 = vpop.eup %2287  ;;  %2291 = vpow2.f32 %v971_v8 }
 0x4e3   :  { %v983_v11 = vsel %vm532_vm2, %v2673_v9, 0.0  ;;  %v973_v29 = vmul.f32 1.442695, %v959_v27 }
 0x4e4   :  { %984 = vadd.xlane.f32.xlu0 %v983_v11 }
 0x4e5   :  { %v952_v12 = vpop.xlane.xlu1 %951 }
 0x4e6   :  { %v2677_v13 = vpop.eup %2289  ;;  %v960_v10 = vsub.f32 %v928_v48, %v952_v12 }
 0x4e7   :  { %v986_v14 = vsel %vm532_vm2, %v2677_v13, 0.0 }
 0x4e8   :  { %v975_v15 = vmul.f32 1.442695, %v960_v10  ;;  %987 = vadd.xlane.f32.xlu1 %v986_v14 }
 0x4ea   :  { %2293 = vpow2.f32 %v975_v15 }
 0x4ef   :  { %v2681_v16 = vpop.eup %2291 }
 0x4f0   :  { %v992_v17 = vsel %vm532_vm2, %v2681_v16, 0.0 }
 0x4f1   :  { %993 = vadd.xlane.f32.xlu1 %v992_v17 }
 0x4f7   :  { %v2685_v20 = vpop.eup %2293 }
 0x4f8   :  { %v998_v21 = vsel %vm532_vm2, %v2685_v20, 0.0 }
 0x4f9   :  { %999 = vadd.xlane.f32.xlu1 %v998_v21 }
 0x4fa   :  { %516 = vrot.lane.b32.xlu0 %v2616_v35, %s2330_s30  ;;  %v979_v22 = vpop.xlane.xlu0 %978 }
 0x4fb   :  { %2295 = vrcp.f32 %v979_v22 }
 0x502   :  { %v982_v25 = vpop.xlane.xlu1 %981 }
 0x503   :  { %2297 = vrcp.f32 %v982_v25 }
 0x504   :  { %2299 = vpow2.f32 %v969_v26 }
 0x505   :  { %2301 = vpow2.f32 %v973_v29 }
 0x506   :  { %v519_v33 = vpop.permute.xlu1 %518 }
 0x507   :  { %v1168_v38 = vsel %vm1028_vm3, %v519_v33, 0 }
 0x508   :  { %v2296_v28 = vpop.eup %2295 }
 0x509   :  { %v1009_v30 = vmul.f32 %v2296_v28, %v2284_v61 }
 0x50a   :  { %526 = vrot.lane.b32.xlu1 %v2626_v41, %s2332_s5  ;;  %v521_v42 = vpop.permute.xlu1 %520 }
 0x50b   :  { %v1017_v31 = vpack.c.bf16 %v1009_v30, %v1009_v30 }
 0x50d   :  { %2135 = vmatmul.mubr.msk.bf16.vlgmr.msra.gmra.mxu0 %vm532_vm2, %v1017_v31 }
 0x50e   :  { %2146 = vmatprep.mubr.msk.bf16.mxu0 %vm2329_vm1, %v2328_v34  ;;  %v523_v43 = vpop.permute.xlu1 %522 }
 0x50f   :  { %v1260_v59 = vsel %vm1028_vm3, %v523_v43, 0 }
 0x510   :  { %v2298_v24 = vpop.eup %2297 }
 0x511   :  { %v1010_v32 = vmul.f32 %v2298_v24, %v2286_v0  ;;  %v2300_v37 = vpop.eup %2299 }
 0x512   :  { %v989_v41 = vsel %vm532_vm2, %v2300_v37, 0.0  ;;  %v2302_v39 = vpop.eup %2301 }
 0x513   :  { %v1018_v36 = vpack.c.bf16 %v1010_v32, %v1010_v32  ;;  %v995_v40 = vsel %vm532_vm2, %v2302_v39, 0.0 }
 0x515   :  { %2141 = vmatmul.mubr.msk.bf16.vlgmr.msra.gmra.mxu1 %vm532_vm2, %v1018_v36 }
 0x516   :  { %2151 = vmatpush3.bf16.msra.mxu1 %v1168_v38  ;;  %2152 = vmatprep.mubr.msk.bf16.mxu1 %vm2329_vm1, %v2328_v34 }
 0x517   :  { %2162 = vmatprep.subr.bf16.mxu1 %v2328_v34 }
 0x519   :  { %990 = vadd.xlane.f32.xlu0 %v989_v41 }
 0x51d   :  { %996 = vadd.xlane.f32.xlu0 %v995_v40 }
 0x533   :  { %524 = vrot.lane.b32.xlu0 %v2616_v35, %s2332_s5  ;;  %v1214_v35 = vsel %vm1028_vm3, %v521_v42, 0  ;;  %v2268_v42 = vld [vmem:[%s2851_s12] sm:$0xff]  }
 0x56d   :  { %v985_v44 = vpop.xlane.xlu0 %984 }
 0x56e   :  { %2303 = vrcp.f32 %v985_v44 }
 0x571   :  { %v517_v45 = vpop.permute.xlu0 %516  ;;  %v988_v46 = vpop.xlane.xlu1 %987 }
 0x572   :  { %v1122_v47 = vsel %vm1028_vm3, %v517_v45, 0  ;;  %2305 = vrcp.f32 %v988_v46 }
 0x573   :  { %2145 = vmatpush3.bf16.msra.mxu0 %v1122_v47 }
 0x574   :  { %2156 = vmatprep.subr.bf16.mxu0 %v2328_v34 }
 0x57a   :  { %v994_v48 = vpop.xlane.xlu1 %993 }
 0x57b   :  { %v2304_v49 = vpop.eup %2303  ;;  %2307 = vrcp.f32 %v994_v48 }
 0x57c   :  { %v1011_v50 = vmul.f32 %v2304_v49, %v2673_v9 }
 0x57e   :  { %v1019_v54 = vpack.c.bf16 %v1011_v50, %v1011_v50 }
 0x57f   :  { %v2306_v55 = vpop.eup %2305 }
 0x580   :  { %2147 = vmatmul.mubr.msk.bf16.vlgmr.msra.gmra.mxu0 %vm532_vm2, %v1019_v54  ;;  %v1012_v56 = vmul.f32 %v2306_v55, %v2677_v13 }
 0x581   :  { %2157 = vmatpush3.bf16.msra.mxu0 %v1214_v35  ;;  %2158 = vmatprep.mubr.msk.bf16.mxu0 %vm2329_vm1, %v2328_v34 }
 0x582   :  { %v1000_v53 = vpop.xlane.xlu1 %999  ;;  %v1020_v57 = vpack.c.bf16 %v1012_v56, %v1012_v56  ;;  %2168 = vmatprep.subr.bf16.mxu0 %v2328_v34 }
 0x583   :  { %2309 = vrcp.f32 %v1000_v53 }
 0x584   :  { %2153 = vmatmul.mubr.msk.bf16.vlgmr.msra.gmra.mxu1 %vm532_vm2, %v1020_v57 }
 0x585   :  { %2163 = vmatpush3.bf16.msra.mxu1 %v1260_v59  ;;  %2164 = vmatprep.mubr.msk.bf16.mxu1 %vm2329_vm1, %v2328_v34 }
 0x586   :  { %2174 = vmatprep.subr.bf16.mxu1 %v2328_v34  ;;  %v527_v62 = vpop.permute.xlu1 %526 }
 0x587   :  { %v1352_v63 = vsel %vm1028_vm3, %v527_v62, 0 }
 0x588   :  { %v2308_v60 = vpop.eup %2307 }
 0x589   :  { %v1014_v61 = vmul.f32 %v2308_v60, %v2681_v16 }
 0x58b   :  { %v1022_v0 = vpack.c.bf16 %v1014_v61, %v1014_v61 }
 0x58d   :  { %2165 = vmatmul.mubr.msk.bf16.vlgmr.msra.gmra.mxu1 %vm532_vm2, %v1022_v0 }
 0x58e   :  { %2175 = vmatpush3.bf16.msra.mxu1 %v1352_v63  ;;  %2176 = vmatprep.mubr.msk.bf16.mxu1 %vm2329_vm1, %v2328_v34 }
 0x58f   :  { %2188 = vmatprep.subr.bf16.mxu1 %v2328_v34 }
 0x590   :  { %v2310_v58 = vpop.eup %2309 }
 0x591   :  { %v1016_v1 = vmul.f32 %v2310_v58, %v2685_v20 }
 0x593   :  { %v1024_v2 = vpack.c.bf16 %v1016_v1, %v1016_v1 }
 0x595   :  { %2177 = vmatmul.mubr.msk.bf16.vlgmr.msra.gmra.mxu1 %vm532_vm2, %v1024_v2 }
 0x596   :  { %2192 = vmatprep.mubr.msk.bf16.mxu1 %vm2329_vm1, %v2328_v34 }
 0x5a2   :  { %v991_v3 = vpop.xlane.xlu0 %990 }
 0x5a3   :  { %2311 = vrcp.f32 %v991_v3 }
 0x5a6   :  { %v997_v4 = vpop.xlane.xlu0 %996 }
 0x5a7   :  { %2313 = vrcp.f32 %v997_v4 }
 0x5aa   :  { %v525_v7 = vpop.permute.xlu0 %524 }
 0x5ab   :  { %v1306_v11 = vsel %vm1028_vm3, %v525_v7, 0 }
 0x5b0   :  { %v2312_v5 = vpop.eup %2311 }
 0x5b1   :  { %v1013_v6 = vmul.f32 %v2312_v5, %v2300_v37  ;;  %v1970_v5 = vld [vmem:[%s2852_s13] ss:$0 sm:$0xff] }
 0x5b3   :  { %v1021_v8 = vpack.c.bf16 %v1013_v6, %v1013_v6 }
 0x5b4   :  { %v2314_v9 = vpop.eup %2313 }
 0x5b5   :  { %2159 = vmatmul.mubr.msk.bf16.vlgmr.msra.gmra.mxu0 %vm532_vm2, %v1021_v8  ;;  %v1015_v12 = vmul.f32 %v2314_v9, %v2302_v39  ;;  %v2267_v39 = vld [vmem:[%s2851_s12 + $0x8] sm:$0xff]  }
 0x5b6   :  { %2169 = vmatpush3.bf16.msra.mxu0 %v1306_v11  ;;  %2170 = vmatprep.mubr.msk.bf16.mxu0 %vm2329_vm1, %v2328_v34 }
 0x5b7   :  { %2180 = vmatprep.subr.bf16.mxu0 %v2328_v34  ;;  %v1023_v13 = vpack.c.bf16 %v1015_v12, %v1015_v12 }
 0x5bd   :  { %2171 = vmatmul.mubr.msk.bf16.vlgmr.msra.gmra.mxu0 %vm532_vm2, %v1023_v13 }
 0x5be   :  { %2184 = vmatprep.mubr.msk.bf16.mxu0 %vm2329_vm1, %v2328_v34  ;;  %2181 = vmatpush3.bf16.msra.mxu0 %v2267_v39  ;;  %v1975_v39 = vld [vmem:[%s2855_s15] ss:$0 sm:$0xff] }
 0x5bf   :  { %2182 = vmatprep.subr.bf16.mxu0 %v2328_v34 }
 0x5c2   :  { %2183 = vmatpush3.bf16.msra.mxu0 %v2268_v42 }
 0x5c3   :  { %2196 = vmatprep.subr.bf16.mxu0 %v2328_v34 }
 0x5cd   :  { %v1066_v10 = vpop.f32.mrf.mxu0 }
 0x5cf   :  { %v2136_v14 = vpop.f32.mrf.mxu0 }
 0x5d1   :  { %v1069_v15 = vpop.f32.mrf.mxu0 }
 0x5d3   :  { %v2137_v16 = vpop.f32.mrf.mxu0 }
 0x5d5   :  { %v1112_v17 = vpop.f32.mrf.mxu1 }
 0x5d7   :  { %v2142_v18 = vpop.f32.mrf.mxu1 }
 0x5d9   :  { %v1115_v19 = vpop.f32.mrf.mxu1 }
 0x5db   :  { %v2143_v20 = vpop.f32.mrf.mxu1 }
 0x640   :  { %v1158_v21 = vpop.f32.mrf.mxu0 }
 0x642   :  { %v2148_v22 = vpop.f32.mrf.mxu0 }
 0x644   :  { %v1161_v23 = vpop.f32.mrf.mxu0  ;;  %v1204_v25 = vpop.f32.mrf.mxu1 }
 0x645   :  { %v2233_v26 = vpack.i.bf16 %v1204_v25, %v1158_v21 }
 0x646   :  { %v2149_v27 = vpop.f32.mrf.mxu0  ;;  %v2154_v28 = vpop.f32.mrf.mxu1 }
 0x647   :  { %2234 = vrot.lane.b32.xlu0 %v2233_v26, %s2333_s1  ;;  %v2270_v26 = vld [vmem:[%s2853_s16] sm:$0xff]  }
 0x648   :  { %v1207_v29 = vpop.f32.mrf.mxu1 }
 0x64a   :  { %v2155_v30 = vpop.f32.mrf.mxu1 }
 0x64d   :  { %v1296_v31 = vpop.f32.mrf.mxu1 }
 0x64f   :  { %v2166_v24 = vpop.f32.mrf.mxu1 }
 0x651   :  { %v1299_v32 = vpop.f32.mrf.mxu1 }
 0x653   :  { %v2167_v33 = vpop.f32.mrf.mxu1 }
 0x655   :  { %v1388_v36 = vpop.f32.mrf.mxu1 }
 0x657   :  { %v2178_v37 = vpop.f32.mrf.mxu1 }
 0x659   :  { %v1391_v38 = vpop.f32.mrf.mxu1 }
 0x65b   :  { %v2179_v41 = vpop.f32.mrf.mxu1 }
 0x675   :  { %v1250_v40 = vpop.f32.mrf.mxu0 }
 0x676   :  { %v2238_v43 = vpack.i.bf16 %v1296_v31, %v1250_v40 }
 0x677   :  { %v2160_v44 = vpop.f32.mrf.mxu0 }
 0x678   :  { %2239 = vrot.lane.b32.xlu1 %v2238_v43, %s2334_s11 }
 0x679   :  { %v1253_v45 = vpop.f32.mrf.mxu0 }
 0x67a   :  { %v2271_v45 = vld [vmem:[%s2856_s18 + $0x18] sm:$0xff]  }
 0x67b   :  { %v2161_v46 = vpop.f32.mrf.mxu0 }
 0x67c   :  { %v2272_v46 = vld [vmem:[%s2856_s18 + $0x10] sm:$0xff]  }
 0x67d   :  { %v1342_v47 = vpop.f32.mrf.mxu0 }
 0x67e   :  { %v2243_v48 = vpack.i.bf16 %v1388_v36, %v1342_v47  ;;  %v1974_v36 = vld [vmem:[%s2854_s14] ss:$0 sm:$0xff]  ;;  %v2273_v47 = vld [vmem:[%s2856_s18 + $0x8] sm:$0xff]  }
 0x67f   :  { %v2172_v49 = vpop.f32.mrf.mxu0 }
 0x680   :  { %2244 = vrot.lane.b32.xlu0 %v2243_v48, %s2335_s4  ;;  %v2274_v48 = vld [vmem:[%s2856_s18] sm:$0xff]  }
 0x681   :  { %v1345_v50 = vpop.f32.mrf.mxu0  ;;  %v1976_v49 = vld [vmem:[%s2857_s17] ss:$0 sm:$0xff] }
 0x683   :  { %v2173_v54 = vpop.f32.mrf.mxu0 }
 0x6b9   :  { %v2235_v55 = vpop.permute.xlu0 %2234 }
 0x6ba   :  { %v2237_v56 = vunpack.i.h.bf16 %v2235_v55  ;;  %v2236_v53 = vunpack.i.l.bf16 %v2235_v55 }
 0x6bc   :  { %v1419_v61 = vsel %vm532_vm2, %v1112_v17, %v2237_v56  ;;  %v1418_v62 = vsel %vm532_vm2, %v1066_v10, %v2236_v53 }
 0x6ea   :  { %v2240_v35 = vpop.permute.xlu1 %2239 }
 0x6eb   :  { %v2242_v57 = vunpack.i.h.bf16 %v2240_v35  ;;  %v2241_v59 = vunpack.i.l.bf16 %v2240_v35 }
 0x6ed   :  { %v1422_v58 = vsel %vm1420_vm4, %v1419_v61, %v2242_v57  ;;  %v1421_v1 = vsel %vm1420_vm4, %v1418_v62, %v2241_v59 }
 0x6f2   :  { %v2245_v60 = vpop.permute.xlu0 %2244 }
 0x6f3   :  { %v2247_v0 = vunpack.i.h.bf16 %v2245_v60  ;;  %v2246_v63 = vunpack.i.l.bf16 %v2245_v60 }
 0x6f5   :  { %v1425_v2 = vsel %vm1423_vm5, %v1422_v58, %v2247_v0  ;;  %v1424_v3 = vsel %vm1423_vm5, %v1421_v1, %v2246_v63 }
 0x6f6   :  { %v1426_v4 = vpack.c.bf16 %v1425_v2, %v1424_v3 }
 0x6f8   :  { %2185 = vmatmul.mubr.msk.bf16.vlgmr.msra.gmra.mxu0 %vm186_vm0, %v1426_v4 }
 0x6f9   :  { %2204 = vmatprep.mubr.msk.bf16.mxu0 %vm2329_vm1, %v2328_v34  ;;  %2197 = vmatpush3.bf16.msra.mxu0 %v2271_v45 }
 0x6fa   :  { %2198 = vmatprep.subr.bf16.mxu0 %v2328_v34 }
 0x6fd   :  { %2199 = vmatpush3.bf16.msra.mxu0 %v2272_v46 }
 0x6fe   :  { %2200 = vmatprep.subr.bf16.mxu0 %v2328_v34 }
 0x701   :  { %2201 = vmatpush3.bf16.msra.mxu0 %v2273_v47 }
 0x702   :  { %2202 = vmatprep.subr.bf16.mxu0 %v2328_v34 }
 0x705   :  { %2203 = vmatpush3.bf16.msra.mxu0 %v2274_v48 }
 0x7b8   :  { %v1487_v6 = vpop.f32.mrf.mxu0 }
 0x7b9   :  { %v1488_v7 = vadd.f32 %v1970_v5, %v1487_v6 }
 0x7ba   :  { %v2186_v8 = vpop.f32.mrf.mxu0 }
 0x7bb   :  { %v1494_v9 = vadd.f32 %v1488_v7, %v2535_v51 }
 0x7bc   :  { %v1490_v11 = vpop.f32.mrf.mxu0 }
 0x7bd   :  { %v1491_v12 = vadd.f32 %v1970_v5, %v1490_v11  ;;  %v1498_v13 = vsel %vm186_vm0, %v1494_v9, 0.0 }
 0x7be   :  { %1499 = vadd.xlane.f32.xlu1 %v1498_v13  ;;  %v2187_v10 = vpop.f32.mrf.mxu0  ;;  %v1980_v13 = vld [vmem:[%s2858_s19] ss:$0 sm:$0xff] }
 0x7bf   :  { %v1495_v14 = vadd.f32 %v1491_v12, %v2537_v52  ;;  %v2269_v52 = vld [vmem:[%s2853_s16 + $0x8] sm:$0xff]  }
 0x7c0   :  { %2189 = vmatpush3.bf16.msra.mxu1 %v2269_v52 }
 0x7c1   :  { %v1501_v15 = vsel %vm186_vm0, %v1495_v14, 0.0  ;;  %2190 = vmatprep.subr.bf16.mxu1 %v2328_v34 }
 0x7c2   :  { %1502 = vadd.xlane.f32.xlu0 %v1501_v15 }
 0x7c4   :  { %2191 = vmatpush3.bf16.msra.mxu1 %v2270_v26 }
 0x7c5   :  { %2208 = vmatprep.subr.bf16.mxu1 %v2328_v34 }
 0x847   :  { %v1500_v16 = vpop.xlane.xlu1 %1499 }
 0x848   :  { %v1504_v17 = vmul.f32 0.03125, %v1500_v16 }
 0x84a   :  { %v1506_v18 = vsub.f32 %v1494_v9, %v1504_v17 }
 0x84b   :  { %v1503_v19 = vpop.xlane.xlu0 %1502 }
 0x84c   :  { %v1505_v20 = vmul.f32 0.03125, %v1503_v19  ;;  %v1508_v21 = vmul.f32 %v1506_v18, %v1506_v18 }
 0x84e   :  { %v1507_v22 = vsub.f32 %v1495_v14, %v1505_v20  ;;  %v1510_v51 = vsel %vm186_vm0, %v1508_v21, 0.0 }
 0x84f   :  { %1511 = vadd.xlane.f32.xlu0 %v1510_v51 }
 0x850   :  { %v1509_v23 = vmul.f32 %v1507_v22, %v1507_v22 }
 0x852   :  { %v1513_v25 = vsel %vm186_vm0, %v1509_v23, 0.0 }
 0x853   :  { %1514 = vadd.xlane.f32.xlu0 %v1513_v25 }
 0x8d8   :  { %v1512_v27 = vpop.xlane.xlu0 %1511 }
 0x8d9   :  { %v1516_v28 = vmul.f32 0.03125, %v1512_v27 }
 0x8db   :  { %v1518_v29 = vadd.f32 1e-05, %v1516_v28 }
 0x8dc   :  { %v1515_v30 = vpop.xlane.xlu0 %1514 }
 0x8dd   :  { %2315 = vrsqrt.f32 %v1518_v29  ;;  %v1517_v31 = vmul.f32 0.03125, %v1515_v30 }
 0x8df   :  { %v1519_v24 = vadd.f32 1e-05, %v1517_v31 }
 0x8e1   :  { %2317 = vrsqrt.f32 %v1519_v24  ;;  %v2275_v24 = vld [vmem:[%s2859_s22 + $0x8] sm:$0xff]  }
 0x8ea   :  { %v2316_v32 = vpop.eup %2315 }
 0x8eb   :  { %v1522_v33 = vmul.f32 %v2316_v32, %v1506_v18  ;;  %v2276_v32 = vld [vmem:[%s2859_s22] sm:$0xff]  }
 0x8ed   :  { %v1530_v41 = vmul.f32 %v1974_v36, %v1522_v33 }
 0x8ee   :  { %v2318_v37 = vpop.eup %2317 }
 0x8ef   :  { %v1523_v38 = vmul.f32 %v2318_v37, %v1507_v22  ;;  %v1538_v42 = vadd.f32 %v1975_v39, %v1530_v41 }
 0x8f1   :  { %v1531_v40 = vmul.f32 %v1974_v36, %v1523_v38 }
 0x8f3   :  { %v1539_v43 = vadd.f32 %v1975_v39, %v1531_v40 }
 0x8f5   :  { %v1540_v44 = vpack.c.bf16 %v1539_v43, %v1538_v42 }
 0x8f7   :  { %2193 = vmatmul.mubr.msk.bf16.vlgmr.msra.gmra.mxu1 %vm186_vm0, %v1540_v44  ;;  %v1987_v44 = vld [vmem:[%s2861_s21] ss:$0 sm:$0xff] }
 0x8f8   :  { %2212 = vmatprep.mubr.msk.bf16.mxu1 %vm2329_vm1, %v2328_v34  ;;  %2209 = vmatpush3.bf16.msra.mxu1 %v2275_v24 }
 0x8f9   :  { %2210 = vmatprep.subr.bf16.mxu1 %v2328_v34 }
 0x8fc   :  { %2211 = vmatpush3.bf16.msra.mxu1 %v2276_v32 }
 0x8fd   :  { %2216 = vmatprep.subr.bf16.mxu1 %v2328_v34 }
 0x9b7   :  { %v1601_v50 = vpop.f32.mrf.mxu1 }
 0x9b8   :  { %v1602_v54 = vadd.f32 %v1976_v49, %v1601_v50 }
 0x9b9   :  { %v2194_v55 = vpop.f32.mrf.mxu1 }
 0x9ba   :  { %v1610_v35 = vmul.f32 0.044715, %v1602_v54  ;;  %v1608_v6 = vmul.f32 0.5, %v1602_v54 }
 0x9bb   :  { %v1604_v56 = vpop.f32.mrf.mxu1 }
 0x9bc   :  { %v1612_v53 = vmul.f32 %v1610_v35, %v1602_v54  ;;  %v1605_v57 = vadd.f32 %v1976_v49, %v1604_v56 }
 0x9bd   :  { %v2195_v59 = vpop.f32.mrf.mxu1 }
 0x9be   :  { %v1614_v60 = vmul.f32 %v1612_v53, %v1602_v54  ;;  %v1611_v61 = vmul.f32 0.044715, %v1605_v57  ;;  %v1609_v7 = vmul.f32 0.5, %v1605_v57 }
 0x9c0   :  { %v1616_v62 = vadd.f32 %v1614_v60, %v1602_v54  ;;  %v1613_v0 = vmul.f32 %v1611_v61, %v1605_v57 }
 0x9c2   :  { %v1618_v63 = vmul.f32 0.7978846, %v1616_v62  ;;  %v1615_v58 = vmul.f32 %v1613_v0, %v1605_v57 }
 0x9c4   :  { %2319 = vtanh.f32 %v1618_v63  ;;  %v1617_v1 = vadd.f32 %v1615_v58, %v1605_v57 }
 0x9c6   :  { %v1619_v2 = vmul.f32 0.7978846, %v1617_v1 }
 0x9c8   :  { %2321 = vtanh.f32 %v1619_v2 }
 0x9d1   :  { %v2320_v3 = vpop.eup %2319 }
 0x9d2   :  { %v1622_v4 = vadd.f32 1.0, %v2320_v3 }
 0x9d4   :  { %v1624_v9 = vmul.f32 %v1622_v4, %v1608_v6 }
 0x9d5   :  { %v2322_v5 = vpop.eup %2321 }
 0x9d6   :  { %v1623_v8 = vadd.f32 1.0, %v2322_v5 }
 0x9d8   :  { %v1625_v11 = vmul.f32 %v1623_v8, %v1609_v7  ;;  %v2277_v8 = vld [vmem:[%s2862_s24 + $0x8] sm:$0xff]  }
 0x9da   :  { %v1626_v12 = vpack.c.bf16 %v1625_v11, %v1624_v9  ;;  %v2278_v9 = vld [vmem:[%s2862_s24] sm:$0xff]   ;;  %v31_v11 = vstv %s2863_s25 }
 0x9db   :  { %32 = vst [vmem:[#allocation2] sm:$0x1] %v31_v11 }
 0x9dc   :  { %2205 = vmatmul.mubr.msk.bf16.vlgmr.msra.gmra.mxu0 %vm1666_vm6, %v1626_v12  ;;  %v1988_v12 = vld [vmem:[%s2864_s23] ss:$0 sm:$0xff] }
 0xa9c   :  { %v1704_v10 = vpop.f32.mrf.mxu0 }
 0xa9d   :  { %v1705_v14 = vadd.f32 %v1980_v13, %v1704_v10 }
 0xa9e   :  { %v2206_v15 = vpop.f32.mrf.mxu0 }
 0xa9f   :  { %v1711_v16 = vadd.f32 %v1705_v14, %v1538_v42  ;;  %v1986_v42 = vld [vmem:[%s2860_s20] ss:$0 sm:$0xff] }
 0xaa0   :  { %v1707_v17 = vpop.f32.mrf.mxu0 }
 0xaa1   :  { %v1708_v18 = vadd.f32 %v1980_v13, %v1707_v17  ;;  %v1715_v19 = vsel %vm186_vm0, %v1711_v16, 0.0 }
 0xaa2   :  { %1716 = vadd.xlane.f32.xlu1 %v1715_v19  ;;  %v2207_v20 = vpop.f32.mrf.mxu0 }
 0xaa3   :  { %v1712_v21 = vadd.f32 %v1708_v18, %v1539_v43  ;;  %v1992_v18 = vld [vmem:[#allocation2] ss:$0 sm:$0xff] }
 0xaa5   :  { %v1718_v22 = vsel %vm186_vm0, %v1712_v21, 0.0 }
 0xaa6   :  { %1719 = vadd.xlane.f32.xlu0 %v1718_v22 }
 0xb2b   :  { %v1717_v51 = vpop.xlane.xlu1 %1716 }
 0xb2c   :  { %v1721_v23 = vmul.f32 0.03125, %v1717_v51 }
 0xb2e   :  { %v1723_v25 = vsub.f32 %v1711_v16, %v1721_v23 }
 0xb2f   :  { %v1720_v52 = vpop.xlane.xlu0 %1719 }
 0xb30   :  { %v1722_v26 = vmul.f32 0.03125, %v1720_v52  ;;  %v1725_v27 = vmul.f32 %v1723_v25, %v1723_v25 }
 0xb32   :  { %v1724_v28 = vsub.f32 %v1712_v21, %v1722_v26  ;;  %v1727_v29 = vsel %vm186_vm0, %v1725_v27, 0.0 }
 0xb33   :  { %1728 = vadd.xlane.f32.xlu1 %v1727_v29 }
 0xb34   :  { %v1726_v30 = vmul.f32 %v1724_v28, %v1724_v28 }
 0xb36   :  { %v1730_v31 = vsel %vm186_vm0, %v1726_v30, 0.0 }
 0xb37   :  { %1731 = vadd.xlane.f32.xlu0 %v1730_v31 }
 0xbbc   :  { %v1729_v33 = vpop.xlane.xlu1 %1728 }
 0xbbd   :  { %v1733_v36 = vmul.f32 0.03125, %v1729_v33 }
 0xbbf   :  { %v1735_v37 = vadd.f32 1e-05, %v1733_v36 }
 0xbc0   :  { %v1732_v38 = vpop.xlane.xlu0 %1731 }
 0xbc1   :  { %2323 = vrsqrt.f32 %v1735_v37  ;;  %v1734_v41 = vmul.f32 0.03125, %v1732_v38 }
 0xbc3   :  { %v1736_v39 = vadd.f32 1e-05, %v1734_v41 }
 0xbc5   :  { %2325 = vrsqrt.f32 %v1736_v39 }
 0xbce   :  { %v2324_v40 = vpop.eup %2323 }
 0xbcf   :  { %v1739_v43 = vmul.f32 %v2324_v40, %v1723_v25 }
 0xbd1   :  { %v1747_v45 = vmul.f32 %v1986_v42, %v1739_v43 }
 0xbd2   :  { %v2326_v46 = vpop.eup %2325 }
 0xbd3   :  { %v1755_v47 = vadd.f32 %v1987_v44, %v1747_v45  ;;  %v1740_v48 = vmul.f32 %v2326_v46, %v1724_v28 }
 0xbd5   :  { %v1757_v49 = vsel %vm186_vm0, %v1755_v47, -inf  ;;  %v1748_v50 = vmul.f32 %v1986_v42, %v1740_v48 }
 0xbd6   :  { %v1758_v54 = vrot.slane %v1757_v49, 4 }
 0xbd7   :  { %v1756_v55 = vadd.f32 %v1987_v44, %v1748_v50 }
 0xbd8   :  { %v1759_v35 = vmax.f32 %v1757_v49, %v1758_v54 }
 0xbd9   :  { %v1764_v56 = vsel %vm186_vm0, %v1756_v55, -inf }
 0xbda   :  { %v1765_v53 = vrot.slane %v1764_v56, 4  ;;  %v1760_v57 = vrot.slane %v1759_v35, 2 }
 0xbdc   :  { %v1761_v59 = vmax.f32 %v1759_v35, %v1760_v57  ;;  %v1766_v60 = vmax.f32 %v1764_v56, %v1765_v53 }
 0xbde   :  { %v1762_v61 = vrot.slane %v1761_v59, 1  ;;  %v1767_v62 = vrot.slane %v1766_v60, 2 }
 0xbe0   :  { %v1763_v0 = vmax.f32 %v1761_v59, %v1762_v61  ;;  %v1768_v63 = vmax.f32 %v1766_v60, %v1767_v62 }
 0xbe2   :  { %v1769_v58 = vrot.slane %v1768_v63, 1  ;;  %v1771_v2 = vpack.c.bf16 %v1763_v0, %v1763_v0 }
 0xbe4   :  { %v1770_v1 = vmax.f32 %v1768_v63, %v1769_v58  ;;  %v1786_v4 = vunpack.c.l.b16 %v1771_v2 }
 0xbe6   :  { %v1772_v3 = vpack.c.bf16 %v1770_v1, %v1770_v1 }
 0xbe8   :  { %v1787_v5 = vunpack.c.l.b16 %v1772_v3 }
 0xbea   :  { %v1789_v6 = vsel %vm1788_vm7, %v1787_v5, %v1786_v4 }
 0xbeb   :  { %v1790_v7 = vpack.c.b16 %v1789_v6, %v1789_v6 }
 0xbed   :  { %2213 = vmatmul.mubr.msk.bf16.vlgmr.msra.gmra.mxu1 %vm186_vm0, %v1790_v7 }
 0xbee   :  { %2220 = vmatprep.mubr.msk.bf16.mxu1 %vm2329_vm1, %v2328_v34  ;;  %2217 = vmatpush3.bf16.msra.mxu1 %v2277_v8 }
 0xbef   :  { %2218 = vmatprep.subr.bf16.mxu1 %v2328_v34 }
 0xbf2   :  { %2219 = vmatpush3.bf16.msra.mxu1 %v2278_v9 }
 0xcad   :  { %v1840_v13 = vpop.f32.mrf.mxu1 }
 0xcae   :  { %v1841_v10 = vadd.f32 %v1988_v12, %v1840_v13 }
 0xcaf   :  { %v2214_v14 = vpop.f32.mrf.mxu1 }
 0xcb0   :  { %v1846_v15 = vmax.f32 %v1841_v10, 0.0 }
 0xcb1   :  { %v1843_v16 = vpop.f32.mrf.mxu1 }
 0xcb2   :  { %v1847_v34 = vpack.c.bf16 %v1846_v15, %v1846_v15 }
 0xcb3   :  { %v2215_v17 = vpop.f32.mrf.mxu1 }
 0xcb4   :  { %2221 = vmatmul.mubr.msk.bf16.vlgmr.msra.gmra.mxu1 %vm186_vm0, %v1847_v34 }
 0xd74   :  { %v1908_v19 = vpop.f32.mrf.mxu1 }
 0xd75   :  { %v1909_v20 = vadd.f32 %v1992_v18, %v1908_v19 }
 0xd76   :  { %v2222_v21 = vpop.f32.mrf.mxu1 }
 0xd77   :  { %1915 = vst.msk [vmem:[%s2865_s26] sm:$0x3] %vm1914_vm8, %v1909_v20 }
 0xd78   :  { %v1911_v22 = vpop.f32.mrf.mxu1 }
 0xd7a   :  { %v2223_v51 = vpop.f32.mrf.mxu1 }

// kernel: tpu_custom_call.1
= control target key start
LH: loop header
LB: loop body
LE: loop exit
PB: predicated region body
PF: predicated region fallthrough
CT: control target
= control target key end

     0   :  { %v2327_v0 = vmov 0   ;;  %vm186_vm0 = vcmask 261120   ;;  %v2328_v34 = vmov 0.0   ;;  %vm2329_vm1 = vmmov 0   ;;  %s2330_s30 = smov 120   ;;  %s2839_s2 = inlined_call_operand.vmem [shape: bf16[160,32], index: 2, kind: input, shape index: {}]   ;;  %s2840_s0 = inlined_call_operand.vmem [shape: bf16[2,8,160], index: 0, kind: input, shape index: {}]   ;;  %s2841_s3 = inlined_call_operand.vmem [shape: f32[1,32], index: 3, kind: input, shape index: {}]   ;;  %s2842_s6 = inlined_call_operand.vmem [shape: bf16[32,32], index: 6, kind: input, shape index: {}]   ;;  %s2843_s8 = inlined_call_operand.vmem [shape: bf16[32,32], index: 8, kind: input, shape index: {}]   ;;  %s2844_s10 = inlined_call_operand.vmem [shape: bf16[32,32], index: 10, kind: input, shape index: {}]   ;;  %s2845_s4 = inlined_call_operand.vmem [shape: f32[1,32], index: 4, kind: input, shape index: {}]   ;;  %s2846_s5 = inlined_call_operand.vmem [shape: f32[1,32], index: 5, kind: input, shape index: {}]   ;;  %s2847_s7 = inlined_call_operand.vmem [shape: f32[1,32], index: 7, kind: input, shape index: {}]   ;;  %s2848_s9 = inlined_call_operand.vmem [shape: f32[1,32], index: 9, kind: input, shape index: {}]   ;;  %s2849_s11 = inlined_call_operand.vmem [shape: f32[1,32], index: 11, kind: input, shape index: {}]   ;;  %s2850_s1 = inlined_call_operand.vmem [shape: f32[2,1,8], index: 1, kind: input, shape index: {}]   ;;  %s2851_s12 = inlined_call_operand.vmem [shape: bf16[32,32], index: 12, kind: input, shape index: {}]   ;;  %s2852_s13 = inlined_call_operand.vmem [shape: f32[1,32], index: 13, kind: input, shape index: {}]   ;;  %s2853_s16 = inlined_call_operand.vmem [shape: bf16[32,64], index: 16, kind: input, shape index: {}]   ;;  %s2854_s14 = inlined_call_operand.vmem [shape: f32[1,32], index: 14, kind: input, shape index: {}]   ;;  %s2855_s15 = inlined_call_operand.vmem [shape: f32[1,32], index: 15, kind: input, shape index: {}]   ;;  %s2856_s18 = inlined_call_operand.vmem [shape: bf16[64,32], index: 18, kind: input, shape index: {}]   ;;  %s2857_s17 = inlined_call_operand.vmem [shape: f32[1,64], index: 17, kind: input, shape index: {}]   ;;  %s2858_s19 = inlined_call_operand.vmem [shape: f32[1,32], index: 19, kind: input, shape index: {}]   ;;  %s2859_s22 = inlined_call_operand.vmem [shape: bf16[32,32], index: 22, kind: input, shape index: {}]   ;;  %s2860_s20 = inlined_call_operand.vmem [shape: f32[1,32], index: 20, kind: input, shape index: {}]   ;;  %s2861_s21 = inlined_call_operand.vmem [shape: f32[1,32], index: 21, kind: input, shape index: {}]   ;;  %s2862_s24 = inlined_call_operand.vmem [shape: bf16[32,1], index: 24, kind: input, shape index: {}]   ;;  %s2863_s25 = inlined_call_operand.<no memory space> [shape: f32[1,1], index: 25, kind: input, shape index: {}]   ;;  %s2864_s23 = inlined_call_operand.vmem [shape: f32[1,32], index: 23, kind: input, shape index: {}]   ;;  %s2865_s26 = inlined_call_operand.vmem [shape: f32[2,1], index: 26, kind: output, shape index: {}]  }
   0x1   :  { %2871 = sst [smem:[#allocation3_spill]] %s2839_s2  ;;  %190 = vmatprep.subr.bf16.mxu0 %v2327_v0  ;;  %2060 = vmatprep.subr.bf16.mxu1 %v2328_v34  ;;  %vm532_vm2 = vcmask 64512   ;;  %vm1028_vm3 = vcmask 1043456   ;;  %vm1420_vm4 = vcmask 130048   ;;  %vm1423_vm5 = vcmask 195584  }
   0x2   :  { %2872 = sst [smem:[#allocation4_spill]] %s2840_s0  ;;  %2064 = vmatprep.mubr.msk.bf16.mxu1 %vm2329_vm1, %v2328_v34  ;;  %vm1666_vm6 = vcmask 523264   ;;  %vm1788_vm7 = vcmask 1041409   ;;  %vm1914_vm8 = vcmask 1024  }
   0x3   :  { %2873 = sst [smem:[#allocation5_spill]] %s2841_s3 }
   0x4   :  { %2874 = sst [smem:[#allocation6_spill]] %s2842_s6 }
   0x5   :  { %2875 = sst [smem:[#allocation7_spill]] %s2843_s8 }
   0x6   :  { %2876 = sst [smem:[#allocation8_spill]] %s2844_s10 }
   0x7   :  { %2877 = sst [smem:[#allocation9_spill]] %s2845_s4 }
   0x8   :  { %2878 = sst [smem:[#allocation10_spill]] %s2846_s5 }
   0x9   :  { %2879 = sst [smem:[#allocation11_spill]] %s2847_s7 }
   0xa   :  { %2880 = sst [smem:[#allocation12_spill]] %s2848_s9 }
   0xb   :  { %2881 = sst [smem:[#allocation13_spill]] %s2849_s11  ;;  %s2334_s11 = smov 16  }
   0xc   :  { %s2882_s6 = sld [smem:[#allocation3_spill]] }
   0xd   :  { %s2883_s10 = sld [smem:[#allocation4_spill]] }
   0xe   :  { %s2884_s5 = sld [smem:[#allocation5_spill]] }
   0xf   :  { %s2885_s27 = sld [smem:[#allocation6_spill]] }
  0x10   :  { %s2886_s2 = sld [smem:[#allocation9_spill]] }
  0x11   :  { %s2887_s3 = sld [smem:[#allocation10_spill]] }
  0x12   :  { %v2248_v1 = vld [vmem:[%s2882_s6 + $0x38] sm:$0xff]   ;;  %v2249_v2 = vld [vmem:[%s2882_s6 + $0x30] sm:$0xff]   ;;  %v2250_v3 = vld [vmem:[%s2882_s6 + $0x28] sm:$0xff]   ;;  %s2888_s0 = sld [smem:[#allocation7_spill]] }
  0x13   :  { %191 = vmatpush1.bf16.msra.mxu0 %v2248_v1  ;;  %v2251_v4 = vld [vmem:[%s2882_s6 + $0x20] sm:$0xff]   ;;  %v2252_v6 = vld [vmem:[%s2882_s6 + $0x18] sm:$0xff]   ;;  %v2253_v7 = vld [vmem:[%s2882_s6 + $0x10] sm:$0xff]   ;;  %s2889_s28 = sld [smem:[#allocation8_spill]] }
  0x14   :  { %192 = vmatprep.subr.bf16.mxu0 %v2327_v0  ;;  %v2260_v5 = vld [vmem:[%s2883_s10 + $0x4] ss:$8 sps:$4 sm:$0xff]   ;;  %v2258_v12 = vld [vmem:[%s2883_s10] ss:$8 sps:$4 sm:$0xff]   ;;  %s2890_s9 = sld [smem:[#allocation11_spill]] }
  0x15   :  { %1933 = vmatprep.mubr.msk.bf16.mxu0 %vm186_vm0, %v2260_v5  ;;  %v2254_v8 = vld [vmem:[%s2882_s6 + $0x8] sm:$0xff]   ;;  %v2255_v9 = vld [vmem:[%s2882_s6] sm:$0xff]   ;;  %s2891_s4 = sld [smem:[#allocation12_spill]] }
  0x16   :  { %v2256_v10 = vld [vmem:[%s2882_s6 + $0x48] sm:$0xff]   ;;  %v2257_v11 = vld [vmem:[%s2882_s6 + $0x40] sm:$0xff]  }
  0x17   :  { %193 = vmatpush1.bf16.msra.mxu0 %v2249_v2  ;;  %v1920_v13 = vld [vmem:[%s2884_s5] ss:$0 sm:$0xff]  ;;  %v2261_v35 = vld [vmem:[%s2885_s27 + $0x8] sm:$0xff]   ;;  %s2332_s5 = smov 104  }
  0x18   :  { %194 = vmatprep.subr.bf16.mxu0 %v2327_v0  ;;  %2061 = vmatpush3.bf16.msra.mxu1 %v2261_v35  ;;  %v2262_v36 = vld [vmem:[%s2885_s27] sm:$0xff]   ;;  %v2263_v53 = vld [vmem:[%s2888_s0 + $0x8] sm:$0xff]   ;;  %s2892_s27 = sld [smem:[#allocation13_spill]] }
  0x19   :  { %2062 = vmatprep.subr.bf16.mxu1 %v2328_v34  ;;  %v1934_v45 = vld [vmem:[%s2886_s2] ss:$0 sm:$0xff]  ;;  %v2265_v56 = vld [vmem:[%s2889_s28 + $0x8] sm:$0xff]  }
  0x1a   :  { %v1935_v49 = vld [vmem:[%s2887_s3] ss:$0 sm:$0xff] }
  0x1b   :  { %195 = vmatpush1.bf16.msra.mxu0 %v2250_v3  ;;  %v2264_v55 = vld [vmem:[%s2888_s0] sm:$0xff]   ;;  %s2331_s0 = smov 112  }
  0x1c   :  { %196 = vmatprep.subr.bf16.mxu0 %v2327_v0  ;;  %2063 = vmatpush3.bf16.msra.mxu1 %v2262_v36  ;;  %v2266_v57 = vld [vmem:[%s2889_s28] sm:$0xff]  }
  0x1d   :  { %2068 = vmatprep.subr.bf16.mxu1 %v2328_v34  ;;  %v1936_v58 = vld [vmem:[%s2890_s9] ss:$0 sm:$0xff] }
  0x1e   :  { %v1940_v1 = vld [vmem:[%s2891_s4] ss:$0 sm:$0xff]  ;;  %s2335_s4 = smov 24  }
  0x1f   :  { %197 = vmatpush1.bf16.msra.mxu0 %v2251_v4 }
  0x20   :  { %198 = vmatprep.subr.bf16.mxu0 %v2327_v0 }
  0x23   :  { %199 = vmatpush1.bf16.msra.mxu0 %v2252_v6 }
  0x24   :  { %200 = vmatprep.subr.bf16.mxu0 %v2327_v0 }
  0x27   :  { %201 = vmatpush1.bf16.msra.mxu0 %v2253_v7 }
  0x28   :  { %202 = vmatprep.subr.bf16.mxu0 %v2327_v0 }
  0x2b   :  { %203 = vmatpush1.bf16.msra.mxu0 %v2254_v8 }
  0x2c   :  { %204 = vmatprep.subr.bf16.mxu0 %v2327_v0 }
  0x2f   :  { %205 = vmatpush1.bf16.msra.mxu0 %v2255_v9 }
  0x30   :  { %218 = vmatprep.subr.bf16.mxu0 %v2327_v0 }
  0x33   :  { %219 = vmatpush2.bf16.msra.mxu0 %v2256_v10 }
  0x34   :  { %220 = vmatprep.subr.bf16.mxu0 %v2327_v0 }
  0x37   :  { %221 = vmatpush2.bf16.msra.mxu0 %v2257_v11 }
  0x38   :  { %2096 = vmatprep.subr.bf16.mxu0 %v2328_v34 }
  0x3a   :  { %223 = vmatmul.mubr.bf16.vlgmr.msra.gmra.mxu0 %v2258_v12 }
  0x3b   :  { %2098 = vmatprep.mubr.msk.bf16.mxu0 %vm2329_vm1, %v2328_v34 }
  0xfa   :  { %v224_v14 = vpop.f32.mrf.mxu0 }
  0xfb   :  { %v225_v15 = vadd.f32 %v1920_v13, %v224_v14 }
  0xfc   :  { %v226_v16 = vpop.f32.mrf.mxu0 }
  0xfd   :  { %v231_v17 = vmax.f32 %v225_v15, 0.0 }
  0xfe   :  { %v227_v18 = vpop.f32.mrf.mxu0 }
  0xff   :  { %v228_v19 = vadd.f32 %v1920_v13, %v227_v18  ;;  %v235_v20 = vsel %vm186_vm0, %v231_v17, 0.0 }
 0x100   :  { %v229_v21 = vpop.f32.mrf.mxu0  ;;  %236 = vadd.xlane.f32.xlu0 %v235_v20 }
 0x101   :  { %v232_v22 = vmax.f32 %v228_v19, 0.0 }
 0x103   :  { %v238_v23 = vsel %vm186_vm0, %v232_v22, 0.0 }
 0x104   :  { %239 = vadd.xlane.f32.xlu0 %v238_v23 }
 0x189   :  { %v237_v24 = vpop.xlane.xlu0 %236 }
 0x18a   :  { %v242_v25 = vmul.f32 0.03125, %v237_v24 }
 0x18c   :  { %v244_v26 = vsub.f32 %v231_v17, %v242_v25 }
 0x18d   :  { %v240_v27 = vpop.xlane.xlu0 %239 }
 0x18e   :  { %v243_v28 = vmul.f32 0.03125, %v240_v27  ;;  %v246_v29 = vmul.f32 %v244_v26, %v244_v26 }
 0x190   :  { %v245_v30 = vsub.f32 %v232_v22, %v243_v28  ;;  %v248_v31 = vsel %vm186_vm0, %v246_v29, 0.0  ;;  %v1944_v28 = vld [vmem:[%s2892_s27] ss:$0 sm:$0xff] }
 0x191   :  { %249 = vadd.xlane.f32.xlu1 %v248_v31 }
 0x192   :  { %v247_v32 = vmul.f32 %v245_v30, %v245_v30 }
 0x194   :  { %v251_v33 = vsel %vm186_vm0, %v247_v32, 0.0 }
 0x195   :  { %252 = vadd.xlane.f32.xlu1 %v251_v33 }
 0x21a   :  { %v250_v37 = vpop.xlane.xlu1 %249 }
 0x21b   :  { %v254_v38 = vmul.f32 0.03125, %v250_v37 }
 0x21d   :  { %v256_v39 = vadd.f32 1e-05, %v254_v38 }
 0x21e   :  { %v253_v40 = vpop.xlane.xlu1 %252 }
 0x21f   :  { %2279 = vrsqrt.f32 %v256_v39  ;;  %v255_v41 = vmul.f32 0.03125, %v253_v40 }
 0x221   :  { %v257_v42 = vadd.f32 1e-05, %v255_v41 }
 0x223   :  { %2281 = vrsqrt.f32 %v257_v42 }
 0x22c   :  { %v2280_v43 = vpop.eup %2279 }
 0x22d   :  { %v260_v44 = vmul.f32 %v2280_v43, %v244_v26 }
 0x22f   :  { %v268_v48 = vmul.f32 %v1934_v45, %v260_v44  ;;  %v911_v44 = vlaneseq }
 0x230   :  { %v2282_v46 = vpop.eup %2281 }
 0x231   :  { %v261_v47 = vmul.f32 %v2282_v46, %v245_v30  ;;  %v2535_v51 = vadd.f32 %v1935_v49, %v268_v48 }
 0x233   :  { %v269_v50 = vmul.f32 %v1934_v45, %v261_v47  ;;  %v88_v45 = vld [vmem:[%s2850_s1] sm:$0x1]  ;;  %v912_v47 = vshrl.u32 %v911_v44, 7 }
 0x234   :  { %v528_v46 = vsub.f32 1.0, %v88_v45 }
 0x235   :  { %v2537_v52 = vadd.f32 %v1935_v49, %v269_v50  ;;  %v913_v49 = vsub.s32 0, %v912_v47  ;;  %v89_v50 = vld [vmem:[%s2850_s1 + $0x1] sm:$0x1]  ;;  %s2333_s1 = smov 8  }
 0x236   :  { %v530_v48 = vmul.f32 -1e+09, %v528_v46 }
 0x237   :  { %v278_v54 = vpack.c.bf16 %v2537_v52, %v2535_v51 }
 0x239   :  { %2065 = vmatmul.mubr.msk.bf16.vlgmr.msra.gmra.mxu1 %vm186_vm0, %v278_v54 }
 0x23a   :  { %2069 = vmatpush3.bf16.msra.mxu1 %v2263_v53  ;;  %2072 = vmatprep.mubr.msk.bf16.mxu1 %vm2329_vm1, %v2328_v34  ;;  %v914_v53 = vrot.slane %v530_v48, %v913_v49 }
 0x23b   :  { %2070 = vmatprep.subr.bf16.mxu1 %v2328_v34 }
 0x23e   :  { %2071 = vmatpush3.bf16.msra.mxu1 %v2264_v55 }
 0x23f   :  { %2076 = vmatprep.subr.bf16.mxu1 %v2328_v34 }
 0x241   :  { %2073 = vmatmul.mubr.msk.bf16.vlgmr.msra.gmra.mxu1 %vm186_vm0, %v278_v54 }
 0x242   :  { %2077 = vmatpush3.bf16.msra.mxu1 %v2265_v56  ;;  %2080 = vmatprep.mubr.msk.bf16.mxu1 %vm2329_vm1, %v2328_v34 }
 0x243   :  { %2078 = vmatprep.subr.bf16.mxu1 %v2328_v34 }
 0x246   :  { %2079 = vmatpush3.bf16.msra.mxu1 %v2266_v57 }
 0x247   :  { %2084 = vmatprep.subr.bf16.mxu1 %v2328_v34 }
 0x249   :  { %2081 = vmatmul.mubr.msk.bf16.vlgmr.msra.gmra.mxu1 %vm186_vm0, %v278_v54  ;;  %v529_v54 = vsub.f32 1.0, %v89_v50 }
 0x24a   :  { %2086 = vmatprep.mubr.msk.bf16.mxu1 %vm2329_vm1, %v2328_v34 }
 0x2f9   :  { %v339_v59 = vpop.f32.mrf.mxu1 }
 0x2fa   :  { %v340_v60 = vadd.f32 %v1936_v58, %v339_v59  ;;  %v531_v59 = vmul.f32 -1e+09, %v529_v54 }
 0x2fb   :  { %v2066_v61 = vpop.f32.mrf.mxu1 }
 0x2fc   :  { %v1996_v62 = vpack.c.bf16 %v340_v60, %v340_v60 }
 0x2fd   :  { %v342_v63 = vpop.f32.mrf.mxu1 }
 0x2fe   :  { %480 = vrot.lane.b32.xlu1 %v1996_v62, %s2330_s30  ;;  %v343_v11 = vadd.f32 %v1936_v58, %v342_v63  ;;  %v918_v63 = vrot.slane %v531_v59, %v913_v49 }
 0x2ff   :  { %v2067_v0 = vpop.f32.mrf.mxu1 }
 0x300   :  { %v1997_v14 = vpack.c.bf16 %v343_v11, %v343_v11 }
 0x301   :  { %v403_v2 = vpop.f32.mrf.mxu1 }
 0x302   :  { %v404_v3 = vadd.f32 %v1940_v1, %v403_v2 }
 0x303   :  { %v2074_v4 = vpop.f32.mrf.mxu1 }
 0x304   :  { %v1998_v5 = vpack.c.bf16 %v404_v3, %v404_v3 }
 0x305   :  { %v406_v6 = vpop.f32.mrf.mxu1 }
 0x306   :  { %v407_v7 = vadd.f32 %v1940_v1, %v406_v6  ;;  %498 = vrot.lane.b32.xlu0 %v1998_v5, %s2330_s30  ;;  %v537_v8 = vsel %vm532_vm2, %v1998_v5, 0 }
 0x307   :  { %v2075_v9 = vpop.f32.mrf.mxu1  ;;  %2085 = vmatpush3.bf16.xpose.msra.mxu1 %v537_v8 }
 0x308   :  { %v1999_v10 = vpack.c.bf16 %v407_v7, %v407_v7  ;;  %2090 = vmatprep.subr.bf16.mxu1 %v2328_v34 }
 0x309   :  { %v467_v12 = vpop.f32.mrf.mxu1 }
 0x30a   :  { %502 = vrot.lane.b32.xlu0 %v1998_v5, %s2331_s0  ;;  %500 = vrot.lane.b32.xlu1 %v1999_v10, %s2330_s30  ;;  %v583_v16 = vsel %vm532_vm2, %v1999_v10, 0  ;;  %v468_v31 = vadd.f32 %v1944_v28, %v467_v12 }
 0x30b   :  { %v2082_v13 = vpop.f32.mrf.mxu1 }
 0x30c   :  { %v2616_v35 = vpack.c.bf16 %v468_v31, %v468_v31 }
 0x30d   :  { %v470_v15 = vpop.f32.mrf.mxu1 }
 0x30e   :  { %484 = vrot.lane.b32.xlu0 %v1996_v62, %s2331_s0  ;;  %2087 = vmatmul.mubr.msk.bf16.vlgmr.msra.gmra.mxu1 %vm532_vm2, %v1996_v62  ;;  %v471_v37 = vadd.f32 %v1944_v28, %v470_v15  ;;  %v1030_v40 = vsel %vm1028_vm3, %v2616_v35, 0 }
 0x30f   :  { %482 = vrot.lane.b32.xlu1 %v1997_v14, %s2330_s30  ;;  %v2083_v17 = vpop.f32.mrf.mxu1  ;;  %2091 = vmatpush3.bf16.xpose.msra.mxu1 %v583_v16 }
 0x310   :  { %2092 = vmatprep.mubr.msk.bf16.mxu1 %vm2329_vm1, %v2328_v34  ;;  %2102 = vmatprep.subr.bf16.mxu1 %v2328_v34  ;;  %v2626_v41 = vpack.c.bf16 %v471_v37, %v471_v37 }
 0x312   :  { %506 = vrot.lane.b32.xlu0 %v1998_v5, %s2332_s5  ;;  %v1076_v43 = vsel %vm1028_vm3, %v2626_v41, 0 }
 0x313   :  { %504 = vrot.lane.b32.xlu1 %v1999_v10, %s2331_s0 }
 0x316   :  { %488 = vrot.lane.b32.xlu0 %v1996_v62, %s2332_s5  ;;  %2093 = vmatmul.mubr.msk.bf16.vlgmr.msra.gmra.mxu1 %vm532_vm2, %v1997_v14 }
 0x317   :  { %486 = vrot.lane.b32.xlu1 %v1997_v14, %s2331_s0  ;;  %2104 = vmatprep.mubr.msk.bf16.mxu1 %vm2329_vm1, %v2328_v34 }
 0x31b   :  { %508 = vrot.lane.b32.xlu1 %v1999_v10, %s2332_s5 }
 0x31f   :  { %490 = vrot.lane.b32.xlu1 %v1997_v14, %s2332_s5 }
 0x370   :  { %v481_v18 = vpop.permute.xlu1 %480 }
 0x378   :  { %v499_v19 = vpop.permute.xlu0 %498 }
 0x379   :  { %v629_v20 = vsel %vm532_vm2, %v499_v19, 0 }
 0x37a   :  { %2097 = vmatpush3.bf16.xpose.msra.mxu0 %v629_v20 }
 0x37b   :  { %2108 = vmatprep.subr.bf16.mxu0 %v2328_v34 }
 0x37c   :  { %v503_v21 = vpop.permute.xlu0 %502  ;;  %v501_v22 = vpop.permute.xlu1 %500 }
 0x37d   :  { %v675_v23 = vsel %vm532_vm2, %v501_v22, 0  ;;  %v721_v25 = vsel %vm532_vm2, %v503_v21, 0 }
 0x37e   :  { %2103 = vmatpush3.bf16.xpose.msra.mxu1 %v675_v23 }
 0x37f   :  { %2114 = vmatprep.subr.bf16.mxu1 %v2328_v34 }
 0x380   :  { %v485_v24 = vpop.permute.xlu0 %484 }
 0x381   :  { %v483_v26 = vpop.permute.xlu1 %482  ;;  %2099 = vmatmul.mubr.msk.bf16.vlgmr.msra.gmra.mxu0 %vm532_vm2, %v481_v18 }
 0x382   :  { %2109 = vmatpush3.bf16.xpose.msra.mxu0 %v721_v25  ;;  %2110 = vmatprep.mubr.msk.bf16.mxu0 %vm2329_vm1, %v2328_v34 }
 0x383   :  { %2120 = vmatprep.subr.bf16.mxu0 %v2328_v34 }
 0x384   :  { %v507_v29 = vpop.permute.xlu0 %506 }
 0x385   :  { %v505_v27 = vpop.permute.xlu1 %504  ;;  %2105 = vmatmul.mubr.msk.bf16.vlgmr.msra.gmra.mxu1 %vm532_vm2, %v483_v26  ;;  %v813_v32 = vsel %vm532_vm2, %v507_v29, 0 }
 0x386   :  { %v767_v30 = vsel %vm532_vm2, %v505_v27, 0  ;;  %2116 = vmatprep.mubr.msk.bf16.mxu1 %vm2329_vm1, %v2328_v34 }
 0x387   :  { %2115 = vmatpush3.bf16.xpose.msra.mxu1 %v767_v30 }
 0x388   :  { %2126 = vmatprep.subr.bf16.mxu1 %v2328_v34  ;;  %v489_v39 = vpop.permute.xlu0 %488 }
 0x389   :  { %v487_v33 = vpop.permute.xlu1 %486  ;;  %2111 = vmatmul.mubr.msk.bf16.vlgmr.msra.gmra.mxu0 %vm532_vm2, %v485_v24 }
 0x38a   :  { %2121 = vmatpush3.bf16.xpose.msra.mxu0 %v813_v32  ;;  %2122 = vmatprep.mubr.msk.bf16.mxu0 %vm2329_vm1, %v2328_v34 }
 0x38b   :  { %2132 = vmatprep.subr.bf16.mxu0 %v2328_v34 }
 0x38d   :  { %v509_v36 = vpop.permute.xlu1 %508 }
 0x38e   :  { %v859_v38 = vsel %vm532_vm2, %v509_v36, 0  ;;  %2117 = vmatmul.mubr.msk.bf16.vlgmr.msra.gmra.mxu1 %vm532_vm2, %v487_v33 }
 0x38f   :  { %2127 = vmatpush3.bf16.xpose.msra.mxu1 %v859_v38  ;;  %2128 = vmatprep.mubr.msk.bf16.mxu1 %vm2329_vm1, %v2328_v34 }
 0x390   :  { %2138 = vmatprep.subr.bf16.mxu1 %v2328_v34 }
 0x391   :  { %2123 = vmatmul.mubr.msk.bf16.vlgmr.msra.gmra.mxu0 %vm532_vm2, %v489_v39  ;;  %v491_v42 = vpop.permute.xlu1 %490 }
 0x392   :  { %2133 = vmatpush3.bf16.msra.mxu0 %v1030_v40  ;;  %2134 = vmatprep.mubr.msk.bf16.mxu0 %vm2329_vm1, %v2328_v34 }
 0x393   :  { %2144 = vmatprep.subr.bf16.mxu0 %v2328_v34 }
 0x396   :  { %2129 = vmatmul.mubr.msk.bf16.vlgmr.msra.gmra.mxu1 %vm532_vm2, %v491_v42 }
 0x397   :  { %2139 = vmatpush3.bf16.msra.mxu1 %v1076_v43  ;;  %2140 = vmatprep.mubr.msk.bf16.mxu1 %vm2329_vm1, %v2328_v34 }
 0x398   :  { %2150 = vmatprep.subr.bf16.mxu1 %v2328_v34 }
 0x3ce   :  { %v573_v55 = vpop.f32.mrf.mxu1 }
 0x3cf   :  { %v901_v56 = vmul.f32 0.35355338, %v573_v55 }
 0x3d0   :  { %v2088_v57 = vpop.f32.mrf.mxu1 }
 0x3d1   :  { %v2643_v58 = vadd.f32 %v914_v53, %v901_v56 }
 0x3d2   :  { %v576_v60 = vpop.f32.mrf.mxu1 }
 0x3d3   :  { %v929_v61 = vsel %vm532_vm2, %v2643_v58, -inf }
 0x3d4   :  { %930 = vmax.xlane.f32.xlu0 %v929_v61  ;;  %v2089_v62 = vpop.f32.mrf.mxu1 }
 0x3d6   :  { %v619_v0 = vpop.f32.mrf.mxu1 }
 0x3d7   :  { %v902_v1 = vmul.f32 0.35355338, %v619_v0 }
 0x3d8   :  { %v2094_v2 = vpop.f32.mrf.mxu1 }
 0x3d9   :  { %v922_v3 = vadd.f32 %v918_v63, %v902_v1 }
 0x3da   :  { %v622_v4 = vpop.f32.mrf.mxu1 }
 0x3db   :  { %v932_v5 = vsel %vm532_vm2, %v922_v3, -inf }
 0x3dc   :  { %933 = vmax.xlane.f32.xlu1 %v932_v5  ;;  %v2095_v6 = vpop.f32.mrf.mxu1 }
 0x441   :  { %v665_v7 = vpop.f32.mrf.mxu0 }
 0x442   :  { %v903_v8 = vmul.f32 0.35355338, %v665_v7 }
 0x443   :  { %v2100_v9 = vpop.f32.mrf.mxu0 }
 0x444   :  { %v2648_v10 = vadd.f32 %v914_v53, %v903_v8 }
 0x445   :  { %v668_v11 = vpop.f32.mrf.mxu0  ;;  %v711_v12 = vpop.f32.mrf.mxu1 }
 0x446   :  { %v904_v13 = vmul.f32 0.35355338, %v711_v12  ;;  %v935_v14 = vsel %vm532_vm2, %v2648_v10, -inf }
 0x447   :  { %v2101_v15 = vpop.f32.mrf.mxu0  ;;  %936 = vmax.xlane.f32.xlu0 %v935_v14  ;;  %v2106_v16 = vpop.f32.mrf.mxu1 }
 0x448   :  { %v924_v17 = vadd.f32 %v918_v63, %v904_v13 }
 0x449   :  { %v714_v18 = vpop.f32.mrf.mxu1  ;;  %v757_v19 = vpop.f32.mrf.mxu0 }
 0x44a   :  { %v905_v20 = vmul.f32 0.35355338, %v757_v19  ;;  %v938_v21 = vsel %vm532_vm2, %v924_v17, -inf }
 0x44b   :  { %v2112_v22 = vpop.f32.mrf.mxu0  ;;  %939 = vmax.xlane.f32.xlu0 %v938_v21  ;;  %v2107_v23 = vpop.f32.mrf.mxu1 }
 0x44c   :  { %v2653_v24 = vadd.f32 %v914_v53, %v905_v20 }
 0x44d   :  { %v760_v25 = vpop.f32.mrf.mxu0 }
 0x44e   :  { %v803_v26 = vpop.f32.mrf.mxu1  ;;  %v941_v27 = vsel %vm532_vm2, %v2653_v24, -inf }
 0x44f   :  { %v906_v28 = vmul.f32 0.35355338, %v803_v26  ;;  %v2113_v29 = vpop.f32.mrf.mxu0  ;;  %942 = vmax.xlane.f32.xlu0 %v941_v27 }
 0x450   :  { %v2118_v30 = vpop.f32.mrf.mxu1 }
 0x451   :  { %v849_v31 = vpop.f32.mrf.mxu0  ;;  %v926_v32 = vadd.f32 %v918_v63, %v906_v28 }
 0x452   :  { %v806_v33 = vpop.f32.mrf.mxu1  ;;  %v907_v36 = vmul.f32 0.35355338, %v849_v31 }
 0x453   :  { %v2124_v37 = vpop.f32.mrf.mxu0  ;;  %v944_v38 = vsel %vm532_vm2, %v926_v32, -inf }
 0x454   :  { %945 = vmax.xlane.f32.xlu1 %v944_v38  ;;  %v2119_v39 = vpop.f32.mrf.mxu1  ;;  %v2658_v40 = vadd.f32 %v914_v53, %v907_v36 }
 0x455   :  { %v852_v42 = vpop.f32.mrf.mxu0 }
 0x456   :  { %v895_v43 = vpop.f32.mrf.mxu1  ;;  %v947_v44 = vsel %vm532_vm2, %v2658_v40, -inf }
 0x457   :  { %v908_v45 = vmul.f32 0.35355338, %v895_v43  ;;  %v2125_v46 = vpop.f32.mrf.mxu0  ;;  %948 = vmax.xlane.f32.xlu0 %v947_v44 }
 0x458   :  { %v2130_v47 = vpop.f32.mrf.mxu1 }
 0x459   :  { %v928_v48 = vadd.f32 %v918_v63, %v908_v45 }
 0x45a   :  { %v898_v49 = vpop.f32.mrf.mxu1 }
 0x45b   :  { %v950_v50 = vsel %vm532_vm2, %v928_v48, -inf }
 0x45c   :  { %951 = vmax.xlane.f32.xlu1 %v950_v50  ;;  %v2131_v54 = vpop.f32.mrf.mxu1 }
 0x45d   :  { %v931_v55 = vpop.xlane.xlu0 %930 }
 0x45e   :  { %v953_v56 = vsub.f32 %v2643_v58, %v931_v55 }
 0x460   :  { %v961_v53 = vmul.f32 1.442695, %v953_v56 }
 0x462   :  { %2283 = vpow2.f32 %v961_v53 }
 0x465   :  { %v934_v57 = vpop.xlane.xlu1 %933 }
 0x466   :  { %v954_v59 = vsub.f32 %v922_v3, %v934_v57 }
 0x468   :  { %v963_v60 = vmul.f32 1.442695, %v954_v59 }
 0x46a   :  { %2285 = vpow2.f32 %v963_v60 }
 0x46f   :  { %v2284_v61 = vpop.eup %2283 }
 0x470   :  { %v977_v62 = vsel %vm532_vm2, %v2284_v61, 0.0 }
 0x471   :  { %978 = vadd.xlane.f32.xlu0 %v977_v62 }
 0x477   :  { %v2286_v0 = vpop.eup %2285 }
 0x478   :  { %v980_v63 = vsel %vm532_vm2, %v2286_v0, 0.0 }
 0x479   :  { %981 = vadd.xlane.f32.xlu1 %v980_v63 }
 0x48a   :  { %518 = vrot.lane.b32.xlu1 %v2626_v41, %s2330_s30 }
 0x48e   :  { %520 = vrot.lane.b32.xlu1 %v2616_v35, %s2331_s0 }
 0x492   :  { %522 = vrot.lane.b32.xlu1 %v2626_v41, %s2331_s0 }
 0x4d0   :  { %v937_v58 = vpop.xlane.xlu0 %936 }
 0x4d1   :  { %v955_v1 = vsub.f32 %v2648_v10, %v937_v58 }
 0x4d3   :  { %v965_v2 = vmul.f32 1.442695, %v955_v1 }
 0x4d4   :  { %v940_v3 = vpop.xlane.xlu0 %939 }
 0x4d5   :  { %2287 = vpow2.f32 %v965_v2  ;;  %v956_v4 = vsub.f32 %v924_v17, %v940_v3 }
 0x4d7   :  { %v967_v5 = vmul.f32 1.442695, %v956_v4 }
 0x4d8   :  { %v943_v18 = vpop.xlane.xlu0 %942 }
 0x4d9   :  { %2289 = vpow2.f32 %v967_v5  ;;  %v957_v23 = vsub.f32 %v2653_v24, %v943_v18 }
 0x4db   :  { %v969_v26 = vmul.f32 1.442695, %v957_v23 }
 0x4dd   :  { %v946_v6 = vpop.xlane.xlu1 %945 }
 0x4de   :  { %v958_v7 = vsub.f32 %v926_v32, %v946_v6 }
 0x4e0   :  { %v971_v8 = vmul.f32 1.442695, %v958_v7  ;;  %v949_v19 = vpop.xlane.xlu0 %948 }
 0x4e1   :  { %v959_v27 = vsub.f32 %v2658_v40, %v949_v19 }
 0x4e2   :  { %v2673_v9 = vpop.eup %2287  ;;  %2291 = vpow2.f32 %v971_v8 }
 0x4e3   :  { %v983_v11 = vsel %vm532_vm2, %v2673_v9, 0.0  ;;  %v973_v29 = vmul.f32 1.442695, %v959_v27 }
 0x4e4   :  { %984 = vadd.xlane.f32.xlu0 %v983_v11 }
 0x4e5   :  { %v952_v12 = vpop.xlane.xlu1 %951 }
 0x4e6   :  { %v2677_v13 = vpop.eup %2289  ;;  %v960_v10 = vsub.f32 %v928_v48, %v952_v12 }
 0x4e7   :  { %v986_v14 = vsel %vm532_vm2, %v2677_v13, 0.0 }
 0x4e8   :  { %v975_v15 = vmul.f32 1.442695, %v960_v10  ;;  %987 = vadd.xlane.f32.xlu1 %v986_v14 }
 0x4ea   :  { %2293 = vpow2.f32 %v975_v15 }
 0x4ef   :  { %v2681_v16 = vpop.eup %2291 }
 0x4f0   :  { %v992_v17 = vsel %vm532_vm2, %v2681_v16, 0.0 }
 0x4f1   :  { %993 = vadd.xlane.f32.xlu1 %v992_v17 }
 0x4f7   :  { %v2685_v20 = vpop.eup %2293 }
 0x4f8   :  { %v998_v21 = vsel %vm532_vm2, %v2685_v20, 0.0 }
 0x4f9   :  { %999 = vadd.xlane.f32.xlu1 %v998_v21 }
 0x4fa   :  { %516 = vrot.lane.b32.xlu0 %v2616_v35, %s2330_s30  ;;  %v979_v22 = vpop.xlane.xlu0 %978 }
 0x4fb   :  { %2295 = vrcp.f32 %v979_v22 }
 0x502   :  { %v982_v25 = vpop.xlane.xlu1 %981 }
 0x503   :  { %2297 = vrcp.f32 %v982_v25 }
 0x504   :  { %2299 = vpow2.f32 %v969_v26 }
 0x505   :  { %2301 = vpow2.f32 %v973_v29 }
 0x506   :  { %v519_v33 = vpop.permute.xlu1 %518 }
 0x507   :  { %v1168_v38 = vsel %vm1028_vm3, %v519_v33, 0 }
 0x508   :  { %v2296_v28 = vpop.eup %2295 }
 0x509   :  { %v1009_v30 = vmul.f32 %v2296_v28, %v2284_v61 }
 0x50a   :  { %526 = vrot.lane.b32.xlu1 %v2626_v41, %s2332_s5  ;;  %v521_v42 = vpop.permute.xlu1 %520 }
 0x50b   :  { %v1017_v31 = vpack.c.bf16 %v1009_v30, %v1009_v30 }
 0x50d   :  { %2135 = vmatmul.mubr.msk.bf16.vlgmr.msra.gmra.mxu0 %vm532_vm2, %v1017_v31 }
 0x50e   :  { %2146 = vmatprep.mubr.msk.bf16.mxu0 %vm2329_vm1, %v2328_v34  ;;  %v523_v43 = vpop.permute.xlu1 %522 }
 0x50f   :  { %v1260_v59 = vsel %vm1028_vm3, %v523_v43, 0 }
 0x510   :  { %v2298_v24 = vpop.eup %2297 }
 0x511   :  { %v1010_v32 = vmul.f32 %v2298_v24, %v2286_v0  ;;  %v2300_v37 = vpop.eup %2299 }
 0x512   :  { %v989_v41 = vsel %vm532_vm2, %v2300_v37, 0.0  ;;  %v2302_v39 = vpop.eup %2301 }
 0x513   :  { %v1018_v36 = vpack.c.bf16 %v1010_v32, %v1010_v32  ;;  %v995_v40 = vsel %vm532_vm2, %v2302_v39, 0.0 }
 0x515   :  { %2141 = vmatmul.mubr.msk.bf16.vlgmr.msra.gmra.mxu1 %vm532_vm2, %v1018_v36 }
 0x516   :  { %2151 = vmatpush3.bf16.msra.mxu1 %v1168_v38  ;;  %2152 = vmatprep.mubr.msk.bf16.mxu1 %vm2329_vm1, %v2328_v34 }
 0x517   :  { %2162 = vmatprep.subr.bf16.mxu1 %v2328_v34 }
 0x519   :  { %990 = vadd.xlane.f32.xlu0 %v989_v41 }
 0x51d   :  { %996 = vadd.xlane.f32.xlu0 %v995_v40 }
 0x533   :  { %524 = vrot.lane.b32.xlu0 %v2616_v35, %s2332_s5  ;;  %v1214_v35 = vsel %vm1028_vm3, %v521_v42, 0  ;;  %v2268_v42 = vld [vmem:[%s2851_s12] sm:$0xff]  }
 0x56d   :  { %v985_v44 = vpop.xlane.xlu0 %984 }
 0x56e   :  { %2303 = vrcp.f32 %v985_v44 }
 0x571   :  { %v517_v45 = vpop.permute.xlu0 %516  ;;  %v988_v46 = vpop.xlane.xlu1 %987 }
 0x572   :  { %v1122_v47 = vsel %vm1028_vm3, %v517_v45, 0  ;;  %2305 = vrcp.f32 %v988_v46 }
 0x573   :  { %2145 = vmatpush3.bf16.msra.mxu0 %v1122_v47 }
 0x574   :  { %2156 = vmatprep.subr.bf16.mxu0 %v2328_v34 }
 0x57a   :  { %v994_v48 = vpop.xlane.xlu1 %993 }
 0x57b   :  { %v2304_v49 = vpop.eup %2303  ;;  %2307 = vrcp.f32 %v994_v48 }
 0x57c   :  { %v1011_v50 = vmul.f32 %v2304_v49, %v2673_v9 }
 0x57e   :  { %v1019_v54 = vpack.c.bf16 %v1011_v50, %v1011_v50 }
 0x57f   :  { %v2306_v55 = vpop.eup %2305 }
 0x580   :  { %2147 = vmatmul.mubr.msk.bf16.vlgmr.msra.gmra.mxu0 %vm532_vm2, %v1019_v54  ;;  %v1012_v56 = vmul.f32 %v2306_v55, %v2677_v13 }
 0x581   :  { %2157 = vmatpush3.bf16.msra.mxu0 %v1214_v35  ;;  %2158 = vmatprep.mubr.msk.bf16.mxu0 %vm2329_vm1, %v2328_v34 }
 0x582   :  { %v1000_v53 = vpop.xlane.xlu1 %999  ;;  %v1020_v57 = vpack.c.bf16 %v1012_v56, %v1012_v56  ;;  %2168 = vmatprep.subr.bf16.mxu0 %v2328_v34 }
 0x583   :  { %2309 = vrcp.f32 %v1000_v53 }
 0x584   :  { %2153 = vmatmul.mubr.msk.bf16.vlgmr.msra.gmra.mxu1 %vm532_vm2, %v1020_v57 }
 0x585   :  { %2163 = vmatpush3.bf16.msra.mxu1 %v1260_v59  ;;  %2164 = vmatprep.mubr.msk.bf16.mxu1 %vm2329_vm1, %v2328_v34 }
 0x586   :  { %2174 = vmatprep.subr.bf16.mxu1 %v2328_v34  ;;  %v527_v62 = vpop.permute.xlu1 %526 }
 0x587   :  { %v1352_v63 = vsel %vm1028_vm3, %v527_v62, 0 }
 0x588   :  { %v2308_v60 = vpop.eup %2307 }
 0x589   :  { %v1014_v61 = vmul.f32 %v2308_v60, %v2681_v16 }
 0x58b   :  { %v1022_v0 = vpack.c.bf16 %v1014_v61, %v1014_v61 }
 0x58d   :  { %2165 = vmatmul.mubr.msk.bf16.vlgmr.msra.gmra.mxu1 %vm532_vm2, %v1022_v0 }
 0x58e   :  { %2175 = vmatpush3.bf16.msra.mxu1 %v1352_v63  ;;  %2176 = vmatprep.mubr.msk.bf16.mxu1 %vm2329_vm1, %v2328_v34 }
 0x58f   :  { %2188 = vmatprep.subr.bf16.mxu1 %v2328_v34 }
 0x590   :  { %v2310_v58 = vpop.eup %2309 }
 0x591   :  { %v1016_v1 = vmul.f32 %v2310_v58, %v2685_v20 }
 0x593   :  { %v1024_v2 = vpack.c.bf16 %v1016_v1, %v1016_v1 }
 0x595   :  { %2177 = vmatmul.mubr.msk.bf16.vlgmr.msra.gmra.mxu1 %vm532_vm2, %v1024_v2 }
 0x596   :  { %2192 = vmatprep.mubr.msk.bf16.mxu1 %vm2329_vm1, %v2328_v34 }
 0x5a2   :  { %v991_v3 = vpop.xlane.xlu0 %990 }
 0x5a3   :  { %2311 = vrcp.f32 %v991_v3 }
 0x5a6   :  { %v997_v4 = vpop.xlane.xlu0 %996 }
 0x5a7   :  { %2313 = vrcp.f32 %v997_v4 }
 0x5aa   :  { %v525_v7 = vpop.permute.xlu0 %524 }
 0x5ab   :  { %v1306_v11 = vsel %vm1028_vm3, %v525_v7, 0 }
 0x5b0   :  { %v2312_v5 = vpop.eup %2311 }
 0x5b1   :  { %v1013_v6 = vmul.f32 %v2312_v5, %v2300_v37  ;;  %v1970_v5 = vld [vmem:[%s2852_s13] ss:$0 sm:$0xff] }
 0x5b3   :  { %v1021_v8 = vpack.c.bf16 %v1013_v6, %v1013_v6 }
 0x5b4   :  { %v2314_v9 = vpop.eup %2313 }
 0x5b5   :  { %2159 = vmatmul.mubr.msk.bf16.vlgmr.msra.gmra.mxu0 %vm532_vm2, %v1021_v8  ;;  %v1015_v12 = vmul.f32 %v2314_v9, %v2302_v39  ;;  %v2267_v39 = vld [vmem:[%s2851_s12 + $0x8] sm:$0xff]  }
 0x5b6   :  { %2169 = vmatpush3.bf16.msra.mxu0 %v1306_v11  ;;  %2170 = vmatprep.mubr.msk.bf16.mxu0 %vm2329_vm1, %v2328_v34 }
 0x5b7   :  { %2180 = vmatprep.subr.bf16.mxu0 %v2328_v34  ;;  %v1023_v13 = vpack.c.bf16 %v1015_v12, %v1015_v12 }
 0x5bd   :  { %2171 = vmatmul.mubr.msk.bf16.vlgmr.msra.gmra.mxu0 %vm532_vm2, %v1023_v13 }
 0x5be   :  { %2184 = vmatprep.mubr.msk.bf16.mxu0 %vm2329_vm1, %v2328_v34  ;;  %2181 = vmatpush3.bf16.msra.mxu0 %v2267_v39  ;;  %v1975_v39 = vld [vmem:[%s2855_s15] ss:$0 sm:$0xff] }
 0x5bf   :  { %2182 = vmatprep.subr.bf16.mxu0 %v2328_v34 }
 0x5c2   :  { %2183 = vmatpush3.bf16.msra.mxu0 %v2268_v42 }
 0x5c3   :  { %2196 = vmatprep.subr.bf16.mxu0 %v2328_v34 }
 0x5cd   :  { %v1066_v10 = vpop.f32.mrf.mxu0 }
 0x5cf   :  { %v2136_v14 = vpop.f32.mrf.mxu0 }
 0x5d1   :  { %v1069_v15 = vpop.f32.mrf.mxu0 }
 0x5d3   :  { %v2137_v16 = vpop.f32.mrf.mxu0 }
 0x5d5   :  { %v1112_v17 = vpop.f32.mrf.mxu1 }
 0x5d7   :  { %v2142_v18 = vpop.f32.mrf.mxu1 }
 0x5d9   :  { %v1115_v19 = vpop.f32.mrf.mxu1 }
 0x5db   :  { %v2143_v20 = vpop.f32.mrf.mxu1 }
 0x640   :  { %v1158_v21 = vpop.f32.mrf.mxu0 }
 0x642   :  { %v2148_v22 = vpop.f32.mrf.mxu0 }
 0x644   :  { %v1161_v23 = vpop.f32.mrf.mxu0  ;;  %v1204_v25 = vpop.f32.mrf.mxu1 }
 0x645   :  { %v2233_v26 = vpack.i.bf16 %v1204_v25, %v1158_v21 }
 0x646   :  { %v2149_v27 = vpop.f32.mrf.mxu0  ;;  %v2154_v28 = vpop.f32.mrf.mxu1 }
 0x647   :  { %2234 = vrot.lane.b32.xlu0 %v2233_v26, %s2333_s1  ;;  %v2270_v26 = vld [vmem:[%s2853_s16] sm:$0xff]  }
 0x648   :  { %v1207_v29 = vpop.f32.mrf.mxu1 }
 0x64a   :  { %v2155_v30 = vpop.f32.mrf.mxu1 }
 0x64d   :  { %v1296_v31 = vpop.f32.mrf.mxu1 }
 0x64f   :  { %v2166_v24 = vpop.f32.mrf.mxu1 }
 0x651   :  { %v1299_v32 = vpop.f32.mrf.mxu1 }
 0x653   :  { %v2167_v33 = vpop.f32.mrf.mxu1 }
 0x655   :  { %v1388_v36 = vpop.f32.mrf.mxu1 }
 0x657   :  { %v2178_v37 = vpop.f32.mrf.mxu1 }
 0x659   :  { %v1391_v38 = vpop.f32.mrf.mxu1 }
 0x65b   :  { %v2179_v41 = vpop.f32.mrf.mxu1 }
 0x675   :  { %v1250_v40 = vpop.f32.mrf.mxu0 }
 0x676   :  { %v2238_v43 = vpack.i.bf16 %v1296_v31, %v1250_v40 }
 0x677   :  { %v2160_v44 = vpop.f32.mrf.mxu0 }
 0x678   :  { %2239 = vrot.lane.b32.xlu1 %v2238_v43, %s2334_s11 }
 0x679   :  { %v1253_v45 = vpop.f32.mrf.mxu0 }
 0x67a   :  { %v2271_v45 = vld [vmem:[%s2856_s18 + $0x18] sm:$0xff]  }
 0x67b   :  { %v2161_v46 = vpop.f32.mrf.mxu0 }
 0x67c   :  { %v2272_v46 = vld [vmem:[%s2856_s18 + $0x10] sm:$0xff]  }
 0x67d   :  { %v1342_v47 = vpop.f32.mrf.mxu0 }
 0x67e   :  { %v2243_v48 = vpack.i.bf16 %v1388_v36, %v1342_v47  ;;  %v1974_v36 = vld [vmem:[%s2854_s14] ss:$0 sm:$0xff]  ;;  %v2273_v47 = vld [vmem:[%s2856_s18 + $0x8] sm:$0xff]  }
 0x67f   :  { %v2172_v49 = vpop.f32.mrf.mxu0 }
 0x680   :  { %2244 = vrot.lane.b32.xlu0 %v2243_v48, %s2335_s4  ;;  %v2274_v48 = vld [vmem:[%s2856_s18] sm:$0xff]  }
 0x681   :  { %v1345_v50 = vpop.f32.mrf.mxu0  ;;  %v1976_v49 = vld [vmem:[%s2857_s17] ss:$0 sm:$0xff] }
 0x683   :  { %v2173_v54 = vpop.f32.mrf.mxu0 }
 0x6b9   :  { %v2235_v55 = vpop.permute.xlu0 %2234 }
 0x6ba   :  { %v2237_v56 = vunpack.i.h.bf16 %v2235_v55  ;;  %v2236_v53 = vunpack.i.l.bf16 %v2235_v55 }
 0x6bc   :  { %v1419_v61 = vsel %vm532_vm2, %v1112_v17, %v2237_v56  ;;  %v1418_v62 = vsel %vm532_vm2, %v1066_v10, %v2236_v53 }
 0x6ea   :  { %v2240_v35 = vpop.permute.xlu1 %2239 }
 0x6eb   :  { %v2242_v57 = vunpack.i.h.bf16 %v2240_v35  ;;  %v2241_v59 = vunpack.i.l.bf16 %v2240_v35 }
 0x6ed   :  { %v1422_v58 = vsel %vm1420_vm4, %v1419_v61, %v2242_v57  ;;  %v1421_v1 = vsel %vm1420_vm4, %v1418_v62, %v2241_v59 }
 0x6f2   :  { %v2245_v60 = vpop.permute.xlu0 %2244 }
 0x6f3   :  { %v2247_v0 = vunpack.i.h.bf16 %v2245_v60  ;;  %v2246_v63 = vunpack.i.l.bf16 %v2245_v60 }
 0x6f5   :  { %v1425_v2 = vsel %vm1423_vm5, %v1422_v58, %v2247_v0  ;;  %v1424_v3 = vsel %vm1423_vm5, %v1421_v1, %v2246_v63 }
 0x6f6   :  { %v1426_v4 = vpack.c.bf16 %v1425_v2, %v1424_v3 }
 0x6f8   :  { %2185 = vmatmul.mubr.msk.bf16.vlgmr.msra.gmra.mxu0 %vm186_vm0, %v1426_v4 }
 0x6f9   :  { %2204 = vmatprep.mubr.msk.bf16.mxu0 %vm2329_vm1, %v2328_v34  ;;  %2197 = vmatpush3.bf16.msra.mxu0 %v2271_v45 }
 0x6fa   :  { %2198 = vmatprep.subr.bf16.mxu0 %v2328_v34 }
 0x6fd   :  { %2199 = vmatpush3.bf16.msra.mxu0 %v2272_v46 }
 0x6fe   :  { %2200 = vmatprep.subr.bf16.mxu0 %v2328_v34 }
 0x701   :  { %2201 = vmatpush3.bf16.msra.mxu0 %v2273_v47 }
 0x702   :  { %2202 = vmatprep.subr.bf16.mxu0 %v2328_v34 }
 0x705   :  { %2203 = vmatpush3.bf16.msra.mxu0 %v2274_v48 }
 0x7b8   :  { %v1487_v6 = vpop.f32.mrf.mxu0 }
 0x7b9   :  { %v1488_v7 = vadd.f32 %v1970_v5, %v1487_v6 }
 0x7ba   :  { %v2186_v8 = vpop.f32.mrf.mxu0 }
 0x7bb   :  { %v1494_v9 = vadd.f32 %v1488_v7, %v2535_v51 }
 0x7bc   :  { %v1490_v11 = vpop.f32.mrf.mxu0 }
 0x7bd   :  { %v1491_v12 = vadd.f32 %v1970_v5, %v1490_v11  ;;  %v1498_v13 = vsel %vm186_vm0, %v1494_v9, 0.0 }
 0x7be   :  { %1499 = vadd.xlane.f32.xlu1 %v1498_v13  ;;  %v2187_v10 = vpop.f32.mrf.mxu0  ;;  %v1980_v13 = vld [vmem:[%s2858_s19] ss:$0 sm:$0xff] }
 0x7bf   :  { %v1495_v14 = vadd.f32 %v1491_v12, %v2537_v52  ;;  %v2269_v52 = vld [vmem:[%s2853_s16 + $0x8] sm:$0xff]  }
 0x7c0   :  { %2189 = vmatpush3.bf16.msra.mxu1 %v2269_v52 }
 0x7c1   :  { %v1501_v15 = vsel %vm186_vm0, %v1495_v14, 0.0  ;;  %2190 = vmatprep.subr.bf16.mxu1 %v2328_v34 }
 0x7c2   :  { %1502 = vadd.xlane.f32.xlu0 %v1501_v15 }
 0x7c4   :  { %2191 = vmatpush3.bf16.msra.mxu1 %v2270_v26 }
 0x7c5   :  { %2208 = vmatprep.subr.bf16.mxu1 %v2328_v34 }
 0x847   :  { %v1500_v16 = vpop.xlane.xlu1 %1499 }
 0x848   :  { %v1504_v17 = vmul.f32 0.03125, %v1500_v16 }
 0x84a   :  { %v1506_v18 = vsub.f32 %v1494_v9, %v1504_v17 }
 0x84b   :  { %v1503_v19 = vpop.xlane.xlu0 %1502 }
 0x84c   :  { %v1505_v20 = vmul.f32 0.03125, %v1503_v19  ;;  %v1508_v21 = vmul.f32 %v1506_v18, %v1506_v18 }
 0x84e   :  { %v1507_v22 = vsub.f32 %v1495_v14, %v1505_v20  ;;  %v1510_v51 = vsel %vm186_vm0, %v1508_v21, 0.0 }
 0x84f   :  { %1511 = vadd.xlane.f32.xlu0 %v1510_v51 }
 0x850   :  { %v1509_v23 = vmul.f32 %v1507_v22, %v1507_v22 }
 0x852   :  { %v1513_v25 = vsel %vm186_vm0, %v1509_v23, 0.0 }
 0x853   :  { %1514 = vadd.xlane.f32.xlu0 %v1513_v25 }
 0x8d8   :  { %v1512_v27 = vpop.xlane.xlu0 %1511 }
 0x8d9   :  { %v1516_v28 = vmul.f32 0.03125, %v1512_v27 }
 0x8db   :  { %v1518_v29 = vadd.f32 1e-05, %v1516_v28 }
 0x8dc   :  { %v1515_v30 = vpop.xlane.xlu0 %1514 }
 0x8dd   :  { %2315 = vrsqrt.f32 %v1518_v29  ;;  %v1517_v31 = vmul.f32 0.03125, %v1515_v30 }
 0x8df   :  { %v1519_v24 = vadd.f32 1e-05, %v1517_v31 }
 0x8e1   :  { %2317 = vrsqrt.f32 %v1519_v24  ;;  %v2275_v24 = vld [vmem:[%s2859_s22 + $0x8] sm:$0xff]  }
 0x8ea   :  { %v2316_v32 = vpop.eup %2315 }
 0x8eb   :  { %v1522_v33 = vmul.f32 %v2316_v32, %v1506_v18  ;;  %v2276_v32 = vld [vmem:[%s2859_s22] sm:$0xff]  }
 0x8ed   :  { %v1530_v41 = vmul.f32 %v1974_v36, %v1522_v33 }
 0x8ee   :  { %v2318_v37 = vpop.eup %2317 }
 0x8ef   :  { %v1523_v38 = vmul.f32 %v2318_v37, %v1507_v22  ;;  %v1538_v42 = vadd.f32 %v1975_v39, %v1530_v41 }
 0x8f1   :  { %v1531_v40 = vmul.f32 %v1974_v36, %v1523_v38 }
 0x8f3   :  { %v1539_v43 = vadd.f32 %v1975_v39, %v1531_v40 }
 0x8f5   :  { %v1540_v44 = vpack.c.bf16 %v1539_v43, %v1538_v42 }
 0x8f7   :  { %2193 = vmatmul.mubr.msk.bf16.vlgmr.msra.gmra.mxu1 %vm186_vm0, %v1540_v44  ;;  %v1987_v44 = vld [vmem:[%s2861_s21] ss:$0 sm:$0xff] }
 0x8f8   :  { %2212 = vmatprep.mubr.msk.bf16.mxu1 %vm2329_vm1, %v2328_v34  ;;  %2209 = vmatpush3.bf16.msra.mxu1 %v2275_v24 }
 0x8f9   :  { %2210 = vmatprep.subr.bf16.mxu1 %v2328_v34 }
 0x8fc   :  { %2211 = vmatpush3.bf16.msra.mxu1 %v2276_v32 }
 0x8fd   :  { %2216 = vmatprep.subr.bf16.mxu1 %v2328_v34 }
 0x9b7   :  { %v1601_v50 = vpop.f32.mrf.mxu1 }
 0x9b8   :  { %v1602_v54 = vadd.f32 %v1976_v49, %v1601_v50 }
 0x9b9   :  { %v2194_v55 = vpop.f32.mrf.mxu1 }
 0x9ba   :  { %v1610_v35 = vmul.f32 0.044715, %v1602_v54  ;;  %v1608_v6 = vmul.f32 0.5, %v1602_v54 }
 0x9bb   :  { %v1604_v56 = vpop.f32.mrf.mxu1 }
 0x9bc   :  { %v1612_v53 = vmul.f32 %v1610_v35, %v1602_v54  ;;  %v1605_v57 = vadd.f32 %v1976_v49, %v1604_v56 }
 0x9bd   :  { %v2195_v59 = vpop.f32.mrf.mxu1 }
 0x9be   :  { %v1614_v60 = vmul.f32 %v1612_v53, %v1602_v54  ;;  %v1611_v61 = vmul.f32 0.044715, %v1605_v57  ;;  %v1609_v7 = vmul.f32 0.5, %v1605_v57 }
 0x9c0   :  { %v1616_v62 = vadd.f32 %v1614_v60, %v1602_v54  ;;  %v1613_v0 = vmul.f32 %v1611_v61, %v1605_v57 }
 0x9c2   :  { %v1618_v63 = vmul.f32 0.7978846, %v1616_v62  ;;  %v1615_v58 = vmul.f32 %v1613_v0, %v1605_v57 }
 0x9c4   :  { %2319 = vtanh.f32 %v1618_v63  ;;  %v1617_v1 = vadd.f32 %v1615_v58, %v1605_v57 }
 0x9c6   :  { %v1619_v2 = vmul.f32 0.7978846, %v1617_v1 }
 0x9c8   :  { %2321 = vtanh.f32 %v1619_v2 }
 0x9d1   :  { %v2320_v3 = vpop.eup %2319 }
 0x9d2   :  { %v1622_v4 = vadd.f32 1.0, %v2320_v3 }
 0x9d4   :  { %v1624_v9 = vmul.f32 %v1622_v4, %v1608_v6 }
 0x9d5   :  { %v2322_v5 = vpop.eup %2321 }
 0x9d6   :  { %v1623_v8 = vadd.f32 1.0, %v2322_v5 }
 0x9d8   :  { %v1625_v11 = vmul.f32 %v1623_v8, %v1609_v7  ;;  %v2277_v8 = vld [vmem:[%s2862_s24 + $0x8] sm:$0xff]  }
 0x9da   :  { %v1626_v12 = vpack.c.bf16 %v1625_v11, %v1624_v9  ;;  %v2278_v9 = vld [vmem:[%s2862_s24] sm:$0xff]   ;;  %v31_v11 = vstv %s2863_s25 }
 0x9db   :  { %32 = vst [vmem:[#allocation2] sm:$0x1] %v31_v11 }
 0x9dc   :  { %2205 = vmatmul.mubr.msk.bf16.vlgmr.msra.gmra.mxu0 %vm1666_vm6, %v1626_v12  ;;  %v1988_v12 = vld [vmem:[%s2864_s23] ss:$0 sm:$0xff] }
 0xa9c   :  { %v1704_v10 = vpop.f32.mrf.mxu0 }
 0xa9d   :  { %v1705_v14 = vadd.f32 %v1980_v13, %v1704_v10 }
 0xa9e   :  { %v2206_v15 = vpop.f32.mrf.mxu0 }
 0xa9f   :  { %v1711_v16 = vadd.f32 %v1705_v14, %v1538_v42  ;;  %v1986_v42 = vld [vmem:[%s2860_s20] ss:$0 sm:$0xff] }
 0xaa0   :  { %v1707_v17 = vpop.f32.mrf.mxu0 }
 0xaa1   :  { %v1708_v18 = vadd.f32 %v1980_v13, %v1707_v17  ;;  %v1715_v19 = vsel %vm186_vm0, %v1711_v16, 0.0 }
 0xaa2   :  { %1716 = vadd.xlane.f32.xlu1 %v1715_v19  ;;  %v2207_v20 = vpop.f32.mrf.mxu0 }
 0xaa3   :  { %v1712_v21 = vadd.f32 %v1708_v18, %v1539_v43  ;;  %v1992_v18 = vld [vmem:[#allocation2] ss:$0 sm:$0xff] }
 0xaa5   :  { %v1718_v22 = vsel %vm186_vm0, %v1712_v21, 0.0 }
 0xaa6   :  { %1719 = vadd.xlane.f32.xlu0 %v1718_v22 }
 0xb2b   :  { %v1717_v51 = vpop.xlane.xlu1 %1716 }
 0xb2c   :  { %v1721_v23 = vmul.f32 0.03125, %v1717_v51 }
 0xb2e   :  { %v1723_v25 = vsub.f32 %v1711_v16, %v1721_v23 }
 0xb2f   :  { %v1720_v52 = vpop.xlane.xlu0 %1719 }
 0xb30   :  { %v1722_v26 = vmul.f32 0.03125, %v1720_v52  ;;  %v1725_v27 = vmul.f32 %v1723_v25, %v1723_v25 }
 0xb32   :  { %v1724_v28 = vsub.f32 %v1712_v21, %v1722_v26  ;;  %v1727_v29 = vsel %vm186_vm0, %v1725_v27, 0.0 }
 0xb33   :  { %1728 = vadd.xlane.f32.xlu1 %v1727_v29 }
 0xb34   :  { %v1726_v30 = vmul.f32 %v1724_v28, %v1724_v28 }
 0xb36   :  { %v1730_v31 = vsel %vm186_vm0, %v1726_v30, 0.0 }
 0xb37   :  { %1731 = vadd.xlane.f32.xlu0 %v1730_v31 }
 0xbbc   :  { %v1729_v33 = vpop.xlane.xlu1 %1728 }
 0xbbd   :  { %v1733_v36 = vmul.f32 0.03125, %v1729_v33 }
 0xbbf   :  { %v1735_v37 = vadd.f32 1e-05, %v1733_v36 }
 0xbc0   :  { %v1732_v38 = vpop.xlane.xlu0 %1731 }
 0xbc1   :  { %2323 = vrsqrt.f32 %v1735_v37  ;;  %v1734_v41 = vmul.f32 0.03125, %v1732_v38 }
 0xbc3   :  { %v1736_v39 = vadd.f32 1e-05, %v1734_v41 }
 0xbc5   :  { %2325 = vrsqrt.f32 %v1736_v39 }
 0xbce   :  { %v2324_v40 = vpop.eup %2323 }
 0xbcf   :  { %v1739_v43 = vmul.f32 %v2324_v40, %v1723_v25 }
 0xbd1   :  { %v1747_v45 = vmul.f32 %v1986_v42, %v1739_v43 }
 0xbd2   :  { %v2326_v46 = vpop.eup %2325 }
 0xbd3   :  { %v1755_v47 = vadd.f32 %v1987_v44, %v1747_v45  ;;  %v1740_v48 = vmul.f32 %v2326_v46, %v1724_v28 }
 0xbd5   :  { %v1757_v49 = vsel %vm186_vm0, %v1755_v47, -inf  ;;  %v1748_v50 = vmul.f32 %v1986_v42, %v1740_v48 }
 0xbd6   :  { %v1758_v54 = vrot.slane %v1757_v49, 4 }
 0xbd7   :  { %v1756_v55 = vadd.f32 %v1987_v44, %v1748_v50 }
 0xbd8   :  { %v1759_v35 = vmax.f32 %v1757_v49, %v1758_v54 }
 0xbd9   :  { %v1764_v56 = vsel %vm186_vm0, %v1756_v55, -inf }
 0xbda   :  { %v1765_v53 = vrot.slane %v1764_v56, 4  ;;  %v1760_v57 = vrot.slane %v1759_v35, 2 }
 0xbdc   :  { %v1761_v59 = vmax.f32 %v1759_v35, %v1760_v57  ;;  %v1766_v60 = vmax.f32 %v1764_v56, %v1765_v53 }
 0xbde   :  { %v1762_v61 = vrot.slane %v1761_v59, 1  ;;  %v1767_v62 = vrot.slane %v1766_v60, 2 }
 0xbe0   :  { %v1763_v0 = vmax.f32 %v1761_v59, %v1762_v61  ;;  %v1768_v63 = vmax.f32 %v1766_v60, %v1767_v62 }
 0xbe2   :  { %v1769_v58 = vrot.slane %v1768_v63, 1  ;;  %v1771_v2 = vpack.c.bf16 %v1763_v0, %v1763_v0 }
 0xbe4   :  { %v1770_v1 = vmax.f32 %v1768_v63, %v1769_v58  ;;  %v1786_v4 = vunpack.c.l.b16 %v1771_v2 }
 0xbe6   :  { %v1772_v3 = vpack.c.bf16 %v1770_v1, %v1770_v1 }
 0xbe8   :  { %v1787_v5 = vunpack.c.l.b16 %v1772_v3 }
 0xbea   :  { %v1789_v6 = vsel %vm1788_vm7, %v1787_v5, %v1786_v4 }
 0xbeb   :  { %v1790_v7 = vpack.c.b16 %v1789_v6, %v1789_v6 }
 0xbed   :  { %2213 = vmatmul.mubr.msk.bf16.vlgmr.msra.gmra.mxu1 %vm186_vm0, %v1790_v7 }
 0xbee   :  { %2220 = vmatprep.mubr.msk.bf16.mxu1 %vm2329_vm1, %v2328_v34  ;;  %2217 = vmatpush3.bf16.msra.mxu1 %v2277_v8 }
 0xbef   :  { %2218 = vmatprep.subr.bf16.mxu1 %v2328_v34 }
 0xbf2   :  { %2219 = vmatpush3.bf16.msra.mxu1 %v2278_v9 }
 0xcad   :  { %v1840_v13 = vpop.f32.mrf.mxu1 }
 0xcae   :  { %v1841_v10 = vadd.f32 %v1988_v12, %v1840_v13 }
 0xcaf   :  { %v2214_v14 = vpop.f32.mrf.mxu1 }
 0xcb0   :  { %v1846_v15 = vmax.f32 %v1841_v10, 0.0 }
 0xcb1   :  { %v1843_v16 = vpop.f32.mrf.mxu1 }
 0xcb2   :  { %v1847_v34 = vpack.c.bf16 %v1846_v15, %v1846_v15 }
 0xcb3   :  { %v2215_v17 = vpop.f32.mrf.mxu1 }
 0xcb4   :  { %2221 = vmatmul.mubr.msk.bf16.vlgmr.msra.gmra.mxu1 %vm186_vm0, %v1847_v34 }
 0xd74   :  { %v1908_v19 = vpop.f32.mrf.mxu1 }
 0xd75   :  { %v1909_v20 = vadd.f32 %v1992_v18, %v1908_v19 }
 0xd76   :  { %v2222_v21 = vpop.f32.mrf.mxu1 }
 0xd77   :  { %1915 = vst.msk [vmem:[%s2865_s26] sm:$0x3] %vm1914_vm8, %v1909_v20 }
 0xd78   :  { %v1911_v22 = vpop.f32.mrf.mxu1 }
 0xd7a   :  { %v2223_v51 = vpop.f32.mrf.mxu1 }

</bundles_post_ra>
